<compile_context>
chip_gen: v6e
topology: v6e:2x2x1
jax: 0.10.0
libtpu: 0.0.40
codegen_flags: <defaults>
</compile_context>

<pallas_src>
import functools

import jax
import jax.numpy as jnp
from jax import lax
from jax.experimental import pallas as pl
from jax.experimental.pallas import tpu as pltpu

EPS = 1e-5     # BatchNorm2d default eps
LANE = 128     # TPU lane width


def _round_up(x, m):
    return (x + m - 1) // m * m


# ------------------------------ Pallas kernel -------------------------------

def _cat_conv_kernel(Wt,
                     x_ref,                  # (1, Lp, C4p)  bf16  flat padded slab
                     w_ref,                  # (9, C4p, Cop) bf16  per-tap weights
                     scale_ref, shift_ref,   # (1, Cop)      f32   folded bias+BN
                     o_ref,                  # (1, Lp, Cout) f32
                     acc_ref):               # (Lp, Cop)     f32   scratch
    """relu( (sum_taps shift_rows(X_flat @ W_tap)) * scale + shift ) per image."""
    lp = acc_ref.shape[0]
    cout = o_ref.shape[-1]
    x = x_ref[0]                                            # (Lp, C4p)

    # Center tap first so it initializes the accumulator (no explicit zero-init).
    taps = ((1, 1), (0, 0), (0, 1), (0, 2), (1, 0), (1, 2), (2, 0), (2, 1), (2, 2))
    for idx, (ky, kx) in enumerate(taps):
        p = jnp.dot(x, w_ref[ky * 3 + kx],
                    preferred_element_type=jnp.float32)     # (Lp, Cop) fp32
        d = (ky - 1) * Wt + (kx - 1)                        # static row offset
        if idx == 0:                 # center tap, d == 0
            acc_ref[...] = p
        elif d > 0:
            acc_ref[0:lp - d, :] += p[d:lp, :]
        else:                        # d < 0
            acc_ref[-d:lp, :] += p[0:lp + d, :]
        # Rows outside each tap's slice are halo rows that the wrapper discards;
        # every interior (output) row receives all 9 taps with correct sources.

    y = acc_ref[...] * scale_ref[...] + shift_ref[...]      # folded conv-bias + BN
    y = jnp.maximum(y, 0.0)                                  # ReLU
    o_ref[0] = y[:, :cout]                                   # drop channel padding


# -------------------------------- wrapper -----------------------------------

def cat_fusion_forward(xs, params, *, compute_dtype=jnp.bfloat16):
    """xs: sequence of 4 NCHW arrays (N, C, H, W).  Returns (N, Cout, H, W)."""
    assert len(xs) == 4
    N, C, H, W = xs[0].shape
    Cout = params["b"].shape[0]
    C4 = 4 * C
    C4p = _round_up(C4, LANE)          # concat-then-pad input channels (item 1)
    Cop = _round_up(Cout, LANE)        # matmul output lane width
    Wt = _round_up(W + 2, 8)           # halo-padded width, sublane aligned (item 7)
    Lp = (H + 2) * Wt                  # flattened padded row count (multiple of 8)

    # Concat on channels FIRST, then NCHW -> NHWC, 1-px halo + width/channel pad,
    # flatten spatial, cast to bf16 for the MXU.
    x = jnp.concatenate(xs, axis=1)                           # (N, 4C, H, W)
    x = jnp.transpose(x, (0, 2, 3, 1))                        # (N, H, W, 4C)
    x = jnp.pad(x, ((0, 0), (1, 1), (1, Wt - W - 1), (0, C4p - C4)))
    x = x.reshape(N, Lp, C4p).astype(compute_dtype)           # (N, Lp, C4p)

    # Weights (Cout, 4C, 3, 3) -> per-tap slices (9, C4p, Cop), bf16.
    w = jnp.transpose(params["w"], (2, 3, 1, 0)).reshape(9, C4, Cout)
    w = jnp.pad(w, ((0, 0), (0, C4p - C4), (0, Cop - Cout))).astype(compute_dtype)

    # Fold conv bias + eval-mode BatchNorm into per-channel scale / shift (fp32).
    scale = params["gamma"] / jnp.sqrt(params["var"] + EPS)
    shift = params["beta"] + (params["b"] - params["mean"]) * scale
    scale = jnp.pad(scale, (0, Cop - Cout)).reshape(1, Cop).astype(jnp.float32)
    shift = jnp.pad(shift, (0, Cop - Cout)).reshape(1, Cop).astype(jnp.float32)

    kernel = functools.partial(_cat_conv_kernel, Wt)
    out = pl.pallas_call(
        kernel,
        out_shape=jax.ShapeDtypeStruct((N, Lp, Cout), jnp.float32),
        grid_spec=pltpu.PrefetchScalarGridSpec(
            num_scalar_prefetch=0,
            grid=(N,),
            in_specs=[pl.BlockSpec((1, Lp, C4p), lambda n: (n, 0, 0)),
                      pl.BlockSpec((9, C4p, Cop), lambda n: (0, 0, 0)),   # resident
                      pl.BlockSpec((1, Cop), lambda n: (0, 0)),
                      pl.BlockSpec((1, Cop), lambda n: (0, 0))],
            out_specs=pl.BlockSpec((1, Lp, Cout), lambda n: (n, 0, 0)),
            scratch_shapes=[pltpu.VMEM((Lp, Cop), jnp.float32)],
        ),
        compiler_params=pltpu.CompilerParams(
            dimension_semantics=("parallel",)),
    )(x, w, scale, shift)

    # Crop the spatial halo / width padding and relabel to NCHW (tiny XLA ops).
    out = out.reshape(N, H + 2, Wt, Cout)[:, 1:H + 1, 1:W + 1, :]
    return jnp.transpose(out, (0, 3, 1, 2))


# ---------------------------- pure-JAX reference -----------------------------

def cat_fusion_ref(xs, params):
    x = jnp.concatenate(xs, axis=1)                      # (N, 4C, H, W)
    x = jnp.transpose(x, (0, 2, 3, 1))                   # NHWC
    N, H, W, _ = x.shape
    xp = jnp.pad(x, ((0, 0), (1, 1), (1, 1), (0, 0)))
    w = jnp.transpose(params["w"], (2, 3, 1, 0))         # (3, 3, Ci, Co)
    y = jnp.zeros((N, H, W, params["w"].shape[0]), jnp.float32)
    for ky in range(3):
        for kx in range(3):
            y = y + jnp.einsum("nhwc,co->nhwo",
                               xp[:, ky:ky + H, kx:kx + W, :], w[ky, kx],
                               precision=lax.Precision.HIGHEST)
    y = y + params["b"]
    y = (y - params["mean"]) / jnp.sqrt(params["var"] + EPS) * params["gamma"] \
        + params["beta"]
    y = jnp.maximum(y, 0.0)
    return jnp.transpose(y, (0, 3, 1, 2))


# ------------------------------- param init ----------------------------------

def init_params(key, channels):
    cin = 4 * channels
    k1, k2, k3, k4, k5, k6 = jax.random.split(key, 6)
    return {
        "w": jax.random.normal(k1, (channels, cin, 3, 3), jnp.float32) * 0.1,
        "b": jax.random.normal(k2, (channels,), jnp.float32) * 0.1,
        "gamma": jax.random.uniform(k3, (channels,), jnp.float32, 0.8, 1.2),
        "beta": jax.random.normal(k4, (channels,), jnp.float32) * 0.1,
        "mean": jax.random.normal(k5, (channels,), jnp.float32) * 0.1,
        "var": jax.random.uniform(k6, (channels,), jnp.float32, 0.5, 1.5),
    }


# ----------------------------------- main -------------------------------------

if __name__ == "__main__":
    key = jax.random.PRNGKey(0)
    k_p, k_x = jax.random.split(key)

    N, C, H, W = 2, 4, 16, 16
    params = init_params(k_p, C)
    xk = jax.random.split(k_x, 4)
    xs = tuple(jax.random.normal(xk[i], (N, C, H, W), jnp.float32)
               for i in range(4))

    # Round the matmul operands to bf16 so the bf16-MXU kernel and the fp32
    # reference see identical values (accumulation stays fp32 in both).
    def _bf(a):
        return a.astype(jnp.bfloat16).astype(jnp.float32)
    xs = tuple(_bf(x) for x in xs)
    params = dict(params, w=_bf(params["w"]))

    out = jax.block_until_ready(cat_fusion_forward(xs, params))
    assert out.shape == (N, C, H, W), out.shape

    ref = cat_fusion_ref(xs, params)
    if not jnp.allclose(out, ref, atol=1e-3, rtol=1e-3):
        err = float(jnp.max(jnp.abs(out - ref)))
        raise AssertionError(f"Pallas Cat_Fusion mismatch, max abs err {err}")

    print("KERNEL_OK")
</pallas_src>

<mosaic_0001>
module attributes {stable_mosaic.version = 11 : i64} {
  func.func @_cat_conv_kernel(%arg0: i32, %arg1: memref<1x432x128xbf16, #tpu.memory_space<vmem>>, %arg2: memref<9x128x128xbf16, #tpu.memory_space<vmem>>, %arg3: memref<1x128xf32, #tpu.memory_space<vmem>>, %arg4: memref<1x128xf32, #tpu.memory_space<vmem>>, %arg5: memref<1x432x4xf32, #tpu.memory_space<vmem>>, %arg6: memref<432x128xf32, #tpu.memory_space<vmem>>) attributes {dimension_semantics = [#tpu.dimension_semantics<parallel>], iteration_bounds = array<i64: 2>, scalar_prefetch = 0 : i64, scratch_operands = 1 : i64, tpu.core_type = #tpu.core_type<tc>, window_params = [{transform_indices = @transform_0, window_bounds = array<i64: 1, 432, 128>}, {pipeline_mode = #tpu.pipeline_mode<synchronous>, transform_indices = @transform_1, window_bounds = array<i64: 9, 128, 128>}, {pipeline_mode = #tpu.pipeline_mode<synchronous>, transform_indices = @transform_2, window_bounds = array<i64: 1, 128>}, {pipeline_mode = #tpu.pipeline_mode<synchronous>, transform_indices = @transform_3, window_bounds = array<i64: 1, 128>}, {transform_indices = @transform_4, window_bounds = array<i64: 1, 432, 4>}]} {
    %c0 = arith.constant 0 : index
    %c0_0 = arith.constant 0 : index
    %c0_1 = arith.constant 0 : index
    %0 = vector.load %arg1[%c0, %c0_0, %c0_1] : memref<1x432x128xbf16, #tpu.memory_space<vmem>>, vector<1x432x128xbf16>
    %1 = vector.shape_cast %0 : vector<1x432x128xbf16> to vector<432x128xbf16>
    %c4 = arith.constant 4 : index
    %c0_2 = arith.constant 0 : index
    %c0_3 = arith.constant 0 : index
    %2 = vector.load %arg2[%c4, %c0_2, %c0_3] : memref<9x128x128xbf16, #tpu.memory_space<vmem>>, vector<1x128x128xbf16>
    %3 = vector.shape_cast %2 : vector<1x128x128xbf16> to vector<128x128xbf16>
    %cst = arith.constant dense<0.000000e+00> : vector<432x128xf32>
    %4 = tpu.matmul %1, %3, %cst {dimension_numbers = #tpu.dot_dimension_numbers<[1], [0], [0], [1], [0, 0, 1, 1], [], []>} : vector<432x128xbf16>, vector<128x128xbf16>, vector<432x128xf32> -> vector<432x128xf32>
    %c0_4 = arith.constant 0 : index
    %c0_5 = arith.constant 0 : index
    %5 = vector.load %arg6[%c0_4, %c0_5] : memref<432x128xf32, #tpu.memory_space<vmem>>, vector<432x128xf32>
    tpu.vector_store %arg6[%c0_4, %c0_5], %4 {strides = array<i32>} : memref<432x128xf32, #tpu.memory_space<vmem>>, vector<432x128xf32>,
    %c0_6 = arith.constant 0 : index
    %c0_7 = arith.constant 0 : index
    %c0_8 = arith.constant 0 : index
    %6 = vector.load %arg2[%c0_6, %c0_7, %c0_8] : memref<9x128x128xbf16, #tpu.memory_space<vmem>>, vector<1x128x128xbf16>
    %7 = vector.shape_cast %6 : vector<1x128x128xbf16> to vector<128x128xbf16>
    %cst_9 = arith.constant dense<0.000000e+00> : vector<432x128xf32>
    %8 = tpu.matmul %1, %7, %cst_9 {dimension_numbers = #tpu.dot_dimension_numbers<[1], [0], [0], [1], [0, 0, 1, 1], [], []>} : vector<432x128xbf16>, vector<128x128xbf16>, vector<432x128xf32> -> vector<432x128xf32>
    %c25 = arith.constant 25 : index
    %c0_10 = arith.constant 0 : index
    %9 = vector.load %arg6[%c25, %c0_10] : memref<432x128xf32, #tpu.memory_space<vmem>>, vector<407x128xf32>
    %10 = vector.extract_strided_slice %8 {offsets = [0, 0], sizes = [407, 128], strides = [1, 1]} : vector<432x128xf32> to vector<407x128xf32>
    %11 = arith.addf %9, %10 : vector<407x128xf32>
    %c25_11 = arith.constant 25 : index
    %c0_12 = arith.constant 0 : index
    %12 = vector.load %arg6[%c25_11, %c0_12] : memref<432x128xf32, #tpu.memory_space<vmem>>, vector<407x128xf32>
    tpu.vector_store %arg6[%c25_11, %c0_12], %11 {strides = array<i32>} : memref<432x128xf32, #tpu.memory_space<vmem>>, vector<407x128xf32>,
    %c1 = arith.constant 1 : index
    %c0_13 = arith.constant 0 : index
    %c0_14 = arith.constant 0 : index
    %13 = vector.load %arg2[%c1, %c0_13, %c0_14] : memref<9x128x128xbf16, #tpu.memory_space<vmem>>, vector<1x128x128xbf16>
    %14 = vector.shape_cast %13 : vector<1x128x128xbf16> to vector<128x128xbf16>
    %cst_15 = arith.constant dense<0.000000e+00> : vector<432x128xf32>
    %15 = tpu.matmul %1, %14, %cst_15 {dimension_numbers = #tpu.dot_dimension_numbers<[1], [0], [0], [1], [0, 0, 1, 1], [], []>} : vector<432x128xbf16>, vector<128x128xbf16>, vector<432x128xf32> -> vector<432x128xf32>
    %c24 = arith.constant 24 : index
    %c0_16 = arith.constant 0 : index
    %16 = vector.load %arg6[%c24, %c0_16] : memref<432x128xf32, #tpu.memory_space<vmem>>, vector<408x128xf32>
    %17 = vector.extract_strided_slice %15 {offsets = [0, 0], sizes = [408, 128], strides = [1, 1]} : vector<432x128xf32> to vector<408x128xf32>
    %18 = arith.addf %16, %17 : vector<408x128xf32>
    %c24_17 = arith.constant 24 : index
    %c0_18 = arith.constant 0 : index
    %19 = vector.load %arg6[%c24_17, %c0_18] : memref<432x128xf32, #tpu.memory_space<vmem>>, vector<408x128xf32>
    tpu.vector_store %arg6[%c24_17, %c0_18], %18 {strides = array<i32>} : memref<432x128xf32, #tpu.memory_space<vmem>>, vector<408x128xf32>,
    %c2 = arith.constant 2 : index
    %c0_19 = arith.constant 0 : index
    %c0_20 = arith.constant 0 : index
    %20 = vector.load %arg2[%c2, %c0_19, %c0_20] : memref<9x128x128xbf16, #tpu.memory_space<vmem>>, vector<1x128x128xbf16>
    %21 = vector.shape_cast %20 : vector<1x128x128xbf16> to vector<128x128xbf16>
    %cst_21 = arith.constant dense<0.000000e+00> : vector<432x128xf32>
    %22 = tpu.matmul %1, %21, %cst_21 {dimension_numbers = #tpu.dot_dimension_numbers<[1], [0], [0], [1], [0, 0, 1, 1], [], []>} : vector<432x128xbf16>, vector<128x128xbf16>, vector<432x128xf32> -> vector<432x128xf32>
    %c23 = arith.constant 23 : index
    %c0_22 = arith.constant 0 : index
    %23 = vector.load %arg6[%c23, %c0_22] : memref<432x128xf32, #tpu.memory_space<vmem>>, vector<409x128xf32>
    %24 = vector.extract_strided_slice %22 {offsets = [0, 0], sizes = [409, 128], strides = [1, 1]} : vector<432x128xf32> to vector<409x128xf32>
    %25 = arith.addf %23, %24 : vector<409x128xf32>
    %c23_23 = arith.constant 23 : index
    %c0_24 = arith.constant 0 : index
    %26 = vector.load %arg6[%c23_23, %c0_24] : memref<432x128xf32, #tpu.memory_space<vmem>>, vector<409x128xf32>
    tpu.vector_store %arg6[%c23_23, %c0_24], %25 {strides = array<i32>} : memref<432x128xf32, #tpu.memory_space<vmem>>, vector<409x128xf32>,
    %c3 = arith.constant 3 : index
    %c0_25 = arith.constant 0 : index
    %c0_26 = arith.constant 0 : index
    %27 = vector.load %arg2[%c3, %c0_25, %c0_26] : memref<9x128x128xbf16, #tpu.memory_space<vmem>>, vector<1x128x128xbf16>
    %28 = vector.shape_cast %27 : vector<1x128x128xbf16> to vector<128x128xbf16>
    %cst_27 = arith.constant dense<0.000000e+00> : vector<432x128xf32>
    %29 = tpu.matmul %1, %28, %cst_27 {dimension_numbers = #tpu.dot_dimension_numbers<[1], [0], [0], [1], [0, 0, 1, 1], [], []>} : vector<432x128xbf16>, vector<128x128xbf16>, vector<432x128xf32> -> vector<432x128xf32>
    %c1_28 = arith.constant 1 : index
    %c0_29 = arith.constant 0 : index
    %30 = vector.load %arg6[%c1_28, %c0_29] : memref<432x128xf32, #tpu.memory_space<vmem>>, vector<431x128xf32>
    %31 = vector.extract_strided_slice %29 {offsets = [0, 0], sizes = [431, 128], strides = [1, 1]} : vector<432x128xf32> to vector<431x128xf32>
    %32 = arith.addf %30, %31 : vector<431x128xf32>
    %c1_30 = arith.constant 1 : index
    %c0_31 = arith.constant 0 : index
    %33 = vector.load %arg6[%c1_30, %c0_31] : memref<432x128xf32, #tpu.memory_space<vmem>>, vector<431x128xf32>
    tpu.vector_store %arg6[%c1_30, %c0_31], %32 {strides = array<i32>} : memref<432x128xf32, #tpu.memory_space<vmem>>, vector<431x128xf32>,
    %c5 = arith.constant 5 : index
    %c0_32 = arith.constant 0 : index
    %c0_33 = arith.constant 0 : index
    %34 = vector.load %arg2[%c5, %c0_32, %c0_33] : memref<9x128x128xbf16, #tpu.memory_space<vmem>>, vector<1x128x128xbf16>
    %35 = vector.shape_cast %34 : vector<1x128x128xbf16> to vector<128x128xbf16>
    %cst_34 = arith.constant dense<0.000000e+00> : vector<432x128xf32>
    %36 = tpu.matmul %1, %35, %cst_34 {dimension_numbers = #tpu.dot_dimension_numbers<[1], [0], [0], [1], [0, 0, 1, 1], [], []>} : vector<432x128xbf16>, vector<128x128xbf16>, vector<432x128xf32> -> vector<432x128xf32>
    %c0_35 = arith.constant 0 : index
    %c0_36 = arith.constant 0 : index
    %37 = vector.load %arg6[%c0_35, %c0_36] : memref<432x128xf32, #tpu.memory_space<vmem>>, vector<431x128xf32>
    %38 = vector.extract_strided_slice %36 {offsets = [1, 0], sizes = [431, 128], strides = [1, 1]} : vector<432x128xf32> to vector<431x128xf32>
    %39 = arith.addf %37, %38 : vector<431x128xf32>
    %c0_37 = arith.constant 0 : index
    %c0_38 = arith.constant 0 : index
    %40 = vector.load %arg6[%c0_37, %c0_38] : memref<432x128xf32, #tpu.memory_space<vmem>>, vector<431x128xf32>
    tpu.vector_store %arg6[%c0_37, %c0_38], %39 {strides = array<i32>} : memref<432x128xf32, #tpu.memory_space<vmem>>, vector<431x128xf32>,
    %c6 = arith.constant 6 : index
    %c0_39 = arith.constant 0 : index
    %c0_40 = arith.constant 0 : index
    %41 = vector.load %arg2[%c6, %c0_39, %c0_40] : memref<9x128x128xbf16, #tpu.memory_space<vmem>>, vector<1x128x128xbf16>
    %42 = vector.shape_cast %41 : vector<1x128x128xbf16> to vector<128x128xbf16>
    %cst_41 = arith.constant dense<0.000000e+00> : vector<432x128xf32>
    %43 = tpu.matmul %1, %42, %cst_41 {dimension_numbers = #tpu.dot_dimension_numbers<[1], [0], [0], [1], [0, 0, 1, 1], [], []>} : vector<432x128xbf16>, vector<128x128xbf16>, vector<432x128xf32> -> vector<432x128xf32>
    %c0_42 = arith.constant 0 : index
    %c0_43 = arith.constant 0 : index
    %44 = vector.load %arg6[%c0_42, %c0_43] : memref<432x128xf32, #tpu.memory_space<vmem>>, vector<409x128xf32>
    %45 = vector.extract_strided_slice %43 {offsets = [23, 0], sizes = [409, 128], strides = [1, 1]} : vector<432x128xf32> to vector<409x128xf32>
    %46 = arith.addf %44, %45 : vector<409x128xf32>
    %c0_44 = arith.constant 0 : index
    %c0_45 = arith.constant 0 : index
    %47 = vector.load %arg6[%c0_44, %c0_45] : memref<432x128xf32, #tpu.memory_space<vmem>>, vector<409x128xf32>
    tpu.vector_store %arg6[%c0_44, %c0_45], %46 {strides = array<i32>} : memref<432x128xf32, #tpu.memory_space<vmem>>, vector<409x128xf32>,
    %c7 = arith.constant 7 : index
    %c0_46 = arith.constant 0 : index
    %c0_47 = arith.constant 0 : index
    %48 = vector.load %arg2[%c7, %c0_46, %c0_47] : memref<9x128x128xbf16, #tpu.memory_space<vmem>>, vector<1x128x128xbf16>
    %49 = vector.shape_cast %48 : vector<1x128x128xbf16> to vector<128x128xbf16>
    %cst_48 = arith.constant dense<0.000000e+00> : vector<432x128xf32>
    %50 = tpu.matmul %1, %49, %cst_48 {dimension_numbers = #tpu.dot_dimension_numbers<[1], [0], [0], [1], [0, 0, 1, 1], [], []>} : vector<432x128xbf16>, vector<128x128xbf16>, vector<432x128xf32> -> vector<432x128xf32>
    %c0_49 = arith.constant 0 : index
    %c0_50 = arith.constant 0 : index
    %51 = vector.load %arg6[%c0_49, %c0_50] : memref<432x128xf32, #tpu.memory_space<vmem>>, vector<408x128xf32>
    %52 = vector.extract_strided_slice %50 {offsets = [24, 0], sizes = [408, 128], strides = [1, 1]} : vector<432x128xf32> to vector<408x128xf32>
    %53 = arith.addf %51, %52 : vector<408x128xf32>
    %c0_51 = arith.constant 0 : index
    %c0_52 = arith.constant 0 : index
    %54 = vector.load %arg6[%c0_51, %c0_52] : memref<432x128xf32, #tpu.memory_space<vmem>>, vector<408x128xf32>
    tpu.vector_store %arg6[%c0_51, %c0_52], %53 {strides = array<i32>} : memref<432x128xf32, #tpu.memory_space<vmem>>, vector<408x128xf32>,
    %c8 = arith.constant 8 : index
    %c0_53 = arith.constant 0 : index
    %c0_54 = arith.constant 0 : index
    %55 = vector.load %arg2[%c8, %c0_53, %c0_54] : memref<9x128x128xbf16, #tpu.memory_space<vmem>>, vector<1x128x128xbf16>
    %56 = vector.shape_cast %55 : vector<1x128x128xbf16> to vector<128x128xbf16>
    %cst_55 = arith.constant dense<0.000000e+00> : vector<432x128xf32>
    %57 = tpu.matmul %1, %56, %cst_55 {dimension_numbers = #tpu.dot_dimension_numbers<[1], [0], [0], [1], [0, 0, 1, 1], [], []>} : vector<432x128xbf16>, vector<128x128xbf16>, vector<432x128xf32> -> vector<432x128xf32>
    %c0_56 = arith.constant 0 : index
    %c0_57 = arith.constant 0 : index
    %58 = vector.load %arg6[%c0_56, %c0_57] : memref<432x128xf32, #tpu.memory_space<vmem>>, vector<407x128xf32>
    %59 = vector.extract_strided_slice %57 {offsets = [25, 0], sizes = [407, 128], strides = [1, 1]} : vector<432x128xf32> to vector<407x128xf32>
    %60 = arith.addf %58, %59 : vector<407x128xf32>
    %c0_58 = arith.constant 0 : index
    %c0_59 = arith.constant 0 : index
    %61 = vector.load %arg6[%c0_58, %c0_59] : memref<432x128xf32, #tpu.memory_space<vmem>>, vector<407x128xf32>
    tpu.vector_store %arg6[%c0_58, %c0_59], %60 {strides = array<i32>} : memref<432x128xf32, #tpu.memory_space<vmem>>, vector<407x128xf32>,
    %c0_60 = arith.constant 0 : index
    %c0_61 = arith.constant 0 : index
    %62 = vector.load %arg6[%c0_60, %c0_61] : memref<432x128xf32, #tpu.memory_space<vmem>>, vector<432x128xf32>
    %c0_62 = arith.constant 0 : index
    %c0_63 = arith.constant 0 : index
    %63 = vector.load %arg3[%c0_62, %c0_63] : memref<1x128xf32, #tpu.memory_space<vmem>>, vector<1x128xf32>
    %64 = vector.broadcast %63 : vector<1x128xf32> to vector<432x128xf32>
    %65 = arith.mulf %62, %64 : vector<432x128xf32>
    %c0_64 = arith.constant 0 : index
    %c0_65 = arith.constant 0 : index
    %66 = vector.load %arg4[%c0_64, %c0_65] : memref<1x128xf32, #tpu.memory_space<vmem>>, vector<1x128xf32>
    %67 = vector.broadcast %66 : vector<1x128xf32> to vector<432x128xf32>
    %68 = arith.addf %65, %67 : vector<432x128xf32>
    %cst_66 = arith.constant 0.000000e+00 : f32
    %69 = vector.broadcast %cst_66 : f32 to vector<432x128xf32>
    %70 = arith.maximumf %68, %69 : vector<432x128xf32>
    %71 = vector.extract_strided_slice %70 {offsets = [0, 0], sizes = [432, 4], strides = [1, 1]} : vector<432x128xf32> to vector<432x4xf32>
    %c0_67 = arith.constant 0 : index
    %c0_68 = arith.constant 0 : index
    %c0_69 = arith.constant 0 : index
    %72 = vector.load %arg5[%c0_67, %c0_68, %c0_69] : memref<1x432x4xf32, #tpu.memory_space<vmem>>, vector<1x432x4xf32>
    %73 = vector.shape_cast %72 : vector<1x432x4xf32> to vector<432x4xf32>
    %74 = vector.shape_cast %71 : vector<432x4xf32> to vector<1x432x4xf32>
    tpu.vector_store %arg5[%c0_67, %c0_68, %c0_69], %74 {strides = array<i32>} : memref<1x432x4xf32, #tpu.memory_space<vmem>>, vector<1x432x4xf32>,
    return
  }
  func.func @transform_0(%arg0: i32) -> (i32, i32, i32) {
    %c0_i32 = arith.constant 0 : i32
    %c0_i32_0 = arith.constant 0 : i32
    %c0_i32_1 = arith.constant 0 : i32
    return %arg0, %c0_i32, %c0_i32_0 : i32, i32, i32
  }
  func.func @transform_1(%arg0: i32) -> (i32, i32, i32) {
    %c0_i32 = arith.constant 0 : i32
    %c0_i32_0 = arith.constant 0 : i32
    %c0_i32_1 = arith.constant 0 : i32
    %c0_i32_2 = arith.constant 0 : i32
    return %c0_i32, %c0_i32_0, %c0_i32_1 : i32, i32, i32
  }
  func.func @transform_2(%arg0: i32) -> (i32, i32) {
    %c0_i32 = arith.constant 0 : i32
    %c0_i32_0 = arith.constant 0 : i32
    %c0_i32_1 = arith.constant 0 : i32
    return %c0_i32, %c0_i32_0 : i32, i32
  }
  func.func @transform_3(%arg0: i32) -> (i32, i32) {
    %c0_i32 = arith.constant 0 : i32
    %c0_i32_0 = arith.constant 0 : i32
    %c0_i32_1 = arith.constant 0 : i32
    return %c0_i32, %c0_i32_0 : i32, i32
  }
  func.func @transform_4(%arg0: i32) -> (i32, i32, i32) {
    %c0_i32 = arith.constant 0 : i32
    %c0_i32_0 = arith.constant 0 : i32
    %c0_i32_1 = arith.constant 0 : i32
    return %arg0, %c0_i32, %c0_i32_0 : i32, i32, i32
  }
}

</mosaic_0001>

<bundles_post_ra>
// kernel: tpu_custom_call.1
= control target key start
LH: loop header
LB: loop body
LE: loop exit
PB: predicated region body
PF: predicated region fallthrough
CT: control target
= control target key end

     0   :  { %9 = vsyncpa [#allocation4], 0  ;;  %s8957_s0 = inlined_call_operand.hbm [shape: bf16[2,432,128], index: 0, kind: input, shape index: {}]   ;;  %s8958_s1 = inlined_call_operand.hbm [shape: bf16[9,128,128], index: 1, kind: input, shape index: {}]   ;;  %s8959_s2 = inlined_call_operand.vmem [shape: f32[1,128], index: 2, kind: input, shape index: {}]   ;;  %s8960_s3 = inlined_call_operand.vmem [shape: f32[1,128], index: 3, kind: input, shape index: {}]   ;;  %s8961_s4 = inlined_call_operand.vmem [shape: f32[2,432,4], index: 4, kind: output, shape index: {}]  }
   0x1   :  { %11 = vsyncpa [#allocation4 + $0x1], 0 }
   0x2   :  { %12 = vsyncpa [#allocation6], 0  ;;  %s7473_s15 = smov 0   ;;  %s7475_s16 = smov 0  }
   0x3   :  { %s7477_s17 = smov 0   ;;  %s7479_s18 = smov 0  }
   0x4 LB: > { %s7492_s19 = sadd.s32 4294967295, %s7440_s18   ;;  %p38_p0 = scmp.ne.s32.totalorder %s7432_s16, %s7428_s15  ;;  %s7440_s18 = sphi %s7479_s18, %s8976_s18   ;;  %s7436_s17 = sphi %s7477_s17, %s8975_s17   ;;  %s7432_s16 = sphi %s7475_s16, %s8974_s16   ;;  %s7428_s15 = sphi %s7473_s15, %s8973_s15  }
   0x5   : > { %p8962_p1 = scmp.eq.s32.totalorder %s7492_s19, 0  ;;  %p5551_p2 = scmp.ge.s32.totalorder %s7440_s18, 1 }
   0x6   : > { %p138_p3 = scmp.lt.s32.totalorder %s7440_s18, 3  ;;  %s7442_s22 = smov [#allocation5]  }
   0x7   : > { %p7500_p4 = por %p8962_p1, %p38_p0  ;;  %s150_s23 = sshll.u32 %s7442_s22, 4  ;;  %s151_s23 = int_to_ptr.vmem [resolvable:$true] %s150_s23 }
   0x8   : > { %p7504_p5 = pnand %p5551_p2, %p138_p3  ;;  %s7517_s25 = sadd.s32 1, %s7440_s18  }
   0x9   : > { %s8965_s20 = scalar_select %p7500_p4, 1, 0 }
   0xa   : > { %s8966_s21 = scalar_select %p7504_p5, 1, 0 }
   0xb   : > { %p7118_p6 = pneg %p7504_p5  ;;  %s25_s26 = sadd.s32 1, %s7436_s17 }
   0xc   : > { %s22_s27 = ssub.s32 %s7440_s18, %s7517_s25  ;;  %s7359_s28 = scalar_lea.vmem %s151_s23, 9216 }
   0xd   : > { %p7512_p7 = pnand %p7118_p6, %p8962_p1  ;;  %p7360_p9 = scmp.ne.s32.totalorder %s151_s23, %s7359_s28 }
   0xe   : > { %p7367_p12 = scmp.lt.s32.totalorder %s151_s23, %s151_s23  ;;  %p7368_p13 = scmp.lt.s32.totalorder %s7359_s28, %s7359_s28 }
   0xf   : > { %p7350_p8 = pneg %p7512_p7 }
  0x10   : > { %p7369_p0 = por %p7368_p13, %p7367_p12 }
  0x11   : > { %p7362_p10 = pnand %p7360_p9, %p7350_p8 }
  0x13   : > { %p7363_p11 = pneg %p7362_p10 }
  0x15   : > { %p7370_p2 = pnand %p7369_p0, %p7363_p11 }
  0x17   : > { %7373 = shalt.err (!%p7370_p2)
}
  0x18   : > { %s7443_s29 = smov 64   ;;  %s7444_s30 = smov 4  }
  0x19   : > { %7121 = dma.hbm_to_vmem [thread:$0]  (!%p7512_p7), %s8958_s1, 9216, %s151_s23, [#allocation6], %s7443_s29, %s7443_s29, %s7444_s30  }
  0x1a   : > { %p23_p3 = scmp.eq.s32.totalorder %s22_s27, 0  ;;  %p32_p6 = scmp.ne.s32.totalorder %s7436_s17, %s7432_s16 }
  0x1b   : > { %p33_p8 = scmp.eq.s32.totalorder %s7440_s18, 0  ;;  %p7127_p9 = scmp.lt.s32.totalorder %s7440_s18, 2 }
  0x1c   : > { %s7537_s7 = scalar_select %p23_p3, %s7436_s17, %s25_s26  }
  0x1d   : > { %p34_p10 = por %p33_p8, %p32_p6  ;;  %s170_s8 = sand.u32 1, %s7436_s17  }
  0x1e   : > { %s7108_s9 = smul.u32 216, %s170_s8  ;;  %s7552_s23 = scalar_lea.sflag [#allocation4], %s170_s8 }
  0x1f   : > { %s7109_s10 = smul.u32 3456, %s7440_s18  ;;  %p7541_p11 = pnand %p7127_p9, %p34_p10 }
  0x20   : > { %s174_s15 = scalar_lea.vmem [#allocation3], %s7108_s9  ;;  %s7379_s27 = scalar_lea.hbm %s8957_s0, 6912 }
  0x21   : > { %s7548_s14 = scalar_lea.hbm %s8957_s0, %s7109_s10  ;;  %s181_s22 = sshll.u32 %s174_s15, 4  ;;  %s7550_s22 = int_to_ptr.vmem [resolvable:$true] %s181_s22 }
  0x22   : > { %s7374_s18 = scalar_lea.hbm %s7548_s14, 3456  ;;  %p7376_p12 = pneg %p7541_p11 }
  0x23   : > { %p7375_p7 = scmp.ne.s32.totalorder %s7548_s14, %s7374_s18  ;;  %p7380_p2 = scmp.lt.s32.totalorder %s7548_s14, %s8957_s0 }
  0x24   : > { %p7381_p3 = scmp.lt.s32.totalorder %s7379_s27, %s7374_s18 }
  0x25   : > { %p7377_p13 = pnand %p7376_p12, %p7375_p7 }
  0x26   : > { %p7382_p6 = por %p7381_p3, %p7380_p2 }
  0x27   : > { %p7378_p0 = pneg %p7377_p13 }
  0x29   : > { %p7383_p8 = pnand %p7382_p6, %p7378_p0 }
  0x2b   : > { %7386 = shalt.err (!%p7383_p8)
}
  0x2c   : > { %s7387_s6 = scalar_lea.vmem %s7550_s22, 3456  ;;  %s7445_s8 = smov [#allocation3]  }
  0x2d   : > { %p7388_p9 = scmp.ne.s32.totalorder %s7550_s22, %s7387_s6  ;;  %s7392_s9 = sshll.u32 %s7445_s8, 4  ;;  %s7393_s9 = int_to_ptr.vmem [resolvable:$false] %s7392_s9 }
  0x2e   : > { %s7394_s10 = scalar_lea.vmem %s7393_s9, 6912  ;;  %p7395_p13 = scmp.lt.s32.totalorder %s7550_s22, %s7393_s9 }
  0x2f   : > { %p7390_p10 = pnand %p7388_p9, %p7376_p12  ;;  %p7396_p1 = scmp.lt.s32.totalorder %s7394_s10, %s7387_s6 }
  0x31   : > { %p7391_p7 = pneg %p7390_p10  ;;  %p7397_p4 = por %p7396_p1, %p7395_p13 }
  0x33   : > { %p7398_p5 = pnand %p7397_p4, %p7391_p7 }
  0x35   : > { %7401 = shalt.err (!%p7398_p5)
}
  0x36   : > { %7125 = dma.hbm_to_vmem [thread:$0]  (!%p7541_p11), %s7548_s14, 3456, %s7550_s22, %s7552_s23, %s7443_s29, %s7443_s29, %s7444_s30  }
  0x37   : > { %p8969_p12 = scmp.ne.s32.totalorder %s8966_s21, 0 }
  0x38   : > { %s195_s12 = sand.u32 (!%p8969_p12), 1, %s7432_s16   ;;  %p8970_p1 = scmp.ne.s32.totalorder (!%p8969_p12), %s8965_s20, 0 }
  0x39   : > { %193 = sbr.rel (%p8969_p12) target bundleno = 1284 (0x504), region = 36  ;;  %s196_s15 = scalar_lea.sflag (!%p8969_p12), [#allocation4], %s195_s12 }
  0x3a   : > { %s7110_s13 = smul.u32 (!%p8969_p12), 216, %s195_s12 }
  0x3c   : > { %s7579_s18 = scalar_lea.vmem (!%p8969_p12), [#allocation3], %s7110_s13 }
  0x3e   : > { %7419 = dma.done.wait (%p8970_p1), %s196_s15, 3456  }
  0x3f   : > { %7421 = vsyncadd (%p8970_p1), %s196_s15, 4294963840  ;;  %p8971_p4 = scmp.eq.s32.totalorder %s7492_s19, 0 }
  0x41   : > { %7423 = dma.done.wait (%p8971_p4), [#allocation6], 9216   ;;  %p8972_p5 = pmov %p8971_p4 }
  0x42   : > { %v7446_v0 = vmov 0.0   ;;  %vm7447_vm0 = vmmov 0   ;;  %v7166_v1 = vld [vmem:[#allocation5 + $0x138] sm:$0xff]   ;;  %v7167_v2 = vld [vmem:[#allocation5 + $0x130] sm:$0xff]   ;;  %v7168_v3 = vld [vmem:[#allocation5 + $0x128] sm:$0xff]   ;;  %vm3111_vm1 = vcmask 1046528  }
  0x43   : > { %7425 = vsyncadd (%p8972_p5), [#allocation6], 4294958080  ;;  %5976 = vmatprep.subr.bf16.mxu0 %v7446_v0  ;;  %7092 = vmatprep.subr.bf16.mxu1 %v7446_v0  ;;  %v7169_v4 = vld [vmem:[#allocation5 + $0x120] sm:$0xff]   ;;  %v7170_v5 = vld [vmem:[#allocation5 + $0x118] sm:$0xff]   ;;  %vm3797_vm2 = vcmask 1040384   ;;  %p228_p11 = scmp.lt.s32.totalorder %s7492_s19, 1 }
  0x44   : > { %5992 = vmatprep.mubr.msk.bf16.mxu0 %vm7447_vm0, %v7446_v0  ;;  %6048 = vmatprep.mubr.msk.bf16.mxu1 %vm7447_vm0, %v7446_v0  ;;  %v7171_v6 = vld [vmem:[#allocation5 + $0x110] sm:$0xff]   ;;  %v7172_v7 = vld [vmem:[#allocation5 + $0x108] sm:$0xff]   ;;  %v7173_v8 = vld [vmem:[#allocation5 + $0x100] sm:$0xff]   ;;  %vm5418_vm3 = vcmask 31744  }
  0x45   : > { %5977 = vmatpush3.bf16.msra.mxu0 %v7166_v1  ;;  %7100 = vmatpush3.bf16.msra.mxu1 %v7166_v1  ;;  %v7610_v9 = vld [vmem:[%s7579_s18] sm:$0xff]   ;;  %v7613_v10 = vld [vmem:[%s7579_s18 + $0x70] sm:$0xff]   ;;  %v7624_v15 = vld [vmem:[%s7579_s18 + $0x8] sm:$0xff]   ;;  %s8978_s19 = smov (!%p228_p11, %s7492_s19), 1 }
  0x46   : > { %5978 = vmatprep.subr.bf16.mxu0 %v7446_v0  ;;  %7093 = vmatprep.subr.bf16.mxu1 %v7446_v0  ;;  %v7176_v11 = vld [vmem:[#allocation5 + $0x78] sm:$0xff]   ;;  %v7180_v13 = vld [vmem:[#allocation5 + $0x30] sm:$0xff]   ;;  %v7629_v16 = vld [vmem:[%s7579_s18 + $0x78] sm:$0xff]   ;;  %s7111_s29 = smul.u32 432, %s8978_s19 }
  0x47   : > { %v7177_v12 = vld [vmem:[#allocation5 + $0x38] sm:$0xff]   ;;  %v7181_v14 = vld [vmem:[#allocation5 + $0x70] sm:$0xff]   ;;  %v7186_v17 = vld [vmem:[#allocation5 + $0x28] sm:$0xff]  }
  0x48   : > { %v7187_v18 = vld [vmem:[#allocation5 + $0x68] sm:$0xff]   ;;  %v7192_v19 = vld [vmem:[#allocation5 + $0x20] sm:$0xff]   ;;  %v7196_v23 = vld [vmem:[#allocation5 + $0x18] sm:$0xff]   ;;  %s8659_s22 = scalar_lea.vmem %s8961_s4, %s7111_s29 }
  0x49   : > { %5979 = vmatpush3.bf16.msra.mxu0 %v7167_v2  ;;  %7101 = vmatpush3.bf16.msra.mxu1 %v7167_v2  ;;  %v7193_v20 = vld [vmem:[#allocation5 + $0x60] sm:$0xff]   ;;  %v7645_v22 = vld [vmem:[%s7579_s18 + $0x80] sm:$0xff]   ;;  %v7199_v24 = vld [vmem:[#allocation5 + $0x58] sm:$0xff]  }
  0x4a   : > { %5980 = vmatprep.subr.bf16.mxu0 %v7446_v0  ;;  %7094 = vmatprep.subr.bf16.mxu1 %v7446_v0  ;;  %v7640_v21 = vld [vmem:[%s7579_s18 + $0x10] sm:$0xff]   ;;  %v7202_v25 = vld [vmem:[#allocation5 + $0x10] sm:$0xff]   ;;  %v7656_v26 = vld [vmem:[%s7579_s18 + $0x18] sm:$0xff]  }
  0x4b   : > { %v7203_v27 = vld [vmem:[#allocation5 + $0x50] sm:$0xff]   ;;  %v7208_v29 = vld [vmem:[#allocation5 + $0x8] sm:$0xff]   ;;  %v7212_v31 = vld [vmem:[#allocation5] sm:$0xff]  }
  0x4c   : > { %v7659_v28 = vld [vmem:[%s7579_s18 + $0x88] sm:$0xff]   ;;  %v7209_v30 = vld [vmem:[#allocation5 + $0x48] sm:$0xff]   ;;  %v7215_v32 = vld [vmem:[#allocation5 + $0x40] sm:$0xff]  }
  0x4d   : > { %5981 = vmatpush3.bf16.msra.mxu0 %v7168_v3  ;;  %7102 = vmatpush3.bf16.msra.mxu1 %v7168_v3  ;;  %v7672_v33 = vld [vmem:[%s7579_s18 + $0x20] sm:$0xff]   ;;  %v7675_v34 = vld [vmem:[%s7579_s18 + $0x90] sm:$0xff]   ;;  %v7688_v35 = vld [vmem:[%s7579_s18 + $0x28] sm:$0xff]  }
  0x4e   : > { %5982 = vmatprep.subr.bf16.mxu0 %v7446_v0  ;;  %7095 = vmatprep.subr.bf16.mxu1 %v7446_v0  ;;  %v7691_v36 = vld [vmem:[%s7579_s18 + $0x98] sm:$0xff]   ;;  %v7700_v37 = vld [vmem:[%s7579_s18 + $0x30] sm:$0xff]   ;;  %v7703_v38 = vld [vmem:[%s7579_s18 + $0xa0] sm:$0xff]  }
  0x4f   : > { %v7712_v39 = vld [vmem:[%s7579_s18 + $0x38] sm:$0xff]   ;;  %v7715_v40 = vld [vmem:[%s7579_s18 + $0xa8] sm:$0xff]   ;;  %v7724_v41 = vld [vmem:[%s7579_s18 + $0x40] sm:$0xff]  }
  0x50   : > { %v7727_v42 = vld [vmem:[%s7579_s18 + $0xb0] sm:$0xff]   ;;  %v7736_v43 = vld [vmem:[%s7579_s18 + $0x48] sm:$0xff]   ;;  %v7739_v44 = vld [vmem:[%s7579_s18 + $0xb8] sm:$0xff]  }
  0x51   : > { %5983 = vmatpush3.bf16.msra.mxu0 %v7169_v4  ;;  %7103 = vmatpush3.bf16.msra.mxu1 %v7169_v4  ;;  %v7748_v45 = vld [vmem:[%s7579_s18 + $0x50] sm:$0xff]   ;;  %v7751_v46 = vld [vmem:[%s7579_s18 + $0xc0] sm:$0xff]   ;;  %v7760_v47 = vld [vmem:[%s7579_s18 + $0x58] sm:$0xff]  }
  0x52   : > { %5984 = vmatprep.subr.bf16.mxu0 %v7446_v0  ;;  %7096 = vmatprep.subr.bf16.mxu1 %v7446_v0  ;;  %v7763_v48 = vld [vmem:[%s7579_s18 + $0xc8] sm:$0xff]   ;;  %v7772_v49 = vld [vmem:[%s7579_s18 + $0x60] sm:$0xff]   ;;  %v7775_v50 = vld [vmem:[%s7579_s18 + $0xd0] sm:$0xff]  }
  0x53   : > { %v7784_v51 = vld [vmem:[%s7579_s18 + $0x68] sm:$0xff]   ;;  %v7221_v55 = vld [vmem:[#allocation5 + $0xa8] sm:$0xff]   ;;  %v7223_v57 = vld [vmem:[#allocation5 + $0xa0] sm:$0xff]  }
  0x54   : > { %v7217_v52 = vld [vmem:[#allocation5 + $0xb8] sm:$0xff]   ;;  %v7219_v53 = vld [vmem:[#allocation5 + $0xb0] sm:$0xff]   ;;  %v7222_v58 = vld [vmem:[#allocation5 + $0xe8] sm:$0xff]  }
  0x55   : > { %5985 = vmatpush3.bf16.msra.mxu0 %v7170_v5  ;;  %7104 = vmatpush3.bf16.msra.mxu1 %v7170_v5  ;;  %v7218_v54 = vld [vmem:[#allocation5 + $0xf8] sm:$0xff]   ;;  %v7220_v56 = vld [vmem:[#allocation5 + $0xf0] sm:$0xff]   ;;  %v7224_v60 = vld [vmem:[#allocation5 + $0xe0] sm:$0xff]  }
  0x56   : > { %5986 = vmatprep.subr.bf16.mxu0 %v7446_v0  ;;  %7097 = vmatprep.subr.bf16.mxu1 %v7446_v0  ;;  %v7225_v59 = vld [vmem:[#allocation5 + $0x98] sm:$0xff]   ;;  %v7227_v61 = vld [vmem:[#allocation5 + $0x90] sm:$0xff]   ;;  %v7229_v1 = vld [vmem:[#allocation5 + $0x88] sm:$0xff]  }
  0x57   : > { %v7226_v62 = vld [vmem:[#allocation5 + $0xd8] sm:$0xff]   ;;  %v7228_v63 = vld [vmem:[#allocation5 + $0xd0] sm:$0xff]   ;;  %v7230_v2 = vld [vmem:[#allocation5 + $0xc8] sm:$0xff]  }
  0x58   : > { %v7231_v3 = vld [vmem:[#allocation5 + $0x80] sm:$0xff]  }
  0x59   : > { %5987 = vmatpush3.bf16.msra.mxu0 %v7171_v6  ;;  %7105 = vmatpush3.bf16.msra.mxu1 %v7171_v6  ;;  %v7232_v4 = vld [vmem:[#allocation5 + $0xc0] sm:$0xff]  }
  0x5a   : > { %5988 = vmatprep.subr.bf16.mxu0 %v7446_v0  ;;  %7098 = vmatprep.subr.bf16.mxu1 %v7446_v0 }
  0x5d   : > { %5989 = vmatpush3.bf16.msra.mxu0 %v7172_v7  ;;  %7106 = vmatpush3.bf16.msra.mxu1 %v7172_v7 }
  0x5e   : > { %5990 = vmatprep.subr.bf16.mxu0 %v7446_v0  ;;  %7099 = vmatprep.subr.bf16.mxu1 %v7446_v0 }
  0x61   : > { %5991 = vmatpush3.bf16.msra.mxu0 %v7173_v8  ;;  %7107 = vmatpush3.bf16.msra.mxu1 %v7173_v8 }
  0x62   : > { %6224 = vmatprep.subr.bf16.mxu0 %v7446_v0  ;;  %6100 = vmatprep.subr.bf16.mxu1 %v7446_v0 }
  0x64   : > { %5993 = vmatmul.mubr.bf16.vlgmr.msra.gmra.mxu0 %v7610_v9  ;;  %6049 = vmatmul.mubr.bf16.vlgmr.msra.gmra.mxu1 %v7613_v10 }
  0x65   : > { %6225 = vmatpush3.bf16.msra.mxu0 %v7176_v11  ;;  %6101 = vmatpush3.bf16.msra.mxu1 %v7177_v12 }
  0x66   : > { %5996 = vmatprep.mubr.msk.bf16.mxu0 %vm7447_vm0, %v7446_v0  ;;  %6052 = vmatprep.mubr.msk.bf16.mxu1 %vm7447_vm0, %v7446_v0 }
  0x67   : > { %6102 = vmatprep.subr.bf16.mxu1 %v7446_v0  ;;  %6226 = vmatprep.subr.bf16.mxu0 %v7446_v0 }
  0x69   : > { %6103 = vmatpush3.bf16.msra.mxu1 %v7180_v13  ;;  %6227 = vmatpush3.bf16.msra.mxu0 %v7181_v14 }
  0x6a   : > { %6104 = vmatprep.subr.bf16.mxu1 %v7446_v0  ;;  %6228 = vmatprep.subr.bf16.mxu0 %v7446_v0 }
  0x6c   : > { %5997 = vmatmul.mubr.bf16.gmra.mxu0 %v7624_v15  ;;  %6053 = vmatmul.mubr.bf16.gmra.mxu1 %v7629_v16 }
  0x6d   : > { %6000 = vmatprep.mubr.msk.bf16.mxu0 %vm7447_vm0, %v7446_v0  ;;  %6056 = vmatprep.mubr.msk.bf16.mxu1 %vm7447_vm0, %v7446_v0 }
  0x6e   : > { %6105 = vmatpush3.bf16.msra.mxu1 %v7186_v17  ;;  %6229 = vmatpush3.bf16.msra.mxu0 %v7187_v18 }
  0x6f   : > { %6106 = vmatprep.subr.bf16.mxu1 %v7446_v0  ;;  %6230 = vmatprep.subr.bf16.mxu0 %v7446_v0 }
  0x72   : > { %6107 = vmatpush3.bf16.msra.mxu1 %v7192_v19  ;;  %6231 = vmatpush3.bf16.msra.mxu0 %v7193_v20 }
  0x73   : > { %6108 = vmatprep.subr.bf16.mxu1 %v7446_v0  ;;  %6232 = vmatprep.subr.bf16.mxu0 %v7446_v0 }
  0x74   : > { %6001 = vmatmul.mubr.bf16.gmra.mxu0 %v7640_v21  ;;  %6057 = vmatmul.mubr.bf16.gmra.mxu1 %v7645_v22 }
  0x75   : > { %6004 = vmatprep.mubr.msk.bf16.mxu0 %vm7447_vm0, %v7446_v0  ;;  %6060 = vmatprep.mubr.msk.bf16.mxu1 %vm7447_vm0, %v7446_v0 }
  0x76   : > { %6109 = vmatpush3.bf16.msra.mxu1 %v7196_v23  ;;  %6233 = vmatpush3.bf16.msra.mxu0 %v7199_v24 }
  0x77   : > { %6110 = vmatprep.subr.bf16.mxu1 %v7446_v0  ;;  %6234 = vmatprep.subr.bf16.mxu0 %v7446_v0 }
  0x7a   : > { %6111 = vmatpush3.bf16.msra.mxu1 %v7202_v25  ;;  %6235 = vmatpush3.bf16.msra.mxu0 %v7203_v27 }
  0x7b   : > { %6112 = vmatprep.subr.bf16.mxu1 %v7446_v0  ;;  %6236 = vmatprep.subr.bf16.mxu0 %v7446_v0 }
  0x7c   : > { %6005 = vmatmul.mubr.bf16.gmra.mxu0 %v7656_v26  ;;  %6061 = vmatmul.mubr.bf16.gmra.mxu1 %v7659_v28 }
  0x7d   : > { %6008 = vmatprep.mubr.msk.bf16.mxu0 %vm7447_vm0, %v7446_v0  ;;  %6064 = vmatprep.mubr.msk.bf16.mxu1 %vm7447_vm0, %v7446_v0 }
  0x7e   : > { %6113 = vmatpush3.bf16.msra.mxu1 %v7208_v29  ;;  %6237 = vmatpush3.bf16.msra.mxu0 %v7209_v30 }
  0x7f   : > { %6114 = vmatprep.subr.bf16.mxu1 %v7446_v0  ;;  %6238 = vmatprep.subr.bf16.mxu0 %v7446_v0 }
  0x82   : > { %6115 = vmatpush3.bf16.msra.mxu1 %v7212_v31  ;;  %6239 = vmatpush3.bf16.msra.mxu0 %v7215_v32 }
  0x83   : > { %6348 = vmatprep.subr.bf16.mxu1 %v7446_v0  ;;  %6472 = vmatprep.subr.bf16.mxu0 %v7446_v0 }
  0x84   : > { %6009 = vmatmul.mubr.bf16.gmra.mxu0 %v7672_v33  ;;  %6065 = vmatmul.mubr.bf16.gmra.mxu1 %v7675_v34 }
  0x85   : > { %6012 = vmatprep.mubr.msk.bf16.mxu0 %vm7447_vm0, %v7446_v0  ;;  %6068 = vmatprep.mubr.msk.bf16.mxu1 %vm7447_vm0, %v7446_v0 }
  0x8c   : > { %6013 = vmatmul.mubr.bf16.gmra.mxu0 %v7688_v35  ;;  %6069 = vmatmul.mubr.bf16.gmra.mxu1 %v7691_v36 }
  0x8d   : > { %6016 = vmatprep.mubr.msk.bf16.mxu0 %vm7447_vm0, %v7446_v0  ;;  %6072 = vmatprep.mubr.msk.bf16.mxu1 %vm7447_vm0, %v7446_v0 }
  0x94   : > { %6017 = vmatmul.mubr.bf16.gmra.mxu0 %v7700_v37  ;;  %6073 = vmatmul.mubr.bf16.gmra.mxu1 %v7703_v38 }
  0x95   : > { %6020 = vmatprep.mubr.msk.bf16.mxu0 %vm7447_vm0, %v7446_v0  ;;  %6076 = vmatprep.mubr.msk.bf16.mxu1 %vm7447_vm0, %v7446_v0 }
  0x9c   : > { %6021 = vmatmul.mubr.bf16.gmra.mxu0 %v7712_v39  ;;  %6077 = vmatmul.mubr.bf16.gmra.mxu1 %v7715_v40 }
  0x9d   : > { %6024 = vmatprep.mubr.msk.bf16.mxu0 %vm7447_vm0, %v7446_v0  ;;  %6080 = vmatprep.mubr.msk.bf16.mxu1 %vm7447_vm0, %v7446_v0 }
  0xa4   : > { %6025 = vmatmul.mubr.bf16.gmra.mxu0 %v7724_v41  ;;  %6081 = vmatmul.mubr.bf16.gmra.mxu1 %v7727_v42 }
  0xa5   : > { %6028 = vmatprep.mubr.msk.bf16.mxu0 %vm7447_vm0, %v7446_v0  ;;  %6084 = vmatprep.mubr.msk.bf16.mxu1 %vm7447_vm0, %v7446_v0 }
  0xac   : > { %6029 = vmatmul.mubr.bf16.gmra.mxu0 %v7736_v43  ;;  %6085 = vmatmul.mubr.bf16.gmra.mxu1 %v7739_v44 }
  0xad   : > { %6032 = vmatprep.mubr.msk.bf16.mxu0 %vm7447_vm0, %v7446_v0  ;;  %6088 = vmatprep.mubr.msk.bf16.mxu1 %vm7447_vm0, %v7446_v0 }
  0xb4   : > { %6033 = vmatmul.mubr.bf16.gmra.mxu0 %v7748_v45  ;;  %6089 = vmatmul.mubr.bf16.gmra.mxu1 %v7751_v46 }
  0xb5   : > { %6036 = vmatprep.mubr.msk.bf16.mxu0 %vm7447_vm0, %v7446_v0  ;;  %6092 = vmatprep.mubr.msk.bf16.mxu1 %vm7447_vm0, %v7446_v0 }
  0xbc   : > { %6037 = vmatmul.mubr.bf16.gmra.mxu0 %v7760_v47  ;;  %6093 = vmatmul.mubr.bf16.gmra.mxu1 %v7763_v48 }
  0xbd   : > { %6040 = vmatprep.mubr.msk.bf16.mxu0 %vm7447_vm0, %v7446_v0  ;;  %6096 = vmatprep.mubr.msk.bf16.mxu1 %vm7447_vm0, %v7446_v0 }
  0xc4   : > { %6041 = vmatmul.mubr.bf16.gmra.mxu0 %v7772_v49  ;;  %6097 = vmatmul.mubr.bf16.gmra.mxu1 %v7775_v50 }
  0xc5   : > { %6044 = vmatprep.mubr.msk.bf16.mxu0 %vm7447_vm0, %v7446_v0  ;;  %6116 = vmatprep.mubr.msk.bf16.mxu1 %vm7447_vm0, %v7446_v0 }
  0xcc   : > { %6045 = vmatmul.mubr.bf16.gmra.mxu0 %v7784_v51  ;;  %6117 = vmatmul.mubr.bf16.vlgmr.msra.gmra.mxu1 %v7610_v9 }
  0xcd   : > { %6349 = vmatpush3.bf16.msra.mxu1 %v7217_v52  ;;  %6120 = vmatprep.mubr.msk.bf16.mxu1 %vm7447_vm0, %v7446_v0 }
  0xce   : > { %6240 = vmatprep.mubr.msk.bf16.mxu0 %vm7447_vm0, %v7446_v0  ;;  %6350 = vmatprep.subr.bf16.mxu1 %v7446_v0 }
  0xd1   : > { %6351 = vmatpush3.bf16.msra.mxu1 %v7219_v53 }
  0xd2   : > { %6352 = vmatprep.subr.bf16.mxu1 %v7446_v0 }
  0xd4   : > { %6121 = vmatmul.mubr.bf16.gmra.mxu1 %v7624_v15  ;;  %6241 = vmatmul.mubr.bf16.vlgmr.msra.gmra.mxu0 %v7610_v9 }
  0xd5   : > { %6473 = vmatpush3.bf16.msra.mxu0 %v7218_v54  ;;  %6124 = vmatprep.mubr.msk.bf16.mxu1 %vm7447_vm0, %v7446_v0 }
  0xd6   : > { %6244 = vmatprep.mubr.msk.bf16.mxu0 %vm7447_vm0, %v7446_v0  ;;  %6474 = vmatprep.subr.bf16.mxu0 %v7446_v0 }
  0xd7   : > { %6353 = vmatpush3.bf16.msra.mxu1 %v7221_v55 }
  0xd8   : > { %6354 = vmatprep.subr.bf16.mxu1 %v7446_v0 }
  0xd9   : > { %6475 = vmatpush3.bf16.msra.mxu0 %v7220_v56 }
  0xda   : > { %6476 = vmatprep.subr.bf16.mxu0 %v7446_v0 }
  0xdb   : > { %6355 = vmatpush3.bf16.msra.mxu1 %v7223_v57 }
  0xdc   : > { %6125 = vmatmul.mubr.bf16.gmra.mxu1 %v7640_v21  ;;  %6245 = vmatmul.mubr.bf16.gmra.mxu0 %v7624_v15 }
  0xdd   : > { %6128 = vmatprep.mubr.msk.bf16.mxu1 %vm7447_vm0, %v7446_v0  ;;  %6248 = vmatprep.mubr.msk.bf16.mxu0 %vm7447_vm0, %v7446_v0 }
  0xde   : > { %6477 = vmatpush3.bf16.msra.mxu0 %v7222_v58  ;;  %6356 = vmatprep.subr.bf16.mxu1 %v7446_v0 }
  0xdf   : > { %6478 = vmatprep.subr.bf16.mxu0 %v7446_v0  ;;  %6357 = vmatpush3.bf16.msra.mxu1 %v7225_v59 }
  0xe0   : > { %6358 = vmatprep.subr.bf16.mxu1 %v7446_v0 }
  0xe2   : > { %6479 = vmatpush3.bf16.msra.mxu0 %v7224_v60 }
  0xe3   : > { %6480 = vmatprep.subr.bf16.mxu0 %v7446_v0  ;;  %6359 = vmatpush3.bf16.msra.mxu1 %v7227_v61 }
  0xe4   : > { %6129 = vmatmul.mubr.bf16.gmra.mxu1 %v7656_v26  ;;  %6249 = vmatmul.mubr.bf16.gmra.mxu0 %v7640_v21 }
  0xe5   : > { %6132 = vmatprep.mubr.msk.bf16.mxu1 %vm7447_vm0, %v7446_v0  ;;  %6252 = vmatprep.mubr.msk.bf16.mxu0 %vm7447_vm0, %v7446_v0 }
  0xe6   : > { %6481 = vmatpush3.bf16.msra.mxu0 %v7226_v62  ;;  %6360 = vmatprep.subr.bf16.mxu1 %v7446_v0 }
  0xe7   : > { %6482 = vmatprep.subr.bf16.mxu0 %v7446_v0  ;;  %6361 = vmatpush3.bf16.msra.mxu1 %v7229_v1 }
  0xe8   : > { %6362 = vmatprep.subr.bf16.mxu1 %v7446_v0 }
  0xea   : > { %6483 = vmatpush3.bf16.msra.mxu0 %v7228_v63 }
  0xeb   : > { %6484 = vmatprep.subr.bf16.mxu0 %v7446_v0  ;;  %6363 = vmatpush3.bf16.msra.mxu1 %v7231_v3 }
  0xec   : > { %6133 = vmatmul.mubr.bf16.gmra.mxu1 %v7672_v33  ;;  %6253 = vmatmul.mubr.bf16.gmra.mxu0 %v7656_v26 }
  0xed   : > { %6136 = vmatprep.mubr.msk.bf16.mxu1 %vm7447_vm0, %v7446_v0  ;;  %6256 = vmatprep.mubr.msk.bf16.mxu0 %vm7447_vm0, %v7446_v0 }
  0xee   : > { %6485 = vmatpush3.bf16.msra.mxu0 %v7230_v2  ;;  %6596 = vmatprep.subr.bf16.mxu1 %v7446_v0 }
  0xef   : > { %6486 = vmatprep.subr.bf16.mxu0 %v7446_v0 }
  0xf2   : > { %6487 = vmatpush3.bf16.msra.mxu0 %v7232_v4 }
  0xf3   : > { %6720 = vmatprep.subr.bf16.mxu0 %v7446_v0 }
  0xf4   : > { %6137 = vmatmul.mubr.bf16.gmra.mxu1 %v7688_v35  ;;  %6257 = vmatmul.mubr.bf16.gmra.mxu0 %v7672_v33 }
  0xf5   : > { %6140 = vmatprep.mubr.msk.bf16.mxu1 %vm7447_vm0, %v7446_v0  ;;  %6260 = vmatprep.mubr.msk.bf16.mxu0 %vm7447_vm0, %v7446_v0 }
  0xfc   : > { %6141 = vmatmul.mubr.bf16.gmra.mxu1 %v7700_v37  ;;  %6261 = vmatmul.mubr.bf16.gmra.mxu0 %v7688_v35 }
  0xfd   : > { %6144 = vmatprep.mubr.msk.bf16.mxu1 %vm7447_vm0, %v7446_v0  ;;  %6264 = vmatprep.mubr.msk.bf16.mxu0 %vm7447_vm0, %v7446_v0 }
 0x104   : > { %6145 = vmatmul.mubr.bf16.gmra.mxu1 %v7712_v39  ;;  %6265 = vmatmul.mubr.bf16.gmra.mxu0 %v7700_v37 }
 0x105   : > { %6148 = vmatprep.mubr.msk.bf16.mxu1 %vm7447_vm0, %v7446_v0  ;;  %6268 = vmatprep.mubr.msk.bf16.mxu0 %vm7447_vm0, %v7446_v0 }
 0x10c   : > { %6149 = vmatmul.mubr.bf16.gmra.mxu1 %v7724_v41  ;;  %6269 = vmatmul.mubr.bf16.gmra.mxu0 %v7712_v39 }
 0x10d   : > { %6152 = vmatprep.mubr.msk.bf16.mxu1 %vm7447_vm0, %v7446_v0  ;;  %6272 = vmatprep.mubr.msk.bf16.mxu0 %vm7447_vm0, %v7446_v0 }
 0x114   : > { %6153 = vmatmul.mubr.bf16.gmra.mxu1 %v7736_v43  ;;  %6273 = vmatmul.mubr.bf16.gmra.mxu0 %v7724_v41 }
 0x115   : > { %6156 = vmatprep.mubr.msk.bf16.mxu1 %vm7447_vm0, %v7446_v0  ;;  %6276 = vmatprep.mubr.msk.bf16.mxu0 %vm7447_vm0, %v7446_v0 }
 0x11c   : > { %6157 = vmatmul.mubr.bf16.gmra.mxu1 %v7748_v45  ;;  %6277 = vmatmul.mubr.bf16.gmra.mxu0 %v7736_v43 }
 0x11d   : > { %6160 = vmatprep.mubr.msk.bf16.mxu1 %vm7447_vm0, %v7446_v0  ;;  %6280 = vmatprep.mubr.msk.bf16.mxu0 %vm7447_vm0, %v7446_v0 }
 0x124   : > { %v549_v5 = vpop.f32.mrf.mxu0  ;;  %v661_v6 = vpop.f32.mrf.mxu1  ;;  %6161 = vmatmul.mubr.bf16.gmra.mxu1 %v7760_v47  ;;  %6281 = vmatmul.mubr.bf16.gmra.mxu0 %v7748_v45 }
 0x125   : > { %764 = vst [vmem:[#allocation2] sm:$0xff] %v549_v5  ;;  %792 = vst [vmem:[#allocation2 + $0xe0] sm:$0xff] %v661_v6  ;;  %6164 = vmatprep.mubr.msk.bf16.mxu1 %vm7447_vm0, %v7446_v0  ;;  %6284 = vmatprep.mubr.msk.bf16.mxu0 %vm7447_vm0, %v7446_v0 }
 0x126   : > { %v5994_v7 = vpop.f32.mrf.mxu0  ;;  %v6050_v8 = vpop.f32.mrf.mxu1 }
 0x128   : > { %v552_v9 = vpop.f32.mrf.mxu0  ;;  %v664_v11 = vpop.f32.mrf.mxu1 }
 0x129   : > { %765 = vst [vmem:[#allocation2 + $0x8] sm:$0xff] %v552_v9  ;;  %793 = vst [vmem:[#allocation2 + $0xe8] sm:$0xff] %v664_v11 }
 0x12a   : > { %v5995_v12 = vpop.f32.mrf.mxu0  ;;  %v6051_v13 = vpop.f32.mrf.mxu1 }
 0x12c   : > { %v557_v14 = vpop.f32.mrf.mxu0  ;;  %v669_v15 = vpop.f32.mrf.mxu1  ;;  %6165 = vmatmul.mubr.bf16.gmra.mxu1 %v7772_v49  ;;  %6285 = vmatmul.mubr.bf16.gmra.mxu0 %v7760_v47 }
 0x12d   : > { %766 = vst [vmem:[#allocation2 + $0x10] sm:$0xff] %v557_v14  ;;  %794 = vst [vmem:[#allocation2 + $0xf0] sm:$0xff] %v669_v15  ;;  %6168 = vmatprep.mubr.msk.bf16.mxu1 %vm7447_vm0, %v7446_v0  ;;  %6288 = vmatprep.mubr.msk.bf16.mxu0 %vm7447_vm0, %v7446_v0 }
 0x12e   : > { %v5998_v17 = vpop.f32.mrf.mxu0  ;;  %v6054_v18 = vpop.f32.mrf.mxu1 }
 0x130   : > { %v560_v19 = vpop.f32.mrf.mxu0  ;;  %v672_v20 = vpop.f32.mrf.mxu1 }
 0x131   : > { %767 = vst [vmem:[#allocation2 + $0x18] sm:$0xff] %v560_v19  ;;  %795 = vst [vmem:[#allocation2 + $0xf8] sm:$0xff] %v672_v20 }
 0x132   : > { %v5999_v21 = vpop.f32.mrf.mxu0  ;;  %v6055_v23 = vpop.f32.mrf.mxu1 }
 0x134   : > { %v565_v24 = vpop.f32.mrf.mxu0  ;;  %v677_v25 = vpop.f32.mrf.mxu1  ;;  %6169 = vmatmul.mubr.bf16.gmra.mxu1 %v7784_v51  ;;  %6289 = vmatmul.mubr.bf16.gmra.mxu0 %v7772_v49 }
 0x135   : > { %768 = vst [vmem:[#allocation2 + $0x20] sm:$0xff] %v565_v24  ;;  %796 = vst [vmem:[#allocation2 + $0x100] sm:$0xff] %v677_v25  ;;  %6172 = vmatprep.mubr.msk.bf16.mxu1 %vm7447_vm0, %v7446_v0  ;;  %6292 = vmatprep.mubr.msk.bf16.mxu0 %vm7447_vm0, %v7446_v0 }
 0x136   : > { %v6002_v26 = vpop.f32.mrf.mxu0  ;;  %v6058_v27 = vpop.f32.mrf.mxu1 }
 0x138   : > { %v568_v29 = vpop.f32.mrf.mxu0  ;;  %v680_v30 = vpop.f32.mrf.mxu1 }
 0x139   : > { %769 = vst [vmem:[#allocation2 + $0x28] sm:$0xff] %v568_v29  ;;  %797 = vst [vmem:[#allocation2 + $0x108] sm:$0xff] %v680_v30 }
 0x13a   : > { %v6003_v31 = vpop.f32.mrf.mxu0  ;;  %v6059_v32 = vpop.f32.mrf.mxu1 }
 0x13c   : > { %v573_v33 = vpop.f32.mrf.mxu0  ;;  %v685_v35 = vpop.f32.mrf.mxu1  ;;  %6173 = vmatmul.mubr.bf16.gmra.mxu1 %v7613_v10  ;;  %6293 = vmatmul.mubr.bf16.gmra.mxu0 %v7784_v51 }
 0x13d   : > { %770 = vst [vmem:[#allocation2 + $0x30] sm:$0xff] %v573_v33  ;;  %798 = vst [vmem:[#allocation2 + $0x110] sm:$0xff] %v685_v35  ;;  %6176 = vmatprep.mubr.msk.bf16.mxu1 %vm7447_vm0, %v7446_v0  ;;  %6296 = vmatprep.mubr.msk.bf16.mxu0 %vm7447_vm0, %v7446_v0 }
 0x13e   : > { %v6006_v37 = vpop.f32.mrf.mxu0  ;;  %v6062_v39 = vpop.f32.mrf.mxu1 }
 0x140   : > { %v576_v41 = vpop.f32.mrf.mxu0  ;;  %v688_v43 = vpop.f32.mrf.mxu1 }
 0x141   : > { %771 = vst [vmem:[#allocation2 + $0x38] sm:$0xff] %v576_v41  ;;  %799 = vst [vmem:[#allocation2 + $0x118] sm:$0xff] %v688_v43 }
 0x142   : > { %v6007_v45 = vpop.f32.mrf.mxu0  ;;  %v6063_v47 = vpop.f32.mrf.mxu1 }
 0x144   : > { %v581_v49 = vpop.f32.mrf.mxu0  ;;  %v693_v52 = vpop.f32.mrf.mxu1  ;;  %6177 = vmatmul.mubr.bf16.gmra.mxu1 %v7629_v16  ;;  %6297 = vmatmul.mubr.bf16.gmra.mxu0 %v7613_v10 }
 0x145   : > { %772 = vst [vmem:[#allocation2 + $0x40] sm:$0xff] %v581_v49  ;;  %800 = vst [vmem:[#allocation2 + $0x120] sm:$0xff] %v693_v52  ;;  %6180 = vmatprep.mubr.msk.bf16.mxu1 %vm7447_vm0, %v7446_v0  ;;  %6300 = vmatprep.mubr.msk.bf16.mxu0 %vm7447_vm0, %v7446_v0 }
 0x146   : > { %v6010_v51 = vpop.f32.mrf.mxu0  ;;  %v6066_v53 = vpop.f32.mrf.mxu1 }
 0x148   : > { %v584_v54 = vpop.f32.mrf.mxu0  ;;  %v696_v55 = vpop.f32.mrf.mxu1 }
 0x149   : > { %773 = vst [vmem:[#allocation2 + $0x48] sm:$0xff] %v584_v54  ;;  %801 = vst [vmem:[#allocation2 + $0x128] sm:$0xff] %v696_v55 }
 0x14a   : > { %v6011_v56 = vpop.f32.mrf.mxu0  ;;  %v6067_v57 = vpop.f32.mrf.mxu1 }
 0x14c   : > { %v589_v58 = vpop.f32.mrf.mxu0  ;;  %v701_v59 = vpop.f32.mrf.mxu1  ;;  %6181 = vmatmul.mubr.bf16.gmra.mxu1 %v7645_v22  ;;  %6301 = vmatmul.mubr.bf16.gmra.mxu0 %v7629_v16 }
 0x14d   : > { %774 = vst [vmem:[#allocation2 + $0x50] sm:$0xff] %v589_v58  ;;  %802 = vst [vmem:[#allocation2 + $0x130] sm:$0xff] %v701_v59  ;;  %6184 = vmatprep.mubr.msk.bf16.mxu1 %vm7447_vm0, %v7446_v0  ;;  %6304 = vmatprep.mubr.msk.bf16.mxu0 %vm7447_vm0, %v7446_v0 }
 0x14e   : > { %v6014_v10 = vpop.f32.mrf.mxu0  ;;  %v6070_v60 = vpop.f32.mrf.mxu1 }
 0x150   : > { %v592_v61 = vpop.f32.mrf.mxu0  ;;  %v704_v62 = vpop.f32.mrf.mxu1 }
 0x151   : > { %775 = vst [vmem:[#allocation2 + $0x58] sm:$0xff] %v592_v61  ;;  %803 = vst [vmem:[#allocation2 + $0x138] sm:$0xff] %v704_v62 }
 0x152   : > { %v6015_v63 = vpop.f32.mrf.mxu0  ;;  %v6071_v1 = vpop.f32.mrf.mxu1 }
 0x154   : > { %v597_v2 = vpop.f32.mrf.mxu0  ;;  %v709_v3 = vpop.f32.mrf.mxu1  ;;  %6185 = vmatmul.mubr.bf16.gmra.mxu1 %v7659_v28  ;;  %6305 = vmatmul.mubr.bf16.gmra.mxu0 %v7645_v22 }
 0x155   : > { %776 = vst [vmem:[#allocation2 + $0x60] sm:$0xff] %v597_v2  ;;  %804 = vst [vmem:[#allocation2 + $0x140] sm:$0xff] %v709_v3  ;;  %6188 = vmatprep.mubr.msk.bf16.mxu1 %vm7447_vm0, %v7446_v0  ;;  %6308 = vmatprep.mubr.msk.bf16.mxu0 %vm7447_vm0, %v7446_v0  ;;  %v1128_v2 = vld [vmem:[#allocation2 + $0x19] sm:$0xff] }
 0x156   : > { %v6018_v16 = vpop.f32.mrf.mxu0  ;;  %v6074_v4 = vpop.f32.mrf.mxu1 }
 0x158   : > { %v600_v5 = vpop.f32.mrf.mxu0  ;;  %v712_v6 = vpop.f32.mrf.mxu1 }
 0x159   : > { %777 = vst [vmem:[#allocation2 + $0x68] sm:$0xff] %v600_v5  ;;  %805 = vst [vmem:[#allocation2 + $0x148] sm:$0xff] %v712_v6  ;;  %v1129_v6 = vld [vmem:[#allocation2 + $0x21] sm:$0xff] }
 0x15a   : > { %v6019_v7 = vpop.f32.mrf.mxu0  ;;  %v6075_v8 = vpop.f32.mrf.mxu1 }
 0x15c   : > { %v605_v9 = vpop.f32.mrf.mxu0  ;;  %v717_v11 = vpop.f32.mrf.mxu1  ;;  %6189 = vmatmul.mubr.bf16.gmra.mxu1 %v7675_v34  ;;  %6309 = vmatmul.mubr.bf16.gmra.mxu0 %v7659_v28 }
 0x15d   : > { %778 = vst [vmem:[#allocation2 + $0x70] sm:$0xff] %v605_v9  ;;  %806 = vst [vmem:[#allocation2 + $0x150] sm:$0xff] %v717_v11  ;;  %6192 = vmatprep.mubr.msk.bf16.mxu1 %vm7447_vm0, %v7446_v0  ;;  %6312 = vmatprep.mubr.msk.bf16.mxu0 %vm7447_vm0, %v7446_v0  ;;  %v1130_v11 = vld [vmem:[#allocation2 + $0x29] sm:$0xff] }
 0x15e   : > { %v6022_v22 = vpop.f32.mrf.mxu0  ;;  %v6078_v12 = vpop.f32.mrf.mxu1 }
 0x160   : > { %v608_v13 = vpop.f32.mrf.mxu0  ;;  %v720_v14 = vpop.f32.mrf.mxu1 }
 0x161   : > { %779 = vst [vmem:[#allocation2 + $0x78] sm:$0xff] %v608_v13  ;;  %807 = vst [vmem:[#allocation2 + $0x158] sm:$0xff] %v720_v14 }
 0x162   : > { %v6023_v15 = vpop.f32.mrf.mxu0  ;;  %v6079_v17 = vpop.f32.mrf.mxu1 }
 0x164   : > { %v613_v18 = vpop.f32.mrf.mxu0  ;;  %v725_v19 = vpop.f32.mrf.mxu1  ;;  %6193 = vmatmul.mubr.bf16.gmra.mxu1 %v7691_v36  ;;  %6313 = vmatmul.mubr.bf16.gmra.mxu0 %v7675_v34 }
 0x165   : > { %780 = vst [vmem:[#allocation2 + $0x80] sm:$0xff] %v613_v18  ;;  %808 = vst [vmem:[#allocation2 + $0x160] sm:$0xff] %v725_v19  ;;  %6196 = vmatprep.mubr.msk.bf16.mxu1 %vm7447_vm0, %v7446_v0  ;;  %6316 = vmatprep.mubr.msk.bf16.mxu0 %vm7447_vm0, %v7446_v0  ;;  %v1131_v19 = vld [vmem:[#allocation2 + $0x31] sm:$0xff] }
 0x166   : > { %v6026_v28 = vpop.f32.mrf.mxu0  ;;  %v6082_v20 = vpop.f32.mrf.mxu1 }
 0x168   : > { %v616_v21 = vpop.f32.mrf.mxu0  ;;  %v728_v23 = vpop.f32.mrf.mxu1 }
 0x169   : > { %781 = vst [vmem:[#allocation2 + $0x88] sm:$0xff] %v616_v21  ;;  %809 = vst [vmem:[#allocation2 + $0x168] sm:$0xff] %v728_v23 }
 0x16a   : > { %v6027_v24 = vpop.f32.mrf.mxu0  ;;  %v6083_v25 = vpop.f32.mrf.mxu1 }
 0x16c   : > { %v621_v26 = vpop.f32.mrf.mxu0  ;;  %v733_v27 = vpop.f32.mrf.mxu1  ;;  %6197 = vmatmul.mubr.bf16.gmra.mxu1 %v7703_v38  ;;  %6317 = vmatmul.mubr.bf16.gmra.mxu0 %v7691_v36 }
 0x16d   : > { %782 = vst [vmem:[#allocation2 + $0x90] sm:$0xff] %v621_v26  ;;  %810 = vst [vmem:[#allocation2 + $0x170] sm:$0xff] %v733_v27  ;;  %6200 = vmatprep.mubr.msk.bf16.mxu1 %vm7447_vm0, %v7446_v0  ;;  %6320 = vmatprep.mubr.msk.bf16.mxu0 %vm7447_vm0, %v7446_v0  ;;  %v1132_v26 = vld [vmem:[#allocation2 + $0x39] sm:$0xff] }
 0x16e   : > { %v6030_v34 = vpop.f32.mrf.mxu0  ;;  %v6086_v29 = vpop.f32.mrf.mxu1 }
 0x170   : > { %v624_v30 = vpop.f32.mrf.mxu0  ;;  %v736_v31 = vpop.f32.mrf.mxu1 }
 0x171   : > { %783 = vst [vmem:[#allocation2 + $0x98] sm:$0xff] %v624_v30  ;;  %811 = vst [vmem:[#allocation2 + $0x178] sm:$0xff] %v736_v31 }
 0x172   : > { %v6031_v32 = vpop.f32.mrf.mxu0  ;;  %v6087_v33 = vpop.f32.mrf.mxu1 }
 0x174   : > { %v629_v35 = vpop.f32.mrf.mxu0  ;;  %v741_v37 = vpop.f32.mrf.mxu1  ;;  %6201 = vmatmul.mubr.bf16.gmra.mxu1 %v7715_v40  ;;  %6321 = vmatmul.mubr.bf16.gmra.mxu0 %v7703_v38 }
 0x175   : > { %784 = vst [vmem:[#allocation2 + $0xa0] sm:$0xff] %v629_v35  ;;  %812 = vst [vmem:[#allocation2 + $0x180] sm:$0xff] %v741_v37  ;;  %6204 = vmatprep.mubr.msk.bf16.mxu1 %vm7447_vm0, %v7446_v0  ;;  %6324 = vmatprep.mubr.msk.bf16.mxu0 %vm7447_vm0, %v7446_v0  ;;  %v1133_v35 = vld [vmem:[#allocation2 + $0x41] sm:$0xff] }
 0x176   : > { %v6034_v36 = vpop.f32.mrf.mxu0  ;;  %v6090_v39 = vpop.f32.mrf.mxu1 }
 0x178   : > { %v632_v41 = vpop.f32.mrf.mxu0  ;;  %v744_v43 = vpop.f32.mrf.mxu1 }
 0x179   : > { %785 = vst [vmem:[#allocation2 + $0xa8] sm:$0xff] %v632_v41  ;;  %813 = vst [vmem:[#allocation2 + $0x188] sm:$0xff] %v744_v43 }
 0x17a   : > { %v6035_v45 = vpop.f32.mrf.mxu0  ;;  %v6091_v47 = vpop.f32.mrf.mxu1 }
 0x17c   : > { %v637_v49 = vpop.f32.mrf.mxu0  ;;  %v749_v52 = vpop.f32.mrf.mxu1  ;;  %6205 = vmatmul.mubr.bf16.gmra.mxu1 %v7727_v42  ;;  %6325 = vmatmul.mubr.bf16.gmra.mxu0 %v7715_v40 }
 0x17d   : > { %786 = vst [vmem:[#allocation2 + $0xb0] sm:$0xff] %v637_v49  ;;  %814 = vst [vmem:[#allocation2 + $0x190] sm:$0xff] %v749_v52  ;;  %6208 = vmatprep.mubr.msk.bf16.mxu1 %vm7447_vm0, %v7446_v0  ;;  %6328 = vmatprep.mubr.msk.bf16.mxu0 %vm7447_vm0, %v7446_v0  ;;  %v1134_v49 = vld [vmem:[#allocation2 + $0x49] sm:$0xff] }
 0x17e   : > { %v6038_v38 = vpop.f32.mrf.mxu0  ;;  %v6094_v51 = vpop.f32.mrf.mxu1 }
 0x17f   : > { %v7265_v38 = vld [vmem:[%s7579_s18] sm:$0xff]  }
 0x180   : > { %v640_v53 = vpop.f32.mrf.mxu0  ;;  %v752_v54 = vpop.f32.mrf.mxu1 }
 0x181   : > { %787 = vst [vmem:[#allocation2 + $0xb8] sm:$0xff] %v640_v53  ;;  %815 = vst [vmem:[#allocation2 + $0x198] sm:$0xff] %v752_v54  ;;  %v7235_v53 = vld [vmem:[#allocation5 + $0x170] sm:$0xff]  }
 0x182   : > { %v6039_v55 = vpop.f32.mrf.mxu0  ;;  %v6095_v56 = vpop.f32.mrf.mxu1 }
 0x184   : > { %v645_v57 = vpop.f32.mrf.mxu0  ;;  %v757_v58 = vpop.f32.mrf.mxu1  ;;  %6209 = vmatmul.mubr.bf16.gmra.mxu1 %v7739_v44  ;;  %6329 = vmatmul.mubr.bf16.gmra.mxu0 %v7727_v42 }
 0x185   : > { %788 = vst [vmem:[#allocation2 + $0xc0] sm:$0xff] %v645_v57  ;;  %816 = vst [vmem:[#allocation2 + $0x1a0] sm:$0xff] %v757_v58  ;;  %6212 = vmatprep.mubr.msk.bf16.mxu1 %vm7447_vm0, %v7446_v0  ;;  %6332 = vmatprep.mubr.msk.bf16.mxu0 %vm7447_vm0, %v7446_v0  ;;  %v1135_v58 = vld [vmem:[#allocation2 + $0x51] sm:$0xff] }
 0x186   : > { %v6042_v40 = vpop.f32.mrf.mxu0  ;;  %v6098_v59 = vpop.f32.mrf.mxu1 }
 0x188   : > { %v648_v10 = vpop.f32.mrf.mxu0  ;;  %v760_v60 = vpop.f32.mrf.mxu1 }
 0x189   : > { %789 = vst [vmem:[#allocation2 + $0xc8] sm:$0xff] %v648_v10  ;;  %817 = vst [vmem:[#allocation2 + $0x1a8] sm:$0xff] %v760_v60  ;;  %v7234_v10 = vld [vmem:[#allocation5 + $0x1b8] sm:$0xff]  }
 0x18a   : > { %v6043_v61 = vpop.f32.mrf.mxu0  ;;  %v6099_v62 = vpop.f32.mrf.mxu1 }
 0x18c   : > { %v653_v63 = vpop.f32.mrf.mxu0  ;;  %v916_v1 = vpop.f32.mrf.mxu1  ;;  %6213 = vmatmul.mubr.bf16.gmra.mxu1 %v7751_v46  ;;  %6333 = vmatmul.mubr.bf16.gmra.mxu0 %v7739_v44 }
 0x18d   : > { %790 = vst [vmem:[#allocation2 + $0xd0] sm:$0xff] %v653_v63  ;;  %v1179_v42 = vadd.f32 %v1128_v2, %v916_v1  ;;  %6216 = vmatprep.mubr.msk.bf16.mxu1 %vm7447_vm0, %v7446_v0  ;;  %6336 = vmatprep.mubr.msk.bf16.mxu0 %vm7447_vm0, %v7446_v0  ;;  %v7237_v1 = vld [vmem:[#allocation5 + $0x168] sm:$0xff]  }
 0x18e   : > { %v6046_v3 = vpop.f32.mrf.mxu0  ;;  %v6118_v16 = vpop.f32.mrf.mxu1 }
 0x18f   : > { %1230 = vst [vmem:[#allocation2 + $0x19] sm:$0xff] %v1179_v42  ;;  %v1136_v42 = vld [vmem:[#allocation2 + $0x59] sm:$0xff] }
 0x190   : > { %v656_v4 = vpop.f32.mrf.mxu0  ;;  %v919_v5 = vpop.f32.mrf.mxu1  ;;  %v7266_v16 = vld [vmem:[%s7579_s18 + $0x8] sm:$0xff]  }
 0x191   : > { %791 = vst [vmem:[#allocation2 + $0xd8] sm:$0xff] %v656_v4  ;;  %v1180_v7 = vadd.f32 %v1129_v6, %v919_v5  ;;  %v7236_v5 = vld [vmem:[#allocation5 + $0x1b0] sm:$0xff]  }
 0x192   : > { %v6047_v8 = vpop.f32.mrf.mxu0  ;;  %v6119_v9 = vpop.f32.mrf.mxu1 }
 0x193   : > { %1231 = vst [vmem:[#allocation2 + $0x21] sm:$0xff] %v1180_v7 }
 0x194   : > { %v924_v44 = vpop.f32.mrf.mxu1  ;;  %6217 = vmatmul.mubr.bf16.gmra.mxu1 %v7763_v48  ;;  %v1380_v22 = vpop.f32.mrf.mxu0  ;;  %6337 = vmatmul.mubr.bf16.gmra.mxu0 %v7751_v46 }
 0x195   : > { %v1181_v12 = vadd.f32 %v1130_v11, %v924_v44  ;;  %6220 = vmatprep.mubr.msk.bf16.mxu1 %vm7447_vm0, %v7446_v0  ;;  %6340 = vmatprep.mubr.msk.bf16.mxu0 %vm7447_vm0, %v7446_v0  ;;  %v7239_v44 = vld [vmem:[#allocation5 + $0x160] sm:$0xff]  }
 0x196   : > { %v1592_v13 = vld [vmem:[#allocation2 + $0x18] sm:$0xff]  ;;  %v6122_v14 = vpop.f32.mrf.mxu1  ;;  %v6242_v15 = vpop.f32.mrf.mxu0 }
 0x197   : > { %1232 = vst [vmem:[#allocation2 + $0x29] sm:$0xff] %v1181_v12  ;;  %v1643_v17 = vadd.f32 %v1592_v13, %v1380_v22  ;;  %v1137_v22 = vld [vmem:[#allocation2 + $0x61] sm:$0xff] }
 0x198   : > { %v927_v18 = vpop.f32.mrf.mxu1  ;;  %v1383_v28 = vpop.f32.mrf.mxu0 }
 0x199   : > { %1694 = vst [vmem:[#allocation2 + $0x18] sm:$0xff] %v1643_v17  ;;  %v1182_v20 = vadd.f32 %v1131_v19, %v927_v18  ;;  %v7238_v18 = vld [vmem:[#allocation5 + $0x1a8] sm:$0xff]  }
 0x19a   : > { %v1593_v21 = vld [vmem:[#allocation2 + $0x20] sm:$0xff]  ;;  %v6123_v23 = vpop.f32.mrf.mxu1  ;;  %v6243_v46 = vpop.f32.mrf.mxu0 }
 0x19b   : > { %1233 = vst [vmem:[#allocation2 + $0x31] sm:$0xff] %v1182_v20  ;;  %v1644_v24 = vadd.f32 %v1593_v21, %v1383_v28  ;;  %v7241_v28 = vld [vmem:[#allocation5 + $0x158] sm:$0xff]   ;;  %v1138_v21 = vld [vmem:[#allocation2 + $0x69] sm:$0xff] }
 0x19c   : > { %v932_v25 = vpop.f32.mrf.mxu1  ;;  %6221 = vmatmul.mubr.bf16.gmra.mxu1 %v7775_v50  ;;  %v1388_v27 = vpop.f32.mrf.mxu0  ;;  %6341 = vmatmul.mubr.bf16.gmra.mxu0 %v7763_v48  ;;  %v7233_v48 = vld [vmem:[#allocation5 + $0x178] sm:$0xff]  }
 0x19d   : > { %1695 = vst [vmem:[#allocation2 + $0x20] sm:$0xff] %v1644_v24  ;;  %v1183_v34 = vadd.f32 %v1132_v26, %v932_v25  ;;  %6344 = vmatprep.mubr.msk.bf16.mxu0 %vm7447_vm0, %v7446_v0  ;;  %6364 = vmatprep.mubr.msk.bf16.mxu1 %vm7447_vm0, %v7446_v0  ;;  %v7267_v46 = vld [vmem:[%s7579_s18 + $0x10] sm:$0xff]  }
 0x19e   : > { %v1594_v29 = vld [vmem:[#allocation2 + $0x28] sm:$0xff]  ;;  %v6126_v30 = vpop.f32.mrf.mxu1  ;;  %v6246_v31 = vpop.f32.mrf.mxu0 }
 0x19f   : > { %1234 = vst [vmem:[#allocation2 + $0x39] sm:$0xff] %v1183_v34  ;;  %v1645_v32 = vadd.f32 %v1594_v29, %v1388_v27  ;;  %v7240_v34 = vld [vmem:[#allocation5 + $0x1a0] sm:$0xff]   ;;  %v7243_v30 = vld [vmem:[#allocation5 + $0x150] sm:$0xff]  }
 0x1a0   : > { %v935_v33 = vpop.f32.mrf.mxu1  ;;  %v1391_v37 = vpop.f32.mrf.mxu0 }
 0x1a1   : > { %1696 = vst [vmem:[#allocation2 + $0x28] sm:$0xff] %v1645_v32  ;;  %v1184_v36 = vadd.f32 %v1133_v35, %v935_v33  ;;  %v1139_v32 = vld [vmem:[#allocation2 + $0x71] sm:$0xff] }
 0x1a2   : > { %v1595_v39 = vld [vmem:[#allocation2 + $0x30] sm:$0xff]  ;;  %v6127_v41 = vpop.f32.mrf.mxu1  ;;  %v6247_v43 = vpop.f32.mrf.mxu0 }
 0x1a3   : > { %1235 = vst [vmem:[#allocation2 + $0x41] sm:$0xff] %v1184_v36  ;;  %v1646_v45 = vadd.f32 %v1595_v39, %v1391_v37  ;;  %v7242_v39 = vld [vmem:[#allocation5 + $0x198] sm:$0xff]  }
 0x1a4   : > { %v940_v47 = vpop.f32.mrf.mxu1  ;;  %v1396_v52 = vpop.f32.mrf.mxu0  ;;  %6345 = vmatmul.mubr.bf16.gmra.mxu0 %v7775_v50  ;;  %6365 = vmatmul.mubr.bf16.vlgmr.msra.gmra.mxu1 %v7265_v38 }
 0x1a5   : > { %1697 = vst [vmem:[#allocation2 + $0x30] sm:$0xff] %v1646_v45  ;;  %v1185_v51 = vadd.f32 %v1134_v49, %v940_v47  ;;  %6597 = vmatpush3.bf16.msra.mxu1 %v7233_v48  ;;  %6368 = vmatprep.mubr.msk.bf16.mxu1 %vm7447_vm0, %v7446_v0  ;;  %v1140_v45 = vld [vmem:[#allocation2 + $0x79] sm:$0xff] }
 0x1a6   : > { %v1596_v54 = vld [vmem:[#allocation2 + $0x38] sm:$0xff]  ;;  %v6130_v55 = vpop.f32.mrf.mxu1  ;;  %v6250_v56 = vpop.f32.mrf.mxu0  ;;  %6488 = vmatprep.mubr.msk.bf16.mxu0 %vm7447_vm0, %v7446_v0  ;;  %6598 = vmatprep.subr.bf16.mxu1 %v7446_v0  ;;  %v7268_v49 = vld [vmem:[%s7579_s18 + $0x18] sm:$0xff]  }
 0x1a7   : > { %1236 = vst [vmem:[#allocation2 + $0x49] sm:$0xff] %v1185_v51  ;;  %v1647_v57 = vadd.f32 %v1596_v54, %v1396_v52  ;;  %v7244_v54 = vld [vmem:[#allocation5 + $0x190] sm:$0xff]  }
 0x1a8   : > { %v943_v50 = vpop.f32.mrf.mxu1  ;;  %v1399_v40 = vpop.f32.mrf.mxu0 }
 0x1a9   : > { %1698 = vst [vmem:[#allocation2 + $0x38] sm:$0xff] %v1647_v57  ;;  %v1186_v59 = vadd.f32 %v1135_v58, %v943_v50  ;;  %6599 = vmatpush3.bf16.msra.mxu1 %v7235_v53  ;;  %v1141_v57 = vld [vmem:[#allocation2 + $0x81] sm:$0xff] }
 0x1aa   : > { %v1597_v60 = vld [vmem:[#allocation2 + $0x40] sm:$0xff]  ;;  %v6131_v61 = vpop.f32.mrf.mxu1  ;;  %v6251_v62 = vpop.f32.mrf.mxu0  ;;  %6600 = vmatprep.subr.bf16.mxu1 %v7446_v0 }
 0x1ab   : > { %1237 = vst [vmem:[#allocation2 + $0x51] sm:$0xff] %v1186_v59  ;;  %v1648_v63 = vadd.f32 %v1597_v60, %v1399_v40  ;;  %v1142_v62 = vld [vmem:[#allocation2 + $0x89] sm:$0xff] }
 0x1ac   : > { %v948_v2 = vpop.f32.mrf.mxu1  ;;  %v1404_v3 = vpop.f32.mrf.mxu0  ;;  %6369 = vmatmul.mubr.bf16.gmra.mxu1 %v7266_v16  ;;  %6489 = vmatmul.mubr.bf16.vlgmr.msra.gmra.mxu0 %v7265_v38 }
 0x1ad   : > { %1699 = vst [vmem:[#allocation2 + $0x40] sm:$0xff] %v1648_v63  ;;  %v1187_v4 = vadd.f32 %v1136_v42, %v948_v2  ;;  %6721 = vmatpush3.bf16.msra.mxu0 %v7234_v10  ;;  %6372 = vmatprep.mubr.msk.bf16.mxu1 %vm7447_vm0, %v7446_v0 }
 0x1ae   : > { %v1598_v6 = vld [vmem:[#allocation2 + $0x48] sm:$0xff]  ;;  %v6134_v7 = vpop.f32.mrf.mxu1  ;;  %v6254_v8 = vpop.f32.mrf.mxu0  ;;  %6492 = vmatprep.mubr.msk.bf16.mxu0 %vm7447_vm0, %v7446_v0  ;;  %6722 = vmatprep.subr.bf16.mxu0 %v7446_v0 }
 0x1af   : > { %1238 = vst [vmem:[#allocation2 + $0x59] sm:$0xff] %v1187_v4  ;;  %v1649_v9 = vadd.f32 %v1598_v6, %v1404_v3  ;;  %6601 = vmatpush3.bf16.msra.mxu1 %v7237_v1  ;;  %v7269_v1 = vld [vmem:[%s7579_s18 + $0x20] sm:$0xff]  }
 0x1b0   : > { %v951_v11 = vpop.f32.mrf.mxu1  ;;  %v1407_v12 = vpop.f32.mrf.mxu0  ;;  %6602 = vmatprep.subr.bf16.mxu1 %v7446_v0  ;;  %v1143_v6 = vld [vmem:[#allocation2 + $0x91] sm:$0xff] }
 0x1b1   : > { %1700 = vst [vmem:[#allocation2 + $0x48] sm:$0xff] %v1649_v9  ;;  %v1188_v13 = vadd.f32 %v1137_v22, %v951_v11  ;;  %6723 = vmatpush3.bf16.msra.mxu0 %v7236_v5 }
 0x1b2   : > { %v1599_v14 = vld [vmem:[#allocation2 + $0x50] sm:$0xff]  ;;  %v6135_v15 = vpop.f32.mrf.mxu1  ;;  %v6255_v17 = vpop.f32.mrf.mxu0  ;;  %6724 = vmatprep.subr.bf16.mxu0 %v7446_v0 }
 0x1b3   : > { %1239 = vst [vmem:[#allocation2 + $0x61] sm:$0xff] %v1188_v13  ;;  %v1650_v19 = vadd.f32 %v1599_v14, %v1407_v12  ;;  %6603 = vmatpush3.bf16.msra.mxu1 %v7239_v44  ;;  %v1144_v13 = vld [vmem:[#allocation2 + $0x99] sm:$0xff] }
 0x1b4   : > { %v956_v20 = vpop.f32.mrf.mxu1  ;;  %v1412_v23 = vpop.f32.mrf.mxu0  ;;  %6373 = vmatmul.mubr.bf16.gmra.mxu1 %v7267_v46  ;;  %6493 = vmatmul.mubr.bf16.gmra.mxu0 %v7266_v16  ;;  %v7270_v15 = vld [vmem:[%s7579_s18 + $0x28] sm:$0xff]  }
 0x1b5   : > { %1701 = vst [vmem:[#allocation2 + $0x50] sm:$0xff] %v1650_v19  ;;  %v1189_v24 = vadd.f32 %v1138_v21, %v956_v20  ;;  %6376 = vmatprep.mubr.msk.bf16.mxu1 %vm7447_vm0, %v7446_v0  ;;  %6496 = vmatprep.mubr.msk.bf16.mxu0 %vm7447_vm0, %v7446_v0 }
 0x1b6   : > { %v1600_v25 = vld [vmem:[#allocation2 + $0x58] sm:$0xff]  ;;  %v6138_v26 = vpop.f32.mrf.mxu1  ;;  %v6258_v27 = vpop.f32.mrf.mxu0  ;;  %6725 = vmatpush3.bf16.msra.mxu0 %v7238_v18  ;;  %6604 = vmatprep.subr.bf16.mxu1 %v7446_v0  ;;  %v7245_v18 = vld [vmem:[#allocation5 + $0x148] sm:$0xff]  }
 0x1b7   : > { %1240 = vst [vmem:[#allocation2 + $0x69] sm:$0xff] %v1189_v24  ;;  %v1651_v29 = vadd.f32 %v1600_v25, %v1412_v23  ;;  %6726 = vmatprep.subr.bf16.mxu0 %v7446_v0  ;;  %6605 = vmatpush3.bf16.msra.mxu1 %v7241_v28  ;;  %v7246_v26 = vld [vmem:[#allocation5 + $0x188] sm:$0xff]  }
 0x1b8   : > { %v959_v31 = vpop.f32.mrf.mxu1  ;;  %v1415_v33 = vpop.f32.mrf.mxu0  ;;  %6606 = vmatprep.subr.bf16.mxu1 %v7446_v0 }
 0x1b9   : > { %1702 = vst [vmem:[#allocation2 + $0x58] sm:$0xff] %v1651_v29  ;;  %v1190_v35 = vadd.f32 %v1139_v32, %v959_v31  ;;  %v1146_v32 = vld [vmem:[#allocation2 + $0xa9] sm:$0xff] }
 0x1ba   : > { %v1601_v37 = vld [vmem:[#allocation2 + $0x60] sm:$0xff]  ;;  %v6139_v36 = vpop.f32.mrf.mxu1  ;;  %v6259_v48 = vpop.f32.mrf.mxu0  ;;  %6727 = vmatpush3.bf16.msra.mxu0 %v7240_v34 }
 0x1bb   : > { %1241 = vst [vmem:[#allocation2 + $0x71] sm:$0xff] %v1190_v35  ;;  %v1652_v41 = vadd.f32 %v1601_v37, %v1415_v33  ;;  %6728 = vmatprep.subr.bf16.mxu0 %v7446_v0  ;;  %6607 = vmatpush3.bf16.msra.mxu1 %v7243_v30  ;;  %v7271_v35 = vld [vmem:[%s7579_s18 + $0x30] sm:$0xff]  }
 0x1bc   : > { %v964_v43 = vpop.f32.mrf.mxu1  ;;  %v1420_v47 = vpop.f32.mrf.mxu0  ;;  %6377 = vmatmul.mubr.bf16.gmra.mxu1 %v7268_v49  ;;  %6497 = vmatmul.mubr.bf16.gmra.mxu0 %v7267_v46  ;;  %v1145_v46 = vld [vmem:[#allocation2 + $0xa1] sm:$0xff] }
 0x1bd   : > { %1703 = vst [vmem:[#allocation2 + $0x60] sm:$0xff] %v1652_v41  ;;  %v1191_v52 = vadd.f32 %v1140_v45, %v964_v43  ;;  %6380 = vmatprep.mubr.msk.bf16.mxu1 %vm7447_vm0, %v7446_v0  ;;  %6500 = vmatprep.mubr.msk.bf16.mxu0 %vm7447_vm0, %v7446_v0  ;;  %v1147_v45 = vld [vmem:[#allocation2 + $0xb1] sm:$0xff] }
 0x1be   : > { %v1602_v38 = vld [vmem:[#allocation2 + $0x68] sm:$0xff]  ;;  %v6142_v51 = vpop.f32.mrf.mxu1  ;;  %v6262_v53 = vpop.f32.mrf.mxu0  ;;  %6729 = vmatpush3.bf16.msra.mxu0 %v7242_v39  ;;  %6608 = vmatprep.subr.bf16.mxu1 %v7446_v0 }
 0x1bf   : > { %1242 = vst [vmem:[#allocation2 + $0x79] sm:$0xff] %v1191_v52  ;;  %v1653_v55 = vadd.f32 %v1602_v38, %v1420_v47  ;;  %6730 = vmatprep.subr.bf16.mxu0 %v7446_v0  ;;  %6609 = vmatpush3.bf16.msra.mxu1 %v7245_v18 }
 0x1c0   : > { %v967_v56 = vpop.f32.mrf.mxu1  ;;  %v1423_v50 = vpop.f32.mrf.mxu0  ;;  %6610 = vmatprep.subr.bf16.mxu1 %v7446_v0 }
 0x1c1   : > { %1704 = vst [vmem:[#allocation2 + $0x68] sm:$0xff] %v1653_v55  ;;  %v1192_v58 = vadd.f32 %v1141_v57, %v967_v56  ;;  %v1148_v55 = vld [vmem:[#allocation2 + $0xb9] sm:$0xff] }
 0x1c2   : > { %v1603_v40 = vld [vmem:[#allocation2 + $0x70] sm:$0xff]  ;;  %v6143_v59 = vpop.f32.mrf.mxu1  ;;  %v6263_v10 = vpop.f32.mrf.mxu0  ;;  %6731 = vmatpush3.bf16.msra.mxu0 %v7244_v54  ;;  %v7272_v57 = vld [vmem:[%s7579_s18 + $0x38] sm:$0xff]  }
 0x1c3   : > { %1243 = vst [vmem:[#allocation2 + $0x81] sm:$0xff] %v1192_v58  ;;  %v1654_v60 = vadd.f32 %v1603_v40, %v1423_v50  ;;  %6732 = vmatprep.subr.bf16.mxu0 %v7446_v0 }
 0x1c4   : > { %v972_v61 = vpop.f32.mrf.mxu1  ;;  %v1428_v63 = vpop.f32.mrf.mxu0  ;;  %6381 = vmatmul.mubr.bf16.gmra.mxu1 %v7269_v1  ;;  %6501 = vmatmul.mubr.bf16.gmra.mxu0 %v7268_v49 }
 0x1c5   : > { %1705 = vst [vmem:[#allocation2 + $0x70] sm:$0xff] %v1654_v60  ;;  %v1193_v2 = vadd.f32 %v1142_v62, %v972_v61  ;;  %6384 = vmatprep.mubr.msk.bf16.mxu1 %vm7447_vm0, %v7446_v0  ;;  %6504 = vmatprep.mubr.msk.bf16.mxu0 %vm7447_vm0, %v7446_v0  ;;  %v1149_v61 = vld [vmem:[#allocation2 + $0xc1] sm:$0xff] }
 0x1c6   : > { %v1604_v42 = vld [vmem:[#allocation2 + $0x78] sm:$0xff]  ;;  %v6146_v3 = vpop.f32.mrf.mxu1  ;;  %v6266_v16 = vpop.f32.mrf.mxu0  ;;  %6733 = vmatpush3.bf16.msra.mxu0 %v7246_v26 }
 0x1c7   : > { %1244 = vst [vmem:[#allocation2 + $0x89] sm:$0xff] %v1193_v2  ;;  %v1655_v4 = vadd.f32 %v1604_v42, %v1428_v63  ;;  %6734 = vmatprep.subr.bf16.mxu0 %v7446_v0  ;;  %v7247_v3 = vld [vmem:[#allocation5 + $0x140] sm:$0xff]  }
 0x1c8   : > { %v975_v5 = vpop.f32.mrf.mxu1  ;;  %v1431_v7 = vpop.f32.mrf.mxu0  ;;  %6611 = vmatpush3.bf16.msra.mxu1 %v7247_v3 }
 0x1c9   : > { %1706 = vst [vmem:[#allocation2 + $0x78] sm:$0xff] %v1655_v4  ;;  %v1194_v8 = vadd.f32 %v1143_v6, %v975_v5  ;;  %v1150_v5 = vld [vmem:[#allocation2 + $0xc9] sm:$0xff]  ;;  %6844 = vmatprep.subr.bf16.mxu1 %v7446_v0 }
 0x1ca   : > { %v1605_v9 = vld [vmem:[#allocation2 + $0x80] sm:$0xff]  ;;  %v6147_v44 = vpop.f32.mrf.mxu1  ;;  %v6267_v11 = vpop.f32.mrf.mxu0 }
 0x1cb   : > { %1245 = vst [vmem:[#allocation2 + $0x91] sm:$0xff] %v1194_v8  ;;  %v1656_v22 = vadd.f32 %v1605_v9, %v1431_v7  ;;  %v7273_v7 = vld [vmem:[%s7579_s18 + $0x40] sm:$0xff]  }
 0x1cc   : > { %v980_v12 = vpop.f32.mrf.mxu1  ;;  %v1436_v14 = vpop.f32.mrf.mxu0  ;;  %6385 = vmatmul.mubr.bf16.gmra.mxu1 %v7270_v15  ;;  %6505 = vmatmul.mubr.bf16.gmra.mxu0 %v7269_v1 }
 0x1cd   : > { %1707 = vst [vmem:[#allocation2 + $0x80] sm:$0xff] %v1656_v22  ;;  %v1195_v17 = vadd.f32 %v1144_v13, %v980_v12  ;;  %6388 = vmatprep.mubr.msk.bf16.mxu1 %vm7447_vm0, %v7446_v0  ;;  %6508 = vmatprep.mubr.msk.bf16.mxu0 %vm7447_vm0, %v7446_v0  ;;  %v1151_v13 = vld [vmem:[#allocation2 + $0xd1] sm:$0xff] }
 0x1ce   : > { %v1606_v19 = vld [vmem:[#allocation2 + $0x88] sm:$0xff]  ;;  %v6150_v28 = vpop.f32.mrf.mxu1  ;;  %v6270_v20 = vpop.f32.mrf.mxu0 }
 0x1cf   : > { %1246 = vst [vmem:[#allocation2 + $0x99] sm:$0xff] %v1195_v17  ;;  %v1657_v21 = vadd.f32 %v1606_v19, %v1436_v14  ;;  %v7248_v20 = vld [vmem:[#allocation5 + $0x180] sm:$0xff]  }
 0x1d0   : > { %v983_v23 = vpop.f32.mrf.mxu1  ;;  %v1439_v24 = vpop.f32.mrf.mxu0  ;;  %6735 = vmatpush3.bf16.msra.mxu0 %v7248_v20 }
 0x1d1   : > { %1708 = vst [vmem:[#allocation2 + $0x88] sm:$0xff] %v1657_v21  ;;  %v1196_v25 = vadd.f32 %v1145_v46, %v983_v23  ;;  %v1152_v23 = vld [vmem:[#allocation2 + $0xd9] sm:$0xff]  ;;  %6968 = vmatprep.subr.bf16.mxu0 %v7446_v0 }
 0x1d2   : > { %v1607_v27 = vld [vmem:[#allocation2 + $0x90] sm:$0xff]  ;;  %v6151_v34 = vpop.f32.mrf.mxu1  ;;  %v6271_v29 = vpop.f32.mrf.mxu0 }
 0x1d3   : > { %1247 = vst [vmem:[#allocation2 + $0xa1] sm:$0xff] %v1196_v25  ;;  %v1658_v30 = vadd.f32 %v1607_v27, %v1439_v24  ;;  %v7274_v24 = vld [vmem:[%s7579_s18 + $0x48] sm:$0xff]  }
 0x1d4   : > { %v988_v31 = vpop.f32.mrf.mxu1  ;;  %v1444_v33 = vpop.f32.mrf.mxu0  ;;  %6389 = vmatmul.mubr.bf16.gmra.mxu1 %v7271_v35  ;;  %6509 = vmatmul.mubr.bf16.gmra.mxu0 %v7270_v15 }
 0x1d5   : > { %1709 = vst [vmem:[#allocation2 + $0x90] sm:$0xff] %v1658_v30  ;;  %v1197_v37 = vadd.f32 %v1146_v32, %v988_v31  ;;  %6392 = vmatprep.mubr.msk.bf16.mxu1 %vm7447_vm0, %v7446_v0  ;;  %6512 = vmatprep.mubr.msk.bf16.mxu0 %vm7447_vm0, %v7446_v0  ;;  %v1153_v31 = vld [vmem:[#allocation2 + $0xe1] sm:$0xff] }
 0x1d6   : > { %v1608_v36 = vld [vmem:[#allocation2 + $0x98] sm:$0xff]  ;;  %v6154_v48 = vpop.f32.mrf.mxu1  ;;  %v6274_v39 = vpop.f32.mrf.mxu0 }
 0x1d7   : > { %1248 = vst [vmem:[#allocation2 + $0xa9] sm:$0xff] %v1197_v37  ;;  %v1659_v41 = vadd.f32 %v1608_v36, %v1444_v33 }
 0x1d8   : > { %v991_v43 = vpop.f32.mrf.mxu1  ;;  %v1447_v47 = vpop.f32.mrf.mxu0 }
 0x1d9   : > { %1710 = vst [vmem:[#allocation2 + $0x98] sm:$0xff] %v1659_v41  ;;  %v1198_v49 = vadd.f32 %v1147_v45, %v991_v43  ;;  %v1154_v41 = vld [vmem:[#allocation2 + $0xe9] sm:$0xff]  ;;  %v7275_v45 = vld [vmem:[%s7579_s18 + $0x50] sm:$0xff]  }
 0x1da   : > { %v1609_v52 = vld [vmem:[#allocation2 + $0xa0] sm:$0xff]  ;;  %v6155_v38 = vpop.f32.mrf.mxu1  ;;  %v6275_v51 = vpop.f32.mrf.mxu0 }
 0x1db   : > { %1249 = vst [vmem:[#allocation2 + $0xb1] sm:$0xff] %v1198_v49  ;;  %v1660_v53 = vadd.f32 %v1609_v52, %v1447_v47 }
 0x1dc   : > { %v996_v54 = vpop.f32.mrf.mxu1  ;;  %v1452_v56 = vpop.f32.mrf.mxu0  ;;  %6393 = vmatmul.mubr.bf16.gmra.mxu1 %v7272_v57  ;;  %6513 = vmatmul.mubr.bf16.gmra.mxu0 %v7271_v35 }
 0x1dd   : > { %1711 = vst [vmem:[#allocation2 + $0xa0] sm:$0xff] %v1660_v53  ;;  %v1199_v50 = vadd.f32 %v1148_v55, %v996_v54  ;;  %6396 = vmatprep.mubr.msk.bf16.mxu1 %vm7447_vm0, %v7446_v0  ;;  %6516 = vmatprep.mubr.msk.bf16.mxu0 %vm7447_vm0, %v7446_v0  ;;  %v1155_v54 = vld [vmem:[#allocation2 + $0xf1] sm:$0xff] }
 0x1de   : > { %v1610_v58 = vld [vmem:[#allocation2 + $0xa8] sm:$0xff]  ;;  %v6158_v40 = vpop.f32.mrf.mxu1  ;;  %v6278_v59 = vpop.f32.mrf.mxu0 }
 0x1df   : > { %1250 = vst [vmem:[#allocation2 + $0xb9] sm:$0xff] %v1199_v50  ;;  %v1661_v10 = vadd.f32 %v1610_v58, %v1452_v56 }
 0x1e0   : > { %v999_v60 = vpop.f32.mrf.mxu1  ;;  %v1455_v62 = vpop.f32.mrf.mxu0 }
 0x1e1   : > { %1712 = vst [vmem:[#allocation2 + $0xa8] sm:$0xff] %v1661_v10  ;;  %v1200_v63 = vadd.f32 %v1149_v61, %v999_v60  ;;  %v1156_v10 = vld [vmem:[#allocation2 + $0xf9] sm:$0xff] }
 0x1e2   : > { %v1611_v1 = vld [vmem:[#allocation2 + $0xb0] sm:$0xff]  ;;  %v6159_v2 = vpop.f32.mrf.mxu1  ;;  %v6279_v42 = vpop.f32.mrf.mxu0  ;;  %v7276_v61 = vld [vmem:[%s7579_s18 + $0x58] sm:$0xff]  }
 0x1e3   : > { %1251 = vst [vmem:[#allocation2 + $0xc1] sm:$0xff] %v1200_v63  ;;  %v1662_v16 = vadd.f32 %v1611_v1, %v1455_v62 }
 0x1e4   : > { %v1004_v4 = vpop.f32.mrf.mxu1  ;;  %v1460_v6 = vpop.f32.mrf.mxu0  ;;  %6397 = vmatmul.mubr.bf16.gmra.mxu1 %v7273_v7  ;;  %6517 = vmatmul.mubr.bf16.gmra.mxu0 %v7272_v57 }
 0x1e5   : > { %1713 = vst [vmem:[#allocation2 + $0xb0] sm:$0xff] %v1662_v16  ;;  %v1201_v8 = vadd.f32 %v1150_v5, %v1004_v4  ;;  %6400 = vmatprep.mubr.msk.bf16.mxu1 %vm7447_vm0, %v7446_v0  ;;  %6520 = vmatprep.mubr.msk.bf16.mxu0 %vm7447_vm0, %v7446_v0  ;;  %v1157_v16 = vld [vmem:[#allocation2 + $0x101] sm:$0xff] }
 0x1e6   : > { %v1612_v9 = vld [vmem:[#allocation2 + $0xb8] sm:$0xff]  ;;  %v6162_v44 = vpop.f32.mrf.mxu1  ;;  %v6282_v11 = vpop.f32.mrf.mxu0 }
 0x1e7   : > { %1252 = vst [vmem:[#allocation2 + $0xc9] sm:$0xff] %v1201_v8  ;;  %v1663_v22 = vadd.f32 %v1612_v9, %v1460_v6  ;;  %v1158_v11 = vld [vmem:[#allocation2 + $0x109] sm:$0xff] }
 0x1e8   : > { %v1007_v12 = vpop.f32.mrf.mxu1  ;;  %v1463_v14 = vpop.f32.mrf.mxu0 }
 0x1e9   : > { %1714 = vst [vmem:[#allocation2 + $0xb8] sm:$0xff] %v1663_v22  ;;  %v1202_v15 = vadd.f32 %v1151_v13, %v1007_v12  ;;  %v7277_v12 = vld [vmem:[%s7579_s18 + $0x60] sm:$0xff]  }
 0x1ea   : > { %v1613_v17 = vld [vmem:[#allocation2 + $0xc0] sm:$0xff]  ;;  %v6163_v18 = vpop.f32.mrf.mxu1  ;;  %v6283_v19 = vpop.f32.mrf.mxu0 }
 0x1eb   : > { %1253 = vst [vmem:[#allocation2 + $0xd1] sm:$0xff] %v1202_v15  ;;  %v1664_v28 = vadd.f32 %v1613_v17, %v1463_v14 }
 0x1ec   : > { %v1012_v21 = vpop.f32.mrf.mxu1  ;;  %v1468_v46 = vpop.f32.mrf.mxu0  ;;  %6401 = vmatmul.mubr.bf16.gmra.mxu1 %v7274_v24  ;;  %6521 = vmatmul.mubr.bf16.gmra.mxu0 %v7273_v7 }
 0x1ed   : > { %1715 = vst [vmem:[#allocation2 + $0xc0] sm:$0xff] %v1664_v28  ;;  %v1203_v25 = vadd.f32 %v1152_v23, %v1012_v21  ;;  %6404 = vmatprep.mubr.msk.bf16.mxu1 %vm7447_vm0, %v7446_v0  ;;  %6524 = vmatprep.mubr.msk.bf16.mxu0 %vm7447_vm0, %v7446_v0  ;;  %v1159_v28 = vld [vmem:[#allocation2 + $0x111] sm:$0xff] }
 0x1ee   : > { %v1614_v26 = vld [vmem:[#allocation2 + $0xc8] sm:$0xff]  ;;  %v6166_v27 = vpop.f32.mrf.mxu1  ;;  %v6286_v34 = vpop.f32.mrf.mxu0 }
 0x1ef   : > { %1254 = vst [vmem:[#allocation2 + $0xd9] sm:$0xff] %v1203_v25  ;;  %v1665_v29 = vadd.f32 %v1614_v26, %v1468_v46  ;;  %v1160_v27 = vld [vmem:[#allocation2 + $0x119] sm:$0xff] }
 0x1f0   : > { %v1015_v30 = vpop.f32.mrf.mxu1  ;;  %v1471_v32 = vpop.f32.mrf.mxu0 }
 0x1f1   : > { %1716 = vst [vmem:[#allocation2 + $0xc8] sm:$0xff] %v1665_v29  ;;  %v1204_v33 = vadd.f32 %v1153_v31, %v1015_v30  ;;  %v7278_v29 = vld [vmem:[%s7579_s18 + $0x68] sm:$0xff]  }
 0x1f2   : > { %v1615_v35 = vld [vmem:[#allocation2 + $0xd0] sm:$0xff]  ;;  %v6167_v37 = vpop.f32.mrf.mxu1  ;;  %v6287_v36 = vpop.f32.mrf.mxu0 }
 0x1f3   : > { %1255 = vst [vmem:[#allocation2 + $0xe1] sm:$0xff] %v1204_v33  ;;  %v1666_v48 = vadd.f32 %v1615_v35, %v1471_v32  ;;  %v1161_v36 = vld [vmem:[#allocation2 + $0x121] sm:$0xff] }
 0x1f4   : > { %v1020_v39 = vpop.f32.mrf.mxu1  ;;  %v1476_v43 = vpop.f32.mrf.mxu0  ;;  %6405 = vmatmul.mubr.bf16.gmra.mxu1 %v7275_v45  ;;  %6525 = vmatmul.mubr.bf16.gmra.mxu0 %v7274_v24 }
 0x1f5   : > { %1717 = vst [vmem:[#allocation2 + $0xd0] sm:$0xff] %v1666_v48  ;;  %v1205_v47 = vadd.f32 %v1154_v41, %v1020_v39  ;;  %6408 = vmatprep.mubr.msk.bf16.mxu1 %vm7447_vm0, %v7446_v0  ;;  %6528 = vmatprep.mubr.msk.bf16.mxu0 %vm7447_vm0, %v7446_v0 }
 0x1f6   : > { %v1616_v49 = vld [vmem:[#allocation2 + $0xd8] sm:$0xff]  ;;  %v6170_v52 = vpop.f32.mrf.mxu1  ;;  %v6290_v38 = vpop.f32.mrf.mxu0 }
 0x1f7   : > { %1256 = vst [vmem:[#allocation2 + $0xe9] sm:$0xff] %v1205_v47  ;;  %v1667_v51 = vadd.f32 %v1616_v49, %v1476_v43  ;;  %v1162_v52 = vld [vmem:[#allocation2 + $0x129] sm:$0xff] }
 0x1f8   : > { %v1023_v53 = vpop.f32.mrf.mxu1  ;;  %v1479_v55 = vpop.f32.mrf.mxu0 }
 0x1f9   : > { %1718 = vst [vmem:[#allocation2 + $0xd8] sm:$0xff] %v1667_v51  ;;  %v1206_v56 = vadd.f32 %v1155_v54, %v1023_v53  ;;  %v7279_v51 = vld [vmem:[%s7579_s18 + $0x70] sm:$0xff]  }
 0x1fa   : > { %v1617_v57 = vld [vmem:[#allocation2 + $0xe0] sm:$0xff]  ;;  %v6171_v50 = vpop.f32.mrf.mxu1  ;;  %v6291_v58 = vpop.f32.mrf.mxu0 }
 0x1fb   : > { %1257 = vst [vmem:[#allocation2 + $0xf1] sm:$0xff] %v1206_v56  ;;  %v1668_v40 = vadd.f32 %v1617_v57, %v1479_v55  ;;  %v1163_v58 = vld [vmem:[#allocation2 + $0x131] sm:$0xff] }
 0x1fc   : > { %v1028_v59 = vpop.f32.mrf.mxu1  ;;  %v1484_v60 = vpop.f32.mrf.mxu0  ;;  %6409 = vmatmul.mubr.bf16.gmra.mxu1 %v7276_v61  ;;  %6529 = vmatmul.mubr.bf16.gmra.mxu0 %v7275_v45 }
 0x1fd   : > { %1719 = vst [vmem:[#allocation2 + $0xe0] sm:$0xff] %v1668_v40  ;;  %v1207_v62 = vadd.f32 %v1156_v10, %v1028_v59  ;;  %6412 = vmatprep.mubr.msk.bf16.mxu1 %vm7447_vm0, %v7446_v0  ;;  %6532 = vmatprep.mubr.msk.bf16.mxu0 %vm7447_vm0, %v7446_v0 }
 0x1fe   : > { %v1618_v63 = vld [vmem:[#allocation2 + $0xe8] sm:$0xff]  ;;  %v6174_v1 = vpop.f32.mrf.mxu1  ;;  %v6294_v2 = vpop.f32.mrf.mxu0 }
 0x1ff   : > { %1258 = vst [vmem:[#allocation2 + $0xf9] sm:$0xff] %v1207_v62  ;;  %v1669_v42 = vadd.f32 %v1618_v63, %v1484_v60  ;;  %v1164_v1 = vld [vmem:[#allocation2 + $0x139] sm:$0xff] }
 0x200   : > { %v1031_v3 = vpop.f32.mrf.mxu1  ;;  %v1487_v4 = vpop.f32.mrf.mxu0 }
 0x201   : > { %1720 = vst [vmem:[#allocation2 + $0xe8] sm:$0xff] %v1669_v42  ;;  %v1208_v5 = vadd.f32 %v1157_v16, %v1031_v3  ;;  %v7280_v42 = vld [vmem:[%s7579_s18 + $0x78] sm:$0xff]  }
 0x202   : > { %v1619_v6 = vld [vmem:[#allocation2 + $0xf0] sm:$0xff]  ;;  %v6175_v7 = vpop.f32.mrf.mxu1  ;;  %v6295_v8 = vpop.f32.mrf.mxu0 }
 0x203   : > { %1259 = vst [vmem:[#allocation2 + $0x101] sm:$0xff] %v1208_v5  ;;  %v1670_v9 = vadd.f32 %v1619_v6, %v1487_v4  ;;  %v1165_v8 = vld [vmem:[#allocation2 + $0x141] sm:$0xff] }
 0x204   : > { %v1036_v44 = vpop.f32.mrf.mxu1  ;;  %v1492_v22 = vpop.f32.mrf.mxu0  ;;  %6413 = vmatmul.mubr.bf16.gmra.mxu1 %v7277_v12  ;;  %6533 = vmatmul.mubr.bf16.gmra.mxu0 %v7276_v61 }
 0x205   : > { %1721 = vst [vmem:[#allocation2 + $0xf0] sm:$0xff] %v1670_v9  ;;  %v1209_v13 = vadd.f32 %v1158_v11, %v1036_v44  ;;  %6416 = vmatprep.mubr.msk.bf16.mxu1 %vm7447_vm0, %v7446_v0  ;;  %6536 = vmatprep.mubr.msk.bf16.mxu0 %vm7447_vm0, %v7446_v0 }
 0x206   : > { %v1620_v14 = vld [vmem:[#allocation2 + $0xf8] sm:$0xff]  ;;  %v6178_v15 = vpop.f32.mrf.mxu1  ;;  %v6298_v17 = vpop.f32.mrf.mxu0 }
 0x207   : > { %1260 = vst [vmem:[#allocation2 + $0x109] sm:$0xff] %v1209_v13  ;;  %v1671_v18 = vadd.f32 %v1620_v14, %v1492_v22  ;;  %v1166_v15 = vld [vmem:[#allocation2 + $0x149] sm:$0xff] }
 0x208   : > { %v1039_v19 = vpop.f32.mrf.mxu1  ;;  %v1495_v20 = vpop.f32.mrf.mxu0 }
 0x209   : > { %1722 = vst [vmem:[#allocation2 + $0xf8] sm:$0xff] %v1671_v18  ;;  %v1210_v21 = vadd.f32 %v1159_v28, %v1039_v19  ;;  %v7281_v18 = vld [vmem:[%s7579_s18 + $0x80] sm:$0xff]  }
 0x20a   : > { %v1621_v23 = vld [vmem:[#allocation2 + $0x100] sm:$0xff]  ;;  %v6179_v46 = vpop.f32.mrf.mxu1  ;;  %v6299_v24 = vpop.f32.mrf.mxu0 }
 0x20b   : > { %1261 = vst [vmem:[#allocation2 + $0x111] sm:$0xff] %v1210_v21  ;;  %v1672_v25 = vadd.f32 %v1621_v23, %v1495_v20  ;;  %v1167_v24 = vld [vmem:[#allocation2 + $0x151] sm:$0xff] }
 0x20c   : > { %v1044_v26 = vpop.f32.mrf.mxu1  ;;  %v1500_v34 = vpop.f32.mrf.mxu0  ;;  %6417 = vmatmul.mubr.bf16.gmra.mxu1 %v7278_v29  ;;  %6537 = vmatmul.mubr.bf16.gmra.mxu0 %v7277_v12 }
 0x20d   : > { %1723 = vst [vmem:[#allocation2 + $0x100] sm:$0xff] %v1672_v25  ;;  %v1211_v30 = vadd.f32 %v1160_v27, %v1044_v26  ;;  %6420 = vmatprep.mubr.msk.bf16.mxu1 %vm7447_vm0, %v7446_v0  ;;  %6540 = vmatprep.mubr.msk.bf16.mxu0 %vm7447_vm0, %v7446_v0 }
 0x20e   : > { %v1622_v31 = vld [vmem:[#allocation2 + $0x108] sm:$0xff]  ;;  %v6182_v32 = vpop.f32.mrf.mxu1  ;;  %v6302_v33 = vpop.f32.mrf.mxu0 }
 0x20f   : > { %1262 = vst [vmem:[#allocation2 + $0x119] sm:$0xff] %v1211_v30  ;;  %v1673_v35 = vadd.f32 %v1622_v31, %v1500_v34  ;;  %v1168_v32 = vld [vmem:[#allocation2 + $0x159] sm:$0xff] }
 0x210   : > { %v1047_v37 = vpop.f32.mrf.mxu1  ;;  %v1503_v48 = vpop.f32.mrf.mxu0 }
 0x211   : > { %1724 = vst [vmem:[#allocation2 + $0x108] sm:$0xff] %v1673_v35  ;;  %v1212_v39 = vadd.f32 %v1161_v36, %v1047_v37  ;;  %v7282_v35 = vld [vmem:[%s7579_s18 + $0x88] sm:$0xff]  }
 0x212   : > { %v1623_v41 = vld [vmem:[#allocation2 + $0x110] sm:$0xff]  ;;  %v6183_v43 = vpop.f32.mrf.mxu1  ;;  %v6303_v45 = vpop.f32.mrf.mxu0 }
 0x213   : > { %1263 = vst [vmem:[#allocation2 + $0x121] sm:$0xff] %v1212_v39  ;;  %v1674_v47 = vadd.f32 %v1623_v41, %v1503_v48  ;;  %v1169_v45 = vld [vmem:[#allocation2 + $0x161] sm:$0xff] }
 0x214   : > { %v1052_v49 = vpop.f32.mrf.mxu1  ;;  %v1508_v38 = vpop.f32.mrf.mxu0  ;;  %6421 = vmatmul.mubr.bf16.gmra.mxu1 %v7279_v51  ;;  %6541 = vmatmul.mubr.bf16.gmra.mxu0 %v7278_v29 }
 0x215   : > { %1725 = vst [vmem:[#allocation2 + $0x110] sm:$0xff] %v1674_v47  ;;  %v1213_v53 = vadd.f32 %v1162_v52, %v1052_v49  ;;  %6424 = vmatprep.mubr.msk.bf16.mxu1 %vm7447_vm0, %v7446_v0  ;;  %6544 = vmatprep.mubr.msk.bf16.mxu0 %vm7447_vm0, %v7446_v0 }
 0x216   : > { %v1624_v54 = vld [vmem:[#allocation2 + $0x118] sm:$0xff]  ;;  %v6186_v55 = vpop.f32.mrf.mxu1  ;;  %v6306_v56 = vpop.f32.mrf.mxu0 }
 0x217   : > { %1264 = vst [vmem:[#allocation2 + $0x129] sm:$0xff] %v1213_v53  ;;  %v1675_v57 = vadd.f32 %v1624_v54, %v1508_v38  ;;  %v1170_v55 = vld [vmem:[#allocation2 + $0x169] sm:$0xff] }
 0x218   : > { %v1055_v50 = vpop.f32.mrf.mxu1  ;;  %v1511_v40 = vpop.f32.mrf.mxu0 }
 0x219   : > { %1726 = vst [vmem:[#allocation2 + $0x118] sm:$0xff] %v1675_v57  ;;  %v1214_v59 = vadd.f32 %v1163_v58, %v1055_v50  ;;  %v7283_v57 = vld [vmem:[%s7579_s18 + $0x90] sm:$0xff]  }
 0x21a   : > { %v1625_v10 = vld [vmem:[#allocation2 + $0x120] sm:$0xff]  ;;  %v6187_v60 = vpop.f32.mrf.mxu1  ;;  %v6307_v61 = vpop.f32.mrf.mxu0 }
 0x21b   : > { %1265 = vst [vmem:[#allocation2 + $0x131] sm:$0xff] %v1214_v59  ;;  %v1676_v62 = vadd.f32 %v1625_v10, %v1511_v40  ;;  %v1171_v61 = vld [vmem:[#allocation2 + $0x171] sm:$0xff] }
 0x21c   : > { %v1060_v63 = vpop.f32.mrf.mxu1  ;;  %v1516_v2 = vpop.f32.mrf.mxu0  ;;  %6425 = vmatmul.mubr.bf16.gmra.mxu1 %v7280_v42  ;;  %6545 = vmatmul.mubr.bf16.gmra.mxu0 %v7279_v51 }
 0x21d   : > { %1727 = vst [vmem:[#allocation2 + $0x120] sm:$0xff] %v1676_v62  ;;  %v1215_v3 = vadd.f32 %v1164_v1, %v1060_v63  ;;  %6428 = vmatprep.mubr.msk.bf16.mxu1 %vm7447_vm0, %v7446_v0  ;;  %6548 = vmatprep.mubr.msk.bf16.mxu0 %vm7447_vm0, %v7446_v0 }
 0x21e   : > { %v1626_v16 = vld [vmem:[#allocation2 + $0x128] sm:$0xff]  ;;  %v6190_v4 = vpop.f32.mrf.mxu1  ;;  %v6310_v5 = vpop.f32.mrf.mxu0 }
 0x21f   : > { %1266 = vst [vmem:[#allocation2 + $0x139] sm:$0xff] %v1215_v3  ;;  %v1677_v6 = vadd.f32 %v1626_v16, %v1516_v2  ;;  %v1172_v4 = vld [vmem:[#allocation2 + $0x179] sm:$0xff] }
 0x220   : > { %v1063_v7 = vpop.f32.mrf.mxu1  ;;  %v1519_v9 = vpop.f32.mrf.mxu0 }
 0x221   : > { %1728 = vst [vmem:[#allocation2 + $0x128] sm:$0xff] %v1677_v6  ;;  %v1216_v44 = vadd.f32 %v1165_v8, %v1063_v7  ;;  %v7284_v6 = vld [vmem:[%s7579_s18 + $0x98] sm:$0xff]  }
 0x222   : > { %v1627_v11 = vld [vmem:[#allocation2 + $0x130] sm:$0xff]  ;;  %v6191_v22 = vpop.f32.mrf.mxu1  ;;  %v6311_v12 = vpop.f32.mrf.mxu0 }
 0x223   : > { %1267 = vst [vmem:[#allocation2 + $0x141] sm:$0xff] %v1216_v44  ;;  %v1678_v13 = vadd.f32 %v1627_v11, %v1519_v9  ;;  %v1173_v12 = vld [vmem:[#allocation2 + $0x181] sm:$0xff] }
 0x224   : > { %v1068_v14 = vpop.f32.mrf.mxu1  ;;  %v1524_v17 = vpop.f32.mrf.mxu0  ;;  %6429 = vmatmul.mubr.bf16.gmra.mxu1 %v7281_v18  ;;  %6549 = vmatmul.mubr.bf16.gmra.mxu0 %v7280_v42 }
 0x225   : > { %1729 = vst [vmem:[#allocation2 + $0x130] sm:$0xff] %v1678_v13  ;;  %v1217_v19 = vadd.f32 %v1166_v15, %v1068_v14  ;;  %6432 = vmatprep.mubr.msk.bf16.mxu1 %vm7447_vm0, %v7446_v0  ;;  %6552 = vmatprep.mubr.msk.bf16.mxu0 %vm7447_vm0, %v7446_v0 }
 0x226   : > { %v1628_v28 = vld [vmem:[#allocation2 + $0x138] sm:$0xff]  ;;  %v6194_v20 = vpop.f32.mrf.mxu1  ;;  %v6314_v21 = vpop.f32.mrf.mxu0 }
 0x227   : > { %1268 = vst [vmem:[#allocation2 + $0x149] sm:$0xff] %v1217_v19  ;;  %v1679_v23 = vadd.f32 %v1628_v28, %v1524_v17  ;;  %v1174_v20 = vld [vmem:[#allocation2 + $0x189] sm:$0xff] }
 0x228   : > { %v1071_v46 = vpop.f32.mrf.mxu1  ;;  %v1527_v25 = vpop.f32.mrf.mxu0 }
 0x229   : > { %1730 = vst [vmem:[#allocation2 + $0x138] sm:$0xff] %v1679_v23  ;;  %v1218_v26 = vadd.f32 %v1167_v24, %v1071_v46  ;;  %v7285_v23 = vld [vmem:[%s7579_s18 + $0xa0] sm:$0xff]  }
 0x22a   : > { %v1629_v27 = vld [vmem:[#allocation2 + $0x140] sm:$0xff]  ;;  %v6195_v34 = vpop.f32.mrf.mxu1  ;;  %v6315_v29 = vpop.f32.mrf.mxu0 }
 0x22b   : > { %1269 = vst [vmem:[#allocation2 + $0x151] sm:$0xff] %v1218_v26  ;;  %v1680_v30 = vadd.f32 %v1629_v27, %v1527_v25  ;;  %v1175_v29 = vld [vmem:[#allocation2 + $0x191] sm:$0xff] }
 0x22c   : > { %v1076_v31 = vpop.f32.mrf.mxu1  ;;  %v1532_v33 = vpop.f32.mrf.mxu0  ;;  %6433 = vmatmul.mubr.bf16.gmra.mxu1 %v7282_v35  ;;  %6553 = vmatmul.mubr.bf16.gmra.mxu0 %v7281_v18 }
 0x22d   : > { %1731 = vst [vmem:[#allocation2 + $0x140] sm:$0xff] %v1680_v30  ;;  %v1219_v37 = vadd.f32 %v1168_v32, %v1076_v31  ;;  %6436 = vmatprep.mubr.msk.bf16.mxu1 %vm7447_vm0, %v7446_v0  ;;  %6556 = vmatprep.mubr.msk.bf16.mxu0 %vm7447_vm0, %v7446_v0 }
 0x22e   : > { %v1630_v36 = vld [vmem:[#allocation2 + $0x148] sm:$0xff]  ;;  %v6198_v48 = vpop.f32.mrf.mxu1  ;;  %v6318_v39 = vpop.f32.mrf.mxu0 }
 0x22f   : > { %1270 = vst [vmem:[#allocation2 + $0x159] sm:$0xff] %v1219_v37  ;;  %v1681_v41 = vadd.f32 %v1630_v36, %v1532_v33  ;;  %v1176_v48 = vld [vmem:[#allocation2 + $0x199] sm:$0xff] }
 0x230   : > { %v1079_v43 = vpop.f32.mrf.mxu1  ;;  %v1535_v47 = vpop.f32.mrf.mxu0 }
 0x231   : > { %1732 = vst [vmem:[#allocation2 + $0x148] sm:$0xff] %v1681_v41  ;;  %v1220_v49 = vadd.f32 %v1169_v45, %v1079_v43  ;;  %v7286_v41 = vld [vmem:[%s7579_s18 + $0xa8] sm:$0xff]  }
 0x232   : > { %v1631_v52 = vld [vmem:[#allocation2 + $0x150] sm:$0xff]  ;;  %v6199_v38 = vpop.f32.mrf.mxu1  ;;  %v6319_v51 = vpop.f32.mrf.mxu0 }
 0x233   : > { %1271 = vst [vmem:[#allocation2 + $0x161] sm:$0xff] %v1220_v49  ;;  %v1682_v53 = vadd.f32 %v1631_v52, %v1535_v47  ;;  %v1177_v51 = vld [vmem:[#allocation2 + $0x1a1] sm:$0xff] }
 0x234   : > { %v1084_v54 = vpop.f32.mrf.mxu1  ;;  %v1540_v56 = vpop.f32.mrf.mxu0  ;;  %6437 = vmatmul.mubr.bf16.gmra.mxu1 %v7283_v57  ;;  %6557 = vmatmul.mubr.bf16.gmra.mxu0 %v7282_v35 }
 0x235   : > { %1733 = vst [vmem:[#allocation2 + $0x150] sm:$0xff] %v1682_v53  ;;  %v1221_v50 = vadd.f32 %v1170_v55, %v1084_v54  ;;  %6440 = vmatprep.mubr.msk.bf16.mxu1 %vm7447_vm0, %v7446_v0  ;;  %6560 = vmatprep.mubr.msk.bf16.mxu0 %vm7447_vm0, %v7446_v0 }
 0x236   : > { %v1632_v58 = vld [vmem:[#allocation2 + $0x158] sm:$0xff]  ;;  %v6202_v40 = vpop.f32.mrf.mxu1  ;;  %v6322_v59 = vpop.f32.mrf.mxu0 }
 0x237   : > { %1272 = vst [vmem:[#allocation2 + $0x169] sm:$0xff] %v1221_v50  ;;  %v1683_v10 = vadd.f32 %v1632_v58, %v1540_v56  ;;  %v1178_v40 = vld [vmem:[#allocation2 + $0x1a9] sm:$0x7f] }
 0x238   : > { %v1087_v60 = vpop.f32.mrf.mxu1  ;;  %v1543_v62 = vpop.f32.mrf.mxu0 }
 0x239   : > { %1734 = vst [vmem:[#allocation2 + $0x158] sm:$0xff] %v1683_v10  ;;  %v1222_v63 = vadd.f32 %v1171_v61, %v1087_v60  ;;  %v7287_v10 = vld [vmem:[%s7579_s18 + $0xb0] sm:$0xff]  }
 0x23a   : > { %v1633_v1 = vld [vmem:[#allocation2 + $0x160] sm:$0xff]  ;;  %v6203_v2 = vpop.f32.mrf.mxu1  ;;  %v6323_v42 = vpop.f32.mrf.mxu0 }
 0x23b   : > { %1273 = vst [vmem:[#allocation2 + $0x171] sm:$0xff] %v1222_v63  ;;  %v1684_v3 = vadd.f32 %v1633_v1, %v1543_v62 }
 0x23c   : > { %v1092_v16 = vpop.f32.mrf.mxu1  ;;  %v1548_v5 = vpop.f32.mrf.mxu0  ;;  %6441 = vmatmul.mubr.bf16.gmra.mxu1 %v7284_v6  ;;  %6561 = vmatmul.mubr.bf16.gmra.mxu0 %v7283_v57 }
 0x23d   : > { %1735 = vst [vmem:[#allocation2 + $0x160] sm:$0xff] %v1684_v3  ;;  %v1223_v7 = vadd.f32 %v1172_v4, %v1092_v16  ;;  %6444 = vmatprep.mubr.msk.bf16.mxu1 %vm7447_vm0, %v7446_v0  ;;  %6564 = vmatprep.mubr.msk.bf16.mxu0 %vm7447_vm0, %v7446_v0 }
 0x23e   : > { %v1634_v8 = vld [vmem:[#allocation2 + $0x168] sm:$0xff]  ;;  %v6206_v9 = vpop.f32.mrf.mxu1  ;;  %v6326_v44 = vpop.f32.mrf.mxu0 }
 0x23f   : > { %1274 = vst [vmem:[#allocation2 + $0x179] sm:$0xff] %v1223_v7  ;;  %v1685_v11 = vadd.f32 %v1634_v8, %v1548_v5  ;;  %v7288_v8 = vld [vmem:[%s7579_s18 + $0xb8] sm:$0xff]  }
 0x240   : > { %v1095_v22 = vpop.f32.mrf.mxu1  ;;  %v1551_v13 = vpop.f32.mrf.mxu0 }
 0x241   : > { %1736 = vst [vmem:[#allocation2 + $0x168] sm:$0xff] %v1685_v11  ;;  %v1224_v14 = vadd.f32 %v1173_v12, %v1095_v22 }
 0x242   : > { %v1635_v15 = vld [vmem:[#allocation2 + $0x170] sm:$0xff]  ;;  %v6207_v17 = vpop.f32.mrf.mxu1  ;;  %v6327_v18 = vpop.f32.mrf.mxu0 }
 0x243   : > { %1275 = vst [vmem:[#allocation2 + $0x181] sm:$0xff] %v1224_v14  ;;  %v1686_v19 = vadd.f32 %v1635_v15, %v1551_v13 }
 0x244   : > { %v1100_v28 = vpop.f32.mrf.mxu1  ;;  %v1556_v21 = vpop.f32.mrf.mxu0  ;;  %6445 = vmatmul.mubr.bf16.gmra.mxu1 %v7285_v23  ;;  %6565 = vmatmul.mubr.bf16.gmra.mxu0 %v7284_v6 }
 0x245   : > { %1737 = vst [vmem:[#allocation2 + $0x170] sm:$0xff] %v1686_v19  ;;  %v1225_v46 = vadd.f32 %v1174_v20, %v1100_v28  ;;  %6448 = vmatprep.mubr.msk.bf16.mxu1 %vm7447_vm0, %v7446_v0  ;;  %6568 = vmatprep.mubr.msk.bf16.mxu0 %vm7447_vm0, %v7446_v0  ;;  %v2057_v19 = vld [vmem:[#allocation2 + $0x17] sm:$0xff] }
 0x246   : > { %v1636_v24 = vld [vmem:[#allocation2 + $0x178] sm:$0xff]  ;;  %v6210_v25 = vpop.f32.mrf.mxu1  ;;  %v6330_v26 = vpop.f32.mrf.mxu0  ;;  %v7289_v28 = vld [vmem:[%s7579_s18 + $0xc0] sm:$0xff]  }
 0x247   : > { %1276 = vst [vmem:[#allocation2 + $0x189] sm:$0xff] %v1225_v46  ;;  %v1687_v27 = vadd.f32 %v1636_v24, %v1556_v21  ;;  %v2058_v25 = vld [vmem:[#allocation2 + $0x1f] sm:$0xff] }
 0x248   : > { %v1103_v34 = vpop.f32.mrf.mxu1  ;;  %v1559_v30 = vpop.f32.mrf.mxu0 }
 0x249   : > { %1738 = vst [vmem:[#allocation2 + $0x178] sm:$0xff] %v1687_v27  ;;  %v1226_v31 = vadd.f32 %v1175_v29, %v1103_v34 }
 0x24a   : > { %v1637_v32 = vld [vmem:[#allocation2 + $0x180] sm:$0xff]  ;;  %v6211_v33 = vpop.f32.mrf.mxu1  ;;  %v6331_v35 = vpop.f32.mrf.mxu0 }
 0x24b   : > { %1277 = vst [vmem:[#allocation2 + $0x191] sm:$0xff] %v1226_v31  ;;  %v1688_v37 = vadd.f32 %v1637_v32, %v1559_v30  ;;  %v2059_v30 = vld [vmem:[#allocation2 + $0x27] sm:$0xff]  ;;  %v7290_v31 = vld [vmem:[%s7579_s18 + $0xc8] sm:$0xff]  }
 0x24c   : > { %v1108_v36 = vpop.f32.mrf.mxu1  ;;  %v1564_v39 = vpop.f32.mrf.mxu0  ;;  %6449 = vmatmul.mubr.bf16.gmra.mxu1 %v7286_v41  ;;  %6569 = vmatmul.mubr.bf16.gmra.mxu0 %v7285_v23  ;;  %v2527_v33 = vld [vmem:[#allocation2 + $0x1] sm:$0xff] }
 0x24d   : > { %1739 = vst [vmem:[#allocation2 + $0x180] sm:$0xff] %v1688_v37  ;;  %v1227_v43 = vadd.f32 %v1176_v48, %v1108_v36  ;;  %6452 = vmatprep.mubr.msk.bf16.mxu1 %vm7447_vm0, %v7446_v0  ;;  %6572 = vmatprep.mubr.msk.bf16.mxu0 %vm7447_vm0, %v7446_v0 }
 0x24e   : > { %v1638_v45 = vld [vmem:[#allocation2 + $0x188] sm:$0xff]  ;;  %v6214_v47 = vpop.f32.mrf.mxu1  ;;  %v6334_v49 = vpop.f32.mrf.mxu0 }
 0x24f   : > { %1278 = vst [vmem:[#allocation2 + $0x199] sm:$0xff] %v1227_v43  ;;  %v1689_v52 = vadd.f32 %v1638_v45, %v1564_v39  ;;  %v2528_v45 = vld [vmem:[#allocation2 + $0x9] sm:$0xff] }
 0x250   : > { %v1111_v38 = vpop.f32.mrf.mxu1  ;;  %v1567_v53 = vpop.f32.mrf.mxu0 }
 0x251   : > { %1740 = vst [vmem:[#allocation2 + $0x188] sm:$0xff] %v1689_v52  ;;  %v1228_v54 = vadd.f32 %v1177_v51, %v1111_v38 }
 0x252   : > { %v1639_v55 = vld [vmem:[#allocation2 + $0x190] sm:$0xff]  ;;  %v6215_v56 = vpop.f32.mrf.mxu1  ;;  %v6335_v57 = vpop.f32.mrf.mxu0 }
 0x253   : > { %1279 = vst [vmem:[#allocation2 + $0x1a1] sm:$0xff] %v1228_v54  ;;  %v1690_v50 = vadd.f32 %v1639_v55, %v1567_v53  ;;  %v2061_v53 = vld [vmem:[#allocation2 + $0x37] sm:$0xff] }
 0x254   : > { %v1116_v58 = vpop.f32.mrf.mxu1  ;;  %v1572_v59 = vpop.f32.mrf.mxu0  ;;  %6453 = vmatmul.mubr.bf16.gmra.mxu1 %v7287_v10  ;;  %6573 = vmatmul.mubr.bf16.gmra.mxu0 %v7286_v41  ;;  %v2060_v41 = vld [vmem:[#allocation2 + $0x2f] sm:$0xff]  ;;  %v7291_v54 = vld [vmem:[%s7579_s18 + $0xd0] sm:$0xff]  }
 0x255   : > { %1741 = vst [vmem:[#allocation2 + $0x190] sm:$0xff] %v1690_v50  ;;  %v1229_v60 = vadd.f32 %v1178_v40, %v1116_v58  ;;  %6456 = vmatprep.mubr.msk.bf16.mxu1 %vm7447_vm0, %v7446_v0  ;;  %6576 = vmatprep.mubr.msk.bf16.mxu0 %vm7447_vm0, %v7446_v0 }
 0x256   : > { %v1640_v61 = vld [vmem:[#allocation2 + $0x198] sm:$0xff]  ;;  %v6218_v62 = vpop.f32.mrf.mxu1  ;;  %v6338_v63 = vpop.f32.mrf.mxu0 }
 0x257   : > { %1280 = vst [vmem:[#allocation2 + $0x1a9] sm:$0x7f] %v1229_v60  ;;  %v1691_v1 = vadd.f32 %v1640_v61, %v1572_v59 }
 0x258   : > { %v1119_v2 = vpop.f32.mrf.mxu1  ;;  %v1575_v42 = vpop.f32.mrf.mxu0 }
 0x259   : > { %1742 = vst [vmem:[#allocation2 + $0x198] sm:$0xff] %v1691_v1  ;;  %v7249_v1 = vld [vmem:[#allocation5 + $0x1f8] sm:$0xff]  }
 0x25a   : > { %v1641_v3 = vld [vmem:[#allocation2 + $0x1a0] sm:$0xff]  ;;  %v6219_v16 = vpop.f32.mrf.mxu1  ;;  %v6339_v4 = vpop.f32.mrf.mxu0 }
 0x25b   : > { %v1692_v5 = vadd.f32 %v1641_v3, %v1575_v42  ;;  %v2063_v16 = vld [vmem:[#allocation2 + $0x47] sm:$0xff] }
 0x25c   : > { %v1123_v6 = vpop.f32.mrf.mxu1  ;;  %v1580_v7 = vpop.f32.mrf.mxu0  ;;  %6457 = vmatmul.mubr.bf16.gmra.mxu1 %v7288_v8  ;;  %6577 = vmatmul.mubr.bf16.gmra.mxu0 %v7287_v10  ;;  %v2062_v10 = vld [vmem:[#allocation2 + $0x3f] sm:$0xff] }
 0x25d   : > { %1743 = vst [vmem:[#allocation2 + $0x1a0] sm:$0xff] %v1692_v5  ;;  %6460 = vmatprep.mubr.msk.bf16.mxu1 %vm7447_vm0, %v7446_v0  ;;  %6580 = vmatprep.mubr.msk.bf16.mxu0 %vm7447_vm0, %v7446_v0  ;;  %v7292_v6 = vld [vmem:[%s7579_s18] sm:$0xff]  }
 0x25e   : > { %v1642_v9 = vld [vmem:[#allocation2 + $0x1a8] sm:$0xff]  ;;  %v6222_v44 = vpop.f32.mrf.mxu1  ;;  %v6342_v11 = vpop.f32.mrf.mxu0 }
 0x25f   : > { %v1693_v22 = vadd.f32 %v1642_v9, %v1580_v7  ;;  %v7251_v9 = vld [vmem:[#allocation5 + $0x1f0] sm:$0xff]  }
 0x260   : > { %v1125_v12 = vpop.f32.mrf.mxu1  ;;  %v1583_v13 = vpop.f32.mrf.mxu0 }
 0x261   : > { %1744 = vst [vmem:[#allocation2 + $0x1a8] sm:$0xff] %v1693_v22  ;;  %v2064_v12 = vld [vmem:[#allocation2 + $0x4f] sm:$0xff] }
 0x262   : > { %v6223_v14 = vpop.f32.mrf.mxu1  ;;  %v6343_v15 = vpop.f32.mrf.mxu0 }
 0x264   : > { %v1587_v17 = vpop.f32.mrf.mxu0  ;;  %v1844_v18 = vpop.f32.mrf.mxu1  ;;  %6461 = vmatmul.mubr.bf16.gmra.mxu1 %v7289_v28  ;;  %6581 = vmatmul.mubr.bf16.gmra.mxu0 %v7288_v8 }
 0x265   : > { %v2109_v20 = vadd.f32 %v2057_v19, %v1844_v18  ;;  %6464 = vmatprep.mubr.msk.bf16.mxu1 %vm7447_vm0, %v7446_v0  ;;  %6584 = vmatprep.mubr.msk.bf16.mxu0 %vm7447_vm0, %v7446_v0  ;;  %v7250_v18 = vld [vmem:[#allocation5 + $0x238] sm:$0xff]  }
 0x266   : > { %v6346_v21 = vpop.f32.mrf.mxu0  ;;  %v6366_v23 = vpop.f32.mrf.mxu1 }
 0x267   : > { %2161 = vst [vmem:[#allocation2 + $0x17] sm:$0xff] %v2109_v20  ;;  %v7253_v20 = vld [vmem:[#allocation5 + $0x1e8] sm:$0xff]   ;;  %v2065_v23 = vld [vmem:[#allocation2 + $0x57] sm:$0xff] }
 0x268   : > { %v1589_v46 = vpop.f32.mrf.mxu0  ;;  %v1847_v24 = vpop.f32.mrf.mxu1 }
 0x269   : > { %v2110_v26 = vadd.f32 %v2058_v25, %v1847_v24  ;;  %v7293_v25 = vld [vmem:[%s7579_s18 + $0x8] sm:$0xff]  }
 0x26a   : > { %v6347_v27 = vpop.f32.mrf.mxu0  ;;  %v6367_v34 = vpop.f32.mrf.mxu1 }
 0x26b   : > { %2162 = vst [vmem:[#allocation2 + $0x1f] sm:$0xff] %v2110_v26  ;;  %v7252_v34 = vld [vmem:[#allocation5 + $0x230] sm:$0xff]  }
 0x26c   : > { %v1852_v29 = vpop.f32.mrf.mxu1  ;;  %6465 = vmatmul.mubr.bf16.gmra.mxu1 %v7290_v31  ;;  %v2312_v32 = vpop.f32.mrf.mxu0  ;;  %6585 = vmatmul.mubr.bf16.gmra.mxu0 %v7289_v28 }
 0x26d   : > { %v2111_v35 = vadd.f32 %v2059_v30, %v1852_v29  ;;  %v2581_v37 = vadd.f32 %v2527_v33, %v2312_v32  ;;  %6468 = vmatprep.mubr.msk.bf16.mxu1 %vm7447_vm0, %v7446_v0  ;;  %6588 = vmatprep.mubr.msk.bf16.mxu0 %vm7447_vm0, %v7446_v0  ;;  %v2066_v33 = vld [vmem:[#allocation2 + $0x5f] sm:$0xff] }
 0x26e   : > { %v6370_v36 = vpop.f32.mrf.mxu1  ;;  %v6490_v48 = vpop.f32.mrf.mxu0  ;;  %v2529_v56 = vld [vmem:[#allocation2 + $0x11] sm:$0xff] }
 0x26f   : > { %2163 = vst [vmem:[#allocation2 + $0x27] sm:$0xff] %v2111_v35  ;;  %2635 = vst [vmem:[#allocation2 + $0x1] sm:$0xff] %v2581_v37 }
 0x270   : > { %v1855_v39 = vpop.f32.mrf.mxu1  ;;  %v2315_v43 = vpop.f32.mrf.mxu0 }
 0x271   : > { %v2112_v47 = vadd.f32 %v2060_v41, %v1855_v39  ;;  %v2582_v49 = vadd.f32 %v2528_v45, %v2315_v43  ;;  %v7254_v43 = vld [vmem:[#allocation5 + $0x228] sm:$0xff]   ;;  %v7257_v45 = vld [vmem:[#allocation5 + $0x1d8] sm:$0xff]  }
 0x272   : > { %v6371_v52 = vpop.f32.mrf.mxu1  ;;  %v6491_v38 = vpop.f32.mrf.mxu0  ;;  %v2530_v61 = vld [vmem:[#allocation2 + $0x19] sm:$0xff] }
 0x273   : > { %2164 = vst [vmem:[#allocation2 + $0x2f] sm:$0xff] %v2112_v47  ;;  %2636 = vst [vmem:[#allocation2 + $0x9] sm:$0xff] %v2582_v49  ;;  %v2067_v49 = vld [vmem:[#allocation2 + $0x67] sm:$0xff] }
 0x274   : > { %v1860_v51 = vpop.f32.mrf.mxu1  ;;  %6469 = vmatmul.mubr.bf16.gmra.mxu1 %v7291_v54  ;;  %v2320_v55 = vpop.f32.mrf.mxu0  ;;  %6589 = vmatmul.mubr.bf16.gmra.mxu0 %v7290_v31  ;;  %v7255_v31 = vld [vmem:[#allocation5 + $0x1e0] sm:$0xff]  }
 0x275   : > { %v2113_v57 = vadd.f32 %v2061_v53, %v1860_v51  ;;  %v2583_v50 = vadd.f32 %v2529_v56, %v2320_v55  ;;  %6592 = vmatprep.mubr.msk.bf16.mxu0 %vm7447_vm0, %v7446_v0  ;;  %6612 = vmatprep.mubr.msk.bf16.mxu1 %vm7447_vm0, %v7446_v0  ;;  %v7294_v51 = vld [vmem:[%s7579_s18 + $0x10] sm:$0xff]  }
 0x276   : > { %v6374_v58 = vpop.f32.mrf.mxu1  ;;  %v6494_v40 = vpop.f32.mrf.mxu0  ;;  %v2531_v5 = vld [vmem:[#allocation2 + $0x21] sm:$0xff] }
 0x277   : > { %2165 = vst [vmem:[#allocation2 + $0x37] sm:$0xff] %v2113_v57  ;;  %2637 = vst [vmem:[#allocation2 + $0x11] sm:$0xff] %v2583_v50  ;;  %v7256_v57 = vld [vmem:[#allocation5 + $0x220] sm:$0xff]   ;;  %v7259_v50 = vld [vmem:[#allocation5 + $0x1d0] sm:$0xff]  }
 0x278   : > { %v1863_v59 = vpop.f32.mrf.mxu1  ;;  %v2323_v60 = vpop.f32.mrf.mxu0  ;;  %v2068_v40 = vld [vmem:[#allocation2 + $0x6f] sm:$0xff] }
 0x279   : > { %v2114_v62 = vadd.f32 %v2062_v10, %v1863_v59  ;;  %v2584_v63 = vadd.f32 %v2530_v61, %v2323_v60 }
 0x27a   : > { %v6375_v2 = vpop.f32.mrf.mxu1  ;;  %v6495_v42 = vpop.f32.mrf.mxu0  ;;  %v2532_v14 = vld [vmem:[#allocation2 + $0x29] sm:$0xff] }
 0x27b   : > { %2166 = vst [vmem:[#allocation2 + $0x3f] sm:$0xff] %v2114_v62  ;;  %2638 = vst [vmem:[#allocation2 + $0x19] sm:$0xff] %v2584_v63  ;;  %v2069_v42 = vld [vmem:[#allocation2 + $0x77] sm:$0xff] }
 0x27c   : > { %v1868_v3 = vpop.f32.mrf.mxu1  ;;  %v2328_v4 = vpop.f32.mrf.mxu0  ;;  %6593 = vmatmul.mubr.bf16.gmra.mxu0 %v7291_v54  ;;  %6613 = vmatmul.mubr.bf16.vlgmr.msra.gmra.mxu1 %v7292_v6 }
 0x27d   : > { %v2115_v7 = vadd.f32 %v2063_v16, %v1868_v3  ;;  %v2585_v8 = vadd.f32 %v2531_v5, %v2328_v4  ;;  %6845 = vmatpush3.bf16.msra.mxu1 %v7249_v1  ;;  %6616 = vmatprep.mubr.msk.bf16.mxu1 %vm7447_vm0, %v7446_v0  ;;  %v7258_v1 = vld [vmem:[#allocation5 + $0x218] sm:$0xff]   ;;  %v7295_v4 = vld [vmem:[%s7579_s18 + $0x18] sm:$0xff]  }
 0x27e   : > { %v6378_v44 = vpop.f32.mrf.mxu1  ;;  %v6498_v11 = vpop.f32.mrf.mxu0  ;;  %6736 = vmatprep.mubr.msk.bf16.mxu0 %vm7447_vm0, %v7446_v0  ;;  %6846 = vmatprep.subr.bf16.mxu1 %v7446_v0  ;;  %v2533_v24 = vld [vmem:[#allocation2 + $0x31] sm:$0xff] }
 0x27f   : > { %2167 = vst [vmem:[#allocation2 + $0x47] sm:$0xff] %v2115_v7  ;;  %2639 = vst [vmem:[#allocation2 + $0x21] sm:$0xff] %v2585_v8  ;;  %v2070_v11 = vld [vmem:[#allocation2 + $0x7f] sm:$0xff] }
 0x280   : > { %v1871_v22 = vpop.f32.mrf.mxu1  ;;  %v2331_v13 = vpop.f32.mrf.mxu0 }
 0x281   : > { %v2116_v15 = vadd.f32 %v2064_v12, %v1871_v22  ;;  %v2586_v17 = vadd.f32 %v2532_v14, %v2331_v13  ;;  %6847 = vmatpush3.bf16.msra.mxu1 %v7251_v9  ;;  %v7260_v9 = vld [vmem:[#allocation5 + $0x210] sm:$0xff]  }
 0x282   : > { %v6379_v19 = vpop.f32.mrf.mxu1  ;;  %v6499_v28 = vpop.f32.mrf.mxu0  ;;  %6848 = vmatprep.subr.bf16.mxu1 %v7446_v0  ;;  %v2534_v37 = vld [vmem:[#allocation2 + $0x39] sm:$0xff] }
 0x283   : > { %2168 = vst [vmem:[#allocation2 + $0x4f] sm:$0xff] %v2116_v15  ;;  %2640 = vst [vmem:[#allocation2 + $0x29] sm:$0xff] %v2586_v17  ;;  %v2071_v19 = vld [vmem:[#allocation2 + $0x87] sm:$0xff] }
 0x284   : > { %v1876_v21 = vpop.f32.mrf.mxu1  ;;  %v2336_v46 = vpop.f32.mrf.mxu0  ;;  %6617 = vmatmul.mubr.bf16.gmra.mxu1 %v7293_v25  ;;  %6737 = vmatmul.mubr.bf16.vlgmr.msra.gmra.mxu0 %v7292_v6 }
 0x285   : > { %v2117_v26 = vadd.f32 %v2065_v23, %v1876_v21  ;;  %v2587_v27 = vadd.f32 %v2533_v24, %v2336_v46  ;;  %6969 = vmatpush3.bf16.msra.mxu0 %v7250_v18  ;;  %6620 = vmatprep.mubr.msk.bf16.mxu1 %vm7447_vm0, %v7446_v0  ;;  %v7296_v21 = vld [vmem:[%s7579_s18 + $0x20] sm:$0xff]  }
 0x286   : > { %v6382_v29 = vpop.f32.mrf.mxu1  ;;  %v6502_v30 = vpop.f32.mrf.mxu0  ;;  %6740 = vmatprep.mubr.msk.bf16.mxu0 %vm7447_vm0, %v7446_v0  ;;  %6970 = vmatprep.subr.bf16.mxu0 %v7446_v0  ;;  %v2535_v38 = vld [vmem:[#allocation2 + $0x41] sm:$0xff] }
 0x287   : > { %2169 = vst [vmem:[#allocation2 + $0x57] sm:$0xff] %v2117_v26  ;;  %2641 = vst [vmem:[#allocation2 + $0x31] sm:$0xff] %v2587_v27  ;;  %6849 = vmatpush3.bf16.msra.mxu1 %v7253_v20  ;;  %v2072_v27 = vld [vmem:[#allocation2 + $0x8f] sm:$0xff] }
 0x288   : > { %v1879_v32 = vpop.f32.mrf.mxu1  ;;  %v2339_v35 = vpop.f32.mrf.mxu0  ;;  %6850 = vmatprep.subr.bf16.mxu1 %v7446_v0 }
 0x289   : > { %v2118_v36 = vadd.f32 %v2066_v33, %v1879_v32  ;;  %v2588_v48 = vadd.f32 %v2534_v37, %v2339_v35  ;;  %6971 = vmatpush3.bf16.msra.mxu0 %v7252_v34  ;;  %v7261_v35 = vld [vmem:[#allocation5 + $0x1c8] sm:$0xff]  }
 0x28a   : > { %v6383_v39 = vpop.f32.mrf.mxu1  ;;  %v6503_v41 = vpop.f32.mrf.mxu0  ;;  %6972 = vmatprep.subr.bf16.mxu0 %v7446_v0  ;;  %v2536_v10 = vld [vmem:[#allocation2 + $0x49] sm:$0xff] }
 0x28b   : > { %2170 = vst [vmem:[#allocation2 + $0x5f] sm:$0xff] %v2118_v36  ;;  %2642 = vst [vmem:[#allocation2 + $0x39] sm:$0xff] %v2588_v48  ;;  %6851 = vmatpush3.bf16.msra.mxu1 %v7255_v31  ;;  %v2073_v36 = vld [vmem:[#allocation2 + $0x97] sm:$0xff] }
 0x28c   : > { %v1884_v47 = vpop.f32.mrf.mxu1  ;;  %v2344_v52 = vpop.f32.mrf.mxu0  ;;  %6621 = vmatmul.mubr.bf16.gmra.mxu1 %v7294_v51  ;;  %6741 = vmatmul.mubr.bf16.gmra.mxu0 %v7293_v25  ;;  %v7297_v41 = vld [vmem:[%s7579_s18 + $0x28] sm:$0xff]  }
 0x28d   : > { %v2119_v53 = vadd.f32 %v2067_v49, %v1884_v47  ;;  %v2589_v54 = vadd.f32 %v2535_v38, %v2344_v52  ;;  %6624 = vmatprep.mubr.msk.bf16.mxu1 %vm7447_vm0, %v7446_v0  ;;  %6744 = vmatprep.mubr.msk.bf16.mxu0 %vm7447_vm0, %v7446_v0  ;;  %v7262_v52 = vld [vmem:[#allocation5 + $0x208] sm:$0xff]  }
 0x28e   : > { %v6386_v55 = vpop.f32.mrf.mxu1  ;;  %v6506_v56 = vpop.f32.mrf.mxu0  ;;  %6973 = vmatpush3.bf16.msra.mxu0 %v7254_v43  ;;  %6852 = vmatprep.subr.bf16.mxu1 %v7446_v0  ;;  %v2537_v16 = vld [vmem:[#allocation2 + $0x51] sm:$0xff] }
 0x28f   : > { %2171 = vst [vmem:[#allocation2 + $0x67] sm:$0xff] %v2119_v53  ;;  %2643 = vst [vmem:[#allocation2 + $0x41] sm:$0xff] %v2589_v54  ;;  %6974 = vmatprep.subr.bf16.mxu0 %v7446_v0  ;;  %6853 = vmatpush3.bf16.msra.mxu1 %v7257_v45 }
 0x290   : > { %v1887_v58 = vpop.f32.mrf.mxu1  ;;  %v2347_v59 = vpop.f32.mrf.mxu0  ;;  %6854 = vmatprep.subr.bf16.mxu1 %v7446_v0 }
 0x291   : > { %v2120_v60 = vadd.f32 %v2068_v40, %v1887_v58  ;;  %v2590_v61 = vadd.f32 %v2536_v10, %v2347_v59  ;;  %v2075_v40 = vld [vmem:[#allocation2 + $0xa7] sm:$0xff] }
 0x292   : > { %v6387_v62 = vpop.f32.mrf.mxu1  ;;  %v6507_v63 = vpop.f32.mrf.mxu0  ;;  %6975 = vmatpush3.bf16.msra.mxu0 %v7256_v57  ;;  %v2538_v12 = vld [vmem:[#allocation2 + $0x59] sm:$0xff] }
 0x293   : > { %2172 = vst [vmem:[#allocation2 + $0x6f] sm:$0xff] %v2120_v60  ;;  %2644 = vst [vmem:[#allocation2 + $0x49] sm:$0xff] %v2590_v61  ;;  %6976 = vmatprep.subr.bf16.mxu0 %v7446_v0  ;;  %6855 = vmatpush3.bf16.msra.mxu1 %v7259_v50  ;;  %v7298_v60 = vld [vmem:[%s7579_s18 + $0x30] sm:$0xff]  }
 0x294   : > { %v1892_v2 = vpop.f32.mrf.mxu1  ;;  %v2352_v3 = vpop.f32.mrf.mxu0  ;;  %6625 = vmatmul.mubr.bf16.gmra.mxu1 %v7295_v4  ;;  %6745 = vmatmul.mubr.bf16.gmra.mxu0 %v7294_v51  ;;  %v2074_v51 = vld [vmem:[#allocation2 + $0x9f] sm:$0xff] }
 0x295   : > { %v2121_v5 = vadd.f32 %v2069_v42, %v1892_v2  ;;  %v2591_v6 = vadd.f32 %v2537_v16, %v2352_v3  ;;  %6628 = vmatprep.mubr.msk.bf16.mxu1 %vm7447_vm0, %v7446_v0  ;;  %6748 = vmatprep.mubr.msk.bf16.mxu0 %vm7447_vm0, %v7446_v0  ;;  %v2076_v42 = vld [vmem:[#allocation2 + $0xaf] sm:$0xff] }
 0x296   : > { %v6390_v7 = vpop.f32.mrf.mxu1  ;;  %v6510_v8 = vpop.f32.mrf.mxu0  ;;  %6977 = vmatpush3.bf16.msra.mxu0 %v7258_v1  ;;  %6856 = vmatprep.subr.bf16.mxu1 %v7446_v0  ;;  %v2539_v20 = vld [vmem:[#allocation2 + $0x61] sm:$0xff] }
 0x297   : > { %2173 = vst [vmem:[#allocation2 + $0x77] sm:$0xff] %v2121_v5  ;;  %2645 = vst [vmem:[#allocation2 + $0x51] sm:$0xff] %v2591_v6  ;;  %6978 = vmatprep.subr.bf16.mxu0 %v7446_v0  ;;  %6857 = vmatpush3.bf16.msra.mxu1 %v7261_v35 }
 0x298   : > { %v1895_v44 = vpop.f32.mrf.mxu1  ;;  %v2355_v22 = vpop.f32.mrf.mxu0  ;;  %6858 = vmatprep.subr.bf16.mxu1 %v7446_v0 }
 0x299   : > { %v2122_v13 = vadd.f32 %v2070_v11, %v1895_v44  ;;  %v2592_v14 = vadd.f32 %v2538_v12, %v2355_v22  ;;  %v7299_v22 = vld [vmem:[%s7579_s18 + $0x38] sm:$0xff]  }
 0x29a   : > { %v6391_v15 = vpop.f32.mrf.mxu1  ;;  %v6511_v17 = vpop.f32.mrf.mxu0  ;;  %6979 = vmatpush3.bf16.msra.mxu0 %v7260_v9  ;;  %v2540_v29 = vld [vmem:[#allocation2 + $0x69] sm:$0xff]  ;;  %v2077_v9 = vld [vmem:[#allocation2 + $0xb7] sm:$0xff] }
 0x29b   : > { %2174 = vst [vmem:[#allocation2 + $0x7f] sm:$0xff] %v2122_v13  ;;  %2646 = vst [vmem:[#allocation2 + $0x59] sm:$0xff] %v2592_v14  ;;  %6980 = vmatprep.subr.bf16.mxu0 %v7446_v0 }
 0x29c   : > { %v1900_v18 = vpop.f32.mrf.mxu1  ;;  %v2360_v28 = vpop.f32.mrf.mxu0  ;;  %6629 = vmatmul.mubr.bf16.gmra.mxu1 %v7296_v21  ;;  %6749 = vmatmul.mubr.bf16.gmra.mxu0 %v7295_v4 }
 0x29d   : > { %v2123_v23 = vadd.f32 %v2071_v19, %v1900_v18  ;;  %v2593_v46 = vadd.f32 %v2539_v20, %v2360_v28  ;;  %6632 = vmatprep.mubr.msk.bf16.mxu1 %vm7447_vm0, %v7446_v0  ;;  %6752 = vmatprep.mubr.msk.bf16.mxu0 %vm7447_vm0, %v7446_v0  ;;  %v2078_v18 = vld [vmem:[#allocation2 + $0xbf] sm:$0xff] }
 0x29e   : > { %v6394_v24 = vpop.f32.mrf.mxu1  ;;  %v6514_v25 = vpop.f32.mrf.mxu0  ;;  %v2541_v39 = vld [vmem:[#allocation2 + $0x71] sm:$0xff]  ;;  %6981 = vmatpush3.bf16.msra.mxu0 %v7262_v52 }
 0x29f   : > { %2175 = vst [vmem:[#allocation2 + $0x87] sm:$0xff] %v2123_v23  ;;  %2647 = vst [vmem:[#allocation2 + $0x61] sm:$0xff] %v2593_v46  ;;  %6982 = vmatprep.subr.bf16.mxu0 %v7446_v0  ;;  %v7263_v24 = vld [vmem:[#allocation5 + $0x1c0] sm:$0xff]  }
 0x2a0   : > { %v1903_v26 = vpop.f32.mrf.mxu1  ;;  %v2363_v34 = vpop.f32.mrf.mxu0  ;;  %6859 = vmatpush3.bf16.msra.mxu1 %v7263_v24  ;;  %v2086_v24 = vld [vmem:[#allocation2 + $0xff] sm:$0xff] }
 0x2a1   : > { %v2124_v30 = vadd.f32 %v2072_v27, %v1903_v26  ;;  %v2594_v31 = vadd.f32 %v2540_v29, %v2363_v34  ;;  %v2079_v26 = vld [vmem:[#allocation2 + $0xc7] sm:$0xff] }
 0x2a2   : > { %v6395_v32 = vpop.f32.mrf.mxu1  ;;  %v6515_v33 = vpop.f32.mrf.mxu0  ;;  %v2542_v54 = vld [vmem:[#allocation2 + $0x79] sm:$0xff]  ;;  %v7300_v29 = vld [vmem:[%s7579_s18 + $0x40] sm:$0xff]  }
 0x2a3   : > { %2176 = vst [vmem:[#allocation2 + $0x8f] sm:$0xff] %v2124_v30  ;;  %2648 = vst [vmem:[#allocation2 + $0x69] sm:$0xff] %v2594_v31 }
 0x2a4   : > { %v1908_v37 = vpop.f32.mrf.mxu1  ;;  %v2368_v48 = vpop.f32.mrf.mxu0  ;;  %6633 = vmatmul.mubr.bf16.gmra.mxu1 %v7297_v41  ;;  %6753 = vmatmul.mubr.bf16.gmra.mxu0 %v7296_v21 }
 0x2a5   : > { %v2125_v43 = vadd.f32 %v2073_v36, %v1908_v37  ;;  %v2595_v45 = vadd.f32 %v2541_v39, %v2368_v48  ;;  %6636 = vmatprep.mubr.msk.bf16.mxu1 %vm7447_vm0, %v7446_v0  ;;  %6756 = vmatprep.mubr.msk.bf16.mxu0 %vm7447_vm0, %v7446_v0  ;;  %v2080_v37 = vld [vmem:[#allocation2 + $0xcf] sm:$0xff] }
 0x2a6   : > { %v6398_v47 = vpop.f32.mrf.mxu1  ;;  %v6518_v49 = vpop.f32.mrf.mxu0  ;;  %v2543_v10 = vld [vmem:[#allocation2 + $0x81] sm:$0xff] }
 0x2a7   : > { %2177 = vst [vmem:[#allocation2 + $0x97] sm:$0xff] %v2125_v43  ;;  %2649 = vst [vmem:[#allocation2 + $0x71] sm:$0xff] %v2595_v45  ;;  %v2081_v49 = vld [vmem:[#allocation2 + $0xd7] sm:$0xff] }
 0x2a8   : > { %v1911_v38 = vpop.f32.mrf.mxu1  ;;  %v2371_v53 = vpop.f32.mrf.mxu0 }
 0x2a9   : > { %v2126_v55 = vadd.f32 %v2074_v51, %v1911_v38  ;;  %v2596_v56 = vadd.f32 %v2542_v54, %v2371_v53  ;;  %v7301_v51 = vld [vmem:[%s7579_s18 + $0x48] sm:$0xff]   ;;  %v7264_v53 = vld [vmem:[#allocation5 + $0x200] sm:$0xff]  }
 0x2aa   : > { %v6399_v57 = vpop.f32.mrf.mxu1  ;;  %v6519_v50 = vpop.f32.mrf.mxu0  ;;  %v2544_v16 = vld [vmem:[#allocation2 + $0x89] sm:$0xff]  ;;  %6983 = vmatpush3.bf16.msra.mxu0 %v7264_v53 }
 0x2ab   : > { %2178 = vst [vmem:[#allocation2 + $0x9f] sm:$0xff] %v2126_v55  ;;  %2650 = vst [vmem:[#allocation2 + $0x79] sm:$0xff] %v2596_v56 }
 0x2ac   : > { %v1916_v58 = vpop.f32.mrf.mxu1  ;;  %v2376_v59 = vpop.f32.mrf.mxu0  ;;  %6637 = vmatmul.mubr.bf16.gmra.mxu1 %v7298_v60  ;;  %6757 = vmatmul.mubr.bf16.gmra.mxu0 %v7297_v41 }
 0x2ad   : > { %v2127_v61 = vadd.f32 %v2075_v40, %v1916_v58  ;;  %v2597_v62 = vadd.f32 %v2543_v10, %v2376_v59  ;;  %6640 = vmatprep.mubr.msk.bf16.mxu1 %vm7447_vm0, %v7446_v0  ;;  %6760 = vmatprep.mubr.msk.bf16.mxu0 %vm7447_vm0, %v7446_v0  ;;  %v2082_v58 = vld [vmem:[#allocation2 + $0xdf] sm:$0xff] }
 0x2ae   : > { %v6402_v63 = vpop.f32.mrf.mxu1  ;;  %v6522_v1 = vpop.f32.mrf.mxu0  ;;  %v2545_v11 = vld [vmem:[#allocation2 + $0x91] sm:$0xff] }
 0x2af   : > { %2179 = vst [vmem:[#allocation2 + $0xa7] sm:$0xff] %v2127_v61  ;;  %2651 = vst [vmem:[#allocation2 + $0x81] sm:$0xff] %v2597_v62  ;;  %v2083_v1 = vld [vmem:[#allocation2 + $0xe7] sm:$0xff] }
 0x2b0   : > { %v1919_v2 = vpop.f32.mrf.mxu1  ;;  %v2379_v3 = vpop.f32.mrf.mxu0 }
 0x2b1   : > { %v2128_v4 = vadd.f32 %v2076_v42, %v1919_v2  ;;  %v2598_v5 = vadd.f32 %v2544_v16, %v2379_v3  ;;  %v7302_v3 = vld [vmem:[%s7579_s18 + $0x50] sm:$0xff]  }
 0x2b2   : > { %v6403_v6 = vpop.f32.mrf.mxu1  ;;  %v6523_v7 = vpop.f32.mrf.mxu0  ;;  %v2546_v28 = vld [vmem:[#allocation2 + $0x99] sm:$0xff] }
 0x2b3   : > { %2180 = vst [vmem:[#allocation2 + $0xaf] sm:$0xff] %v2128_v4  ;;  %2652 = vst [vmem:[#allocation2 + $0x89] sm:$0xff] %v2598_v5 }
 0x2b4   : > { %v1924_v8 = vpop.f32.mrf.mxu1  ;;  %v2384_v44 = vpop.f32.mrf.mxu0  ;;  %6641 = vmatmul.mubr.bf16.gmra.mxu1 %v7299_v22  ;;  %6761 = vmatmul.mubr.bf16.gmra.mxu0 %v7298_v60 }
 0x2b5   : > { %v2129_v12 = vadd.f32 %v2077_v9, %v1924_v8  ;;  %v2599_v13 = vadd.f32 %v2545_v11, %v2384_v44  ;;  %6644 = vmatprep.mubr.msk.bf16.mxu1 %vm7447_vm0, %v7446_v0  ;;  %6764 = vmatprep.mubr.msk.bf16.mxu0 %vm7447_vm0, %v7446_v0  ;;  %v2084_v8 = vld [vmem:[#allocation2 + $0xef] sm:$0xff] }
 0x2b6   : > { %v6406_v14 = vpop.f32.mrf.mxu1  ;;  %v6526_v15 = vpop.f32.mrf.mxu0  ;;  %v2547_v34 = vld [vmem:[#allocation2 + $0xa1] sm:$0xff] }
 0x2b7   : > { %2181 = vst [vmem:[#allocation2 + $0xb7] sm:$0xff] %v2129_v12  ;;  %2653 = vst [vmem:[#allocation2 + $0x91] sm:$0xff] %v2599_v13  ;;  %v2085_v15 = vld [vmem:[#allocation2 + $0xf7] sm:$0xff] }
 0x2b8   : > { %v1927_v17 = vpop.f32.mrf.mxu1  ;;  %v2387_v19 = vpop.f32.mrf.mxu0 }
 0x2b9   : > { %v2130_v20 = vadd.f32 %v2078_v18, %v1927_v17  ;;  %v2600_v21 = vadd.f32 %v2546_v28, %v2387_v19  ;;  %v7303_v19 = vld [vmem:[%s7579_s18 + $0x58] sm:$0xff]  }
 0x2ba   : > { %v6407_v23 = vpop.f32.mrf.mxu1  ;;  %v6527_v46 = vpop.f32.mrf.mxu0  ;;  %v2548_v48 = vld [vmem:[#allocation2 + $0xa9] sm:$0xff] }
 0x2bb   : > { %2182 = vst [vmem:[#allocation2 + $0xbf] sm:$0xff] %v2130_v20  ;;  %2654 = vst [vmem:[#allocation2 + $0x99] sm:$0xff] %v2600_v21 }
 0x2bc   : > { %v1932_v25 = vpop.f32.mrf.mxu1  ;;  %v2392_v27 = vpop.f32.mrf.mxu0  ;;  %6645 = vmatmul.mubr.bf16.gmra.mxu1 %v7300_v29  ;;  %6765 = vmatmul.mubr.bf16.gmra.mxu0 %v7299_v22 }
 0x2bd   : > { %v2131_v30 = vadd.f32 %v2079_v26, %v1932_v25  ;;  %v2601_v31 = vadd.f32 %v2547_v34, %v2392_v27  ;;  %6648 = vmatprep.mubr.msk.bf16.mxu1 %vm7447_vm0, %v7446_v0  ;;  %6768 = vmatprep.mubr.msk.bf16.mxu0 %vm7447_vm0, %v7446_v0 }
 0x2be   : > { %v6410_v32 = vpop.f32.mrf.mxu1  ;;  %v6530_v33 = vpop.f32.mrf.mxu0  ;;  %v2549_v38 = vld [vmem:[#allocation2 + $0xb1] sm:$0xff] }
 0x2bf   : > { %2183 = vst [vmem:[#allocation2 + $0xc7] sm:$0xff] %v2131_v30  ;;  %2655 = vst [vmem:[#allocation2 + $0xa1] sm:$0xff] %v2601_v31  ;;  %v2087_v32 = vld [vmem:[#allocation2 + $0x107] sm:$0xff] }
 0x2c0   : > { %v1935_v35 = vpop.f32.mrf.mxu1  ;;  %v2395_v36 = vpop.f32.mrf.mxu0 }
 0x2c1   : > { %v2132_v39 = vadd.f32 %v2080_v37, %v1935_v35  ;;  %v2602_v41 = vadd.f32 %v2548_v48, %v2395_v36  ;;  %v7304_v37 = vld [vmem:[%s7579_s18 + $0x60] sm:$0xff]  }
 0x2c2   : > { %v6411_v43 = vpop.f32.mrf.mxu1  ;;  %v6531_v45 = vpop.f32.mrf.mxu0  ;;  %v2550_v59 = vld [vmem:[#allocation2 + $0xb9] sm:$0xff] }
 0x2c3   : > { %2184 = vst [vmem:[#allocation2 + $0xcf] sm:$0xff] %v2132_v39  ;;  %2656 = vst [vmem:[#allocation2 + $0xa9] sm:$0xff] %v2602_v41  ;;  %v2088_v45 = vld [vmem:[#allocation2 + $0x10f] sm:$0xff] }
 0x2c4   : > { %v1940_v47 = vpop.f32.mrf.mxu1  ;;  %v2400_v52 = vpop.f32.mrf.mxu0  ;;  %6649 = vmatmul.mubr.bf16.gmra.mxu1 %v7301_v51  ;;  %6769 = vmatmul.mubr.bf16.gmra.mxu0 %v7300_v29 }
 0x2c5   : > { %v2133_v54 = vadd.f32 %v2081_v49, %v1940_v47  ;;  %v2603_v55 = vadd.f32 %v2549_v38, %v2400_v52  ;;  %6652 = vmatprep.mubr.msk.bf16.mxu1 %vm7447_vm0, %v7446_v0  ;;  %6772 = vmatprep.mubr.msk.bf16.mxu0 %vm7447_vm0, %v7446_v0 }
 0x2c6   : > { %v6414_v56 = vpop.f32.mrf.mxu1  ;;  %v6534_v57 = vpop.f32.mrf.mxu0  ;;  %v2551_v42 = vld [vmem:[#allocation2 + $0xc1] sm:$0xff] }
 0x2c7   : > { %2185 = vst [vmem:[#allocation2 + $0xd7] sm:$0xff] %v2133_v54  ;;  %2657 = vst [vmem:[#allocation2 + $0xb1] sm:$0xff] %v2603_v55  ;;  %v2089_v55 = vld [vmem:[#allocation2 + $0x117] sm:$0xff] }
 0x2c8   : > { %v1943_v50 = vpop.f32.mrf.mxu1  ;;  %v2403_v40 = vpop.f32.mrf.mxu0 }
 0x2c9   : > { %v2134_v10 = vadd.f32 %v2082_v58, %v1943_v50  ;;  %v2604_v60 = vadd.f32 %v2550_v59, %v2403_v40  ;;  %v7305_v50 = vld [vmem:[%s7579_s18 + $0x68] sm:$0xff]  }
 0x2ca   : > { %v6415_v61 = vpop.f32.mrf.mxu1  ;;  %v6535_v62 = vpop.f32.mrf.mxu0  ;;  %v2552_v44 = vld [vmem:[#allocation2 + $0xc9] sm:$0xff] }
 0x2cb   : > { %2186 = vst [vmem:[#allocation2 + $0xdf] sm:$0xff] %v2134_v10  ;;  %2658 = vst [vmem:[#allocation2 + $0xb9] sm:$0xff] %v2604_v60  ;;  %v2090_v61 = vld [vmem:[#allocation2 + $0x11f] sm:$0xff] }
 0x2cc   : > { %v1948_v63 = vpop.f32.mrf.mxu1  ;;  %v2408_v2 = vpop.f32.mrf.mxu0  ;;  %6653 = vmatmul.mubr.bf16.gmra.mxu1 %v7302_v3  ;;  %6773 = vmatmul.mubr.bf16.gmra.mxu0 %v7301_v51 }
 0x2cd   : > { %v2135_v16 = vadd.f32 %v2083_v1, %v1948_v63  ;;  %v2605_v4 = vadd.f32 %v2551_v42, %v2408_v2  ;;  %6656 = vmatprep.mubr.msk.bf16.mxu1 %vm7447_vm0, %v7446_v0  ;;  %6776 = vmatprep.mubr.msk.bf16.mxu0 %vm7447_vm0, %v7446_v0 }
 0x2ce   : > { %v6418_v5 = vpop.f32.mrf.mxu1  ;;  %v6538_v6 = vpop.f32.mrf.mxu0  ;;  %v2553_v18 = vld [vmem:[#allocation2 + $0xd1] sm:$0xff] }
 0x2cf   : > { %2187 = vst [vmem:[#allocation2 + $0xe7] sm:$0xff] %v2135_v16  ;;  %2659 = vst [vmem:[#allocation2 + $0xc1] sm:$0xff] %v2605_v4  ;;  %v2091_v4 = vld [vmem:[#allocation2 + $0x127] sm:$0xff] }
 0x2d0   : > { %v1951_v7 = vpop.f32.mrf.mxu1  ;;  %v2411_v9 = vpop.f32.mrf.mxu0 }
 0x2d1   : > { %v2136_v11 = vadd.f32 %v2084_v8, %v1951_v7  ;;  %v2606_v22 = vadd.f32 %v2552_v44, %v2411_v9  ;;  %v7306_v7 = vld [vmem:[%s7579_s18 + $0x70] sm:$0xff]  }
 0x2d2   : > { %v6419_v12 = vpop.f32.mrf.mxu1  ;;  %v6539_v13 = vpop.f32.mrf.mxu0  ;;  %v2554_v26 = vld [vmem:[#allocation2 + $0xd9] sm:$0xff] }
 0x2d3   : > { %2188 = vst [vmem:[#allocation2 + $0xef] sm:$0xff] %v2136_v11  ;;  %2660 = vst [vmem:[#allocation2 + $0xc9] sm:$0xff] %v2606_v22  ;;  %v2092_v12 = vld [vmem:[#allocation2 + $0x12f] sm:$0xff] }
 0x2d4   : > { %v1956_v14 = vpop.f32.mrf.mxu1  ;;  %v2416_v17 = vpop.f32.mrf.mxu0  ;;  %6657 = vmatmul.mubr.bf16.gmra.mxu1 %v7303_v19  ;;  %6777 = vmatmul.mubr.bf16.gmra.mxu0 %v7302_v3 }
 0x2d5   : > { %v2137_v28 = vadd.f32 %v2085_v15, %v1956_v14  ;;  %v2607_v20 = vadd.f32 %v2553_v18, %v2416_v17  ;;  %6660 = vmatprep.mubr.msk.bf16.mxu1 %vm7447_vm0, %v7446_v0  ;;  %6780 = vmatprep.mubr.msk.bf16.mxu0 %vm7447_vm0, %v7446_v0 }
 0x2d6   : > { %v6422_v21 = vpop.f32.mrf.mxu1  ;;  %v6542_v23 = vpop.f32.mrf.mxu0  ;;  %v2555_v35 = vld [vmem:[#allocation2 + $0xe1] sm:$0xff] }
 0x2d7   : > { %2189 = vst [vmem:[#allocation2 + $0xf7] sm:$0xff] %v2137_v28  ;;  %2661 = vst [vmem:[#allocation2 + $0xd1] sm:$0xff] %v2607_v20  ;;  %v2093_v20 = vld [vmem:[#allocation2 + $0x137] sm:$0xff] }
 0x2d8   : > { %v1959_v46 = vpop.f32.mrf.mxu1  ;;  %v2419_v25 = vpop.f32.mrf.mxu0 }
 0x2d9   : > { %v2138_v27 = vadd.f32 %v2086_v24, %v1959_v46  ;;  %v2608_v34 = vadd.f32 %v2554_v26, %v2419_v25  ;;  %v7307_v46 = vld [vmem:[%s7579_s18 + $0x78] sm:$0xff]  }
 0x2da   : > { %v6423_v29 = vpop.f32.mrf.mxu1  ;;  %v6543_v30 = vpop.f32.mrf.mxu0  ;;  %v2556_v49 = vld [vmem:[#allocation2 + $0xe9] sm:$0xff] }
 0x2db   : > { %2190 = vst [vmem:[#allocation2 + $0xff] sm:$0xff] %v2138_v27  ;;  %2662 = vst [vmem:[#allocation2 + $0xd9] sm:$0xff] %v2608_v34  ;;  %v2094_v29 = vld [vmem:[#allocation2 + $0x13f] sm:$0xff] }
 0x2dc   : > { %v1964_v31 = vpop.f32.mrf.mxu1  ;;  %v2424_v33 = vpop.f32.mrf.mxu0  ;;  %6661 = vmatmul.mubr.bf16.gmra.mxu1 %v7304_v37  ;;  %6781 = vmatmul.mubr.bf16.gmra.mxu0 %v7303_v19 }
 0x2dd   : > { %v2139_v36 = vadd.f32 %v2087_v32, %v1964_v31  ;;  %v2609_v48 = vadd.f32 %v2555_v35, %v2424_v33  ;;  %6664 = vmatprep.mubr.msk.bf16.mxu1 %vm7447_vm0, %v7446_v0  ;;  %6784 = vmatprep.mubr.msk.bf16.mxu0 %vm7447_vm0, %v7446_v0 }
 0x2de   : > { %v6426_v39 = vpop.f32.mrf.mxu1  ;;  %v6546_v41 = vpop.f32.mrf.mxu0  ;;  %v2557_v57 = vld [vmem:[#allocation2 + $0xf1] sm:$0xff] }
 0x2df   : > { %2191 = vst [vmem:[#allocation2 + $0x107] sm:$0xff] %v2139_v36  ;;  %2663 = vst [vmem:[#allocation2 + $0xe1] sm:$0xff] %v2609_v48  ;;  %v2095_v48 = vld [vmem:[#allocation2 + $0x147] sm:$0xff] }
 0x2e0   : > { %v1967_v43 = vpop.f32.mrf.mxu1  ;;  %v2427_v47 = vpop.f32.mrf.mxu0 }
 0x2e1   : > { %v2140_v52 = vadd.f32 %v2088_v45, %v1967_v43  ;;  %v2610_v38 = vadd.f32 %v2556_v49, %v2427_v47  ;;  %v7308_v43 = vld [vmem:[%s7579_s18 + $0x80] sm:$0xff]  }
 0x2e2   : > { %v6427_v51 = vpop.f32.mrf.mxu1  ;;  %v6547_v53 = vpop.f32.mrf.mxu0  ;;  %v2558_v63 = vld [vmem:[#allocation2 + $0xf9] sm:$0xff] }
 0x2e3   : > { %2192 = vst [vmem:[#allocation2 + $0x10f] sm:$0xff] %v2140_v52  ;;  %2664 = vst [vmem:[#allocation2 + $0xe9] sm:$0xff] %v2610_v38  ;;  %v2096_v51 = vld [vmem:[#allocation2 + $0x14f] sm:$0xff] }
 0x2e4   : > { %v1972_v54 = vpop.f32.mrf.mxu1  ;;  %v2432_v56 = vpop.f32.mrf.mxu0  ;;  %6665 = vmatmul.mubr.bf16.gmra.mxu1 %v7305_v50  ;;  %6785 = vmatmul.mubr.bf16.gmra.mxu0 %v7304_v37 }
 0x2e5   : > { %v2141_v58 = vadd.f32 %v2089_v55, %v1972_v54  ;;  %v2611_v40 = vadd.f32 %v2557_v57, %v2432_v56  ;;  %6668 = vmatprep.mubr.msk.bf16.mxu1 %vm7447_vm0, %v7446_v0  ;;  %6788 = vmatprep.mubr.msk.bf16.mxu0 %vm7447_vm0, %v7446_v0 }
 0x2e6   : > { %v6430_v59 = vpop.f32.mrf.mxu1  ;;  %v6550_v10 = vpop.f32.mrf.mxu0  ;;  %v2559_v6 = vld [vmem:[#allocation2 + $0x101] sm:$0xff] }
 0x2e7   : > { %2193 = vst [vmem:[#allocation2 + $0x117] sm:$0xff] %v2141_v58  ;;  %2665 = vst [vmem:[#allocation2 + $0xf1] sm:$0xff] %v2611_v40  ;;  %v2097_v40 = vld [vmem:[#allocation2 + $0x157] sm:$0xff] }
 0x2e8   : > { %v1975_v60 = vpop.f32.mrf.mxu1  ;;  %v2435_v62 = vpop.f32.mrf.mxu0 }
 0x2e9   : > { %v2142_v1 = vadd.f32 %v2090_v61, %v1975_v60  ;;  %v2612_v2 = vadd.f32 %v2558_v63, %v2435_v62  ;;  %v7309_v60 = vld [vmem:[%s7579_s18 + $0x88] sm:$0xff]  }
 0x2ea   : > { %v6431_v42 = vpop.f32.mrf.mxu1  ;;  %v6551_v3 = vpop.f32.mrf.mxu0  ;;  %v2560_v14 = vld [vmem:[#allocation2 + $0x109] sm:$0xff] }
 0x2eb   : > { %2194 = vst [vmem:[#allocation2 + $0x11f] sm:$0xff] %v2142_v1  ;;  %2666 = vst [vmem:[#allocation2 + $0xf9] sm:$0xff] %v2612_v2  ;;  %v2098_v42 = vld [vmem:[#allocation2 + $0x15f] sm:$0xff] }
 0x2ec   : > { %v1980_v16 = vpop.f32.mrf.mxu1  ;;  %v2440_v5 = vpop.f32.mrf.mxu0  ;;  %6669 = vmatmul.mubr.bf16.gmra.mxu1 %v7306_v7  ;;  %6789 = vmatmul.mubr.bf16.gmra.mxu0 %v7305_v50 }
 0x2ed   : > { %v2143_v8 = vadd.f32 %v2091_v4, %v1980_v16  ;;  %v2613_v9 = vadd.f32 %v2559_v6, %v2440_v5  ;;  %6672 = vmatprep.mubr.msk.bf16.mxu1 %vm7447_vm0, %v7446_v0  ;;  %6792 = vmatprep.mubr.msk.bf16.mxu0 %vm7447_vm0, %v7446_v0 }
 0x2ee   : > { %v6434_v44 = vpop.f32.mrf.mxu1  ;;  %v6554_v11 = vpop.f32.mrf.mxu0  ;;  %v2561_v23 = vld [vmem:[#allocation2 + $0x111] sm:$0xff] }
 0x2ef   : > { %2195 = vst [vmem:[#allocation2 + $0x127] sm:$0xff] %v2143_v8  ;;  %2667 = vst [vmem:[#allocation2 + $0x101] sm:$0xff] %v2613_v9  ;;  %v2099_v9 = vld [vmem:[#allocation2 + $0x167] sm:$0xff] }
 0x2f0   : > { %v1983_v22 = vpop.f32.mrf.mxu1  ;;  %v2443_v13 = vpop.f32.mrf.mxu0 }
 0x2f1   : > { %v2144_v15 = vadd.f32 %v2092_v12, %v1983_v22  ;;  %v2614_v17 = vadd.f32 %v2560_v14, %v2443_v13  ;;  %v7310_v22 = vld [vmem:[%s7579_s18 + $0x90] sm:$0xff]  }
 0x2f2   : > { %v6435_v18 = vpop.f32.mrf.mxu1  ;;  %v6555_v19 = vpop.f32.mrf.mxu0  ;;  %v2562_v31 = vld [vmem:[#allocation2 + $0x119] sm:$0xff] }
 0x2f3   : > { %2196 = vst [vmem:[#allocation2 + $0x12f] sm:$0xff] %v2144_v15  ;;  %2668 = vst [vmem:[#allocation2 + $0x109] sm:$0xff] %v2614_v17  ;;  %v2100_v18 = vld [vmem:[#allocation2 + $0x16f] sm:$0xff] }
 0x2f4   : > { %v1988_v28 = vpop.f32.mrf.mxu1  ;;  %v2448_v21 = vpop.f32.mrf.mxu0  ;;  %6673 = vmatmul.mubr.bf16.gmra.mxu1 %v7307_v46  ;;  %6793 = vmatmul.mubr.bf16.gmra.mxu0 %v7306_v7 }
 0x2f5   : > { %v2145_v24 = vadd.f32 %v2093_v20, %v1988_v28  ;;  %v2615_v25 = vadd.f32 %v2561_v23, %v2448_v21  ;;  %6676 = vmatprep.mubr.msk.bf16.mxu1 %vm7447_vm0, %v7446_v0  ;;  %6796 = vmatprep.mubr.msk.bf16.mxu0 %vm7447_vm0, %v7446_v0 }
 0x2f6   : > { %v6438_v26 = vpop.f32.mrf.mxu1  ;;  %v6558_v27 = vpop.f32.mrf.mxu0  ;;  %v2563_v41 = vld [vmem:[#allocation2 + $0x121] sm:$0xff] }
 0x2f7   : > { %2197 = vst [vmem:[#allocation2 + $0x137] sm:$0xff] %v2145_v24  ;;  %2669 = vst [vmem:[#allocation2 + $0x111] sm:$0xff] %v2615_v25  ;;  %v2101_v25 = vld [vmem:[#allocation2 + $0x177] sm:$0xff] }
 0x2f8   : > { %v1991_v34 = vpop.f32.mrf.mxu1  ;;  %v2451_v30 = vpop.f32.mrf.mxu0 }
 0x2f9   : > { %v2146_v32 = vadd.f32 %v2094_v29, %v1991_v34  ;;  %v2616_v33 = vadd.f32 %v2562_v31, %v2451_v30  ;;  %v7311_v34 = vld [vmem:[%s7579_s18 + $0x98] sm:$0xff]  }
 0x2fa   : > { %v6439_v35 = vpop.f32.mrf.mxu1  ;;  %v6559_v37 = vpop.f32.mrf.mxu0  ;;  %v2564_v54 = vld [vmem:[#allocation2 + $0x129] sm:$0xff] }
 0x2fb   : > { %2198 = vst [vmem:[#allocation2 + $0x13f] sm:$0xff] %v2146_v32  ;;  %2670 = vst [vmem:[#allocation2 + $0x119] sm:$0xff] %v2616_v33  ;;  %v2102_v35 = vld [vmem:[#allocation2 + $0x17f] sm:$0xff] }
 0x2fc   : > { %v1996_v36 = vpop.f32.mrf.mxu1  ;;  %v2456_v39 = vpop.f32.mrf.mxu0  ;;  %6677 = vmatmul.mubr.bf16.gmra.mxu1 %v7308_v43  ;;  %6797 = vmatmul.mubr.bf16.gmra.mxu0 %v7307_v46 }
 0x2fd   : > { %v2147_v45 = vadd.f32 %v2095_v48, %v1996_v36  ;;  %v2617_v47 = vadd.f32 %v2563_v41, %v2456_v39  ;;  %6680 = vmatprep.mubr.msk.bf16.mxu1 %vm7447_vm0, %v7446_v0  ;;  %6800 = vmatprep.mubr.msk.bf16.mxu0 %vm7447_vm0, %v7446_v0 }
 0x2fe   : > { %v6442_v49 = vpop.f32.mrf.mxu1  ;;  %v6562_v52 = vpop.f32.mrf.mxu0  ;;  %v2565_v10 = vld [vmem:[#allocation2 + $0x131] sm:$0xff] }
 0x2ff   : > { %2199 = vst [vmem:[#allocation2 + $0x147] sm:$0xff] %v2147_v45  ;;  %2671 = vst [vmem:[#allocation2 + $0x121] sm:$0xff] %v2617_v47  ;;  %v2103_v47 = vld [vmem:[#allocation2 + $0x187] sm:$0xff] }
 0x300   : > { %v1999_v38 = vpop.f32.mrf.mxu1  ;;  %v2459_v53 = vpop.f32.mrf.mxu0 }
 0x301   : > { %v2148_v55 = vadd.f32 %v2096_v51, %v1999_v38  ;;  %v2618_v56 = vadd.f32 %v2564_v54, %v2459_v53  ;;  %v7312_v38 = vld [vmem:[%s7579_s18 + $0xa0] sm:$0xff]  }
 0x302   : > { %v6443_v57 = vpop.f32.mrf.mxu1  ;;  %v6563_v50 = vpop.f32.mrf.mxu0  ;;  %v2566_v16 = vld [vmem:[#allocation2 + $0x139] sm:$0xff] }
 0x303   : > { %2200 = vst [vmem:[#allocation2 + $0x14f] sm:$0xff] %v2148_v55  ;;  %2672 = vst [vmem:[#allocation2 + $0x129] sm:$0xff] %v2618_v56  ;;  %v2104_v57 = vld [vmem:[#allocation2 + $0x18f] sm:$0xff] }
 0x304   : > { %v2004_v58 = vpop.f32.mrf.mxu1  ;;  %v2464_v59 = vpop.f32.mrf.mxu0  ;;  %6681 = vmatmul.mubr.bf16.gmra.mxu1 %v7309_v60  ;;  %6801 = vmatmul.mubr.bf16.gmra.mxu0 %v7308_v43 }
 0x305   : > { %v2149_v61 = vadd.f32 %v2097_v40, %v2004_v58  ;;  %v2619_v62 = vadd.f32 %v2565_v10, %v2464_v59  ;;  %6684 = vmatprep.mubr.msk.bf16.mxu1 %vm7447_vm0, %v7446_v0  ;;  %6804 = vmatprep.mubr.msk.bf16.mxu0 %vm7447_vm0, %v7446_v0 }
 0x306   : > { %v6446_v63 = vpop.f32.mrf.mxu1  ;;  %v6566_v1 = vpop.f32.mrf.mxu0  ;;  %v2567_v11 = vld [vmem:[#allocation2 + $0x141] sm:$0xff] }
 0x307   : > { %2201 = vst [vmem:[#allocation2 + $0x157] sm:$0xff] %v2149_v61  ;;  %2673 = vst [vmem:[#allocation2 + $0x131] sm:$0xff] %v2619_v62  ;;  %v2105_v62 = vld [vmem:[#allocation2 + $0x197] sm:$0xff] }
 0x308   : > { %v2007_v2 = vpop.f32.mrf.mxu1  ;;  %v2467_v3 = vpop.f32.mrf.mxu0 }
 0x309   : > { %v2150_v4 = vadd.f32 %v2098_v42, %v2007_v2  ;;  %v2620_v5 = vadd.f32 %v2566_v16, %v2467_v3  ;;  %v7313_v2 = vld [vmem:[%s7579_s18 + $0xa8] sm:$0xff]  }
 0x30a   : > { %v6447_v6 = vpop.f32.mrf.mxu1  ;;  %v6567_v7 = vpop.f32.mrf.mxu0  ;;  %v2568_v28 = vld [vmem:[#allocation2 + $0x149] sm:$0xff] }
 0x30b   : > { %2202 = vst [vmem:[#allocation2 + $0x15f] sm:$0xff] %v2150_v4  ;;  %2674 = vst [vmem:[#allocation2 + $0x139] sm:$0xff] %v2620_v5  ;;  %v2106_v6 = vld [vmem:[#allocation2 + $0x19f] sm:$0xff] }
 0x30c   : > { %v2012_v8 = vpop.f32.mrf.mxu1  ;;  %v2472_v44 = vpop.f32.mrf.mxu0  ;;  %6685 = vmatmul.mubr.bf16.gmra.mxu1 %v7310_v22  ;;  %6805 = vmatmul.mubr.bf16.gmra.mxu0 %v7309_v60 }
 0x30d   : > { %v2151_v12 = vadd.f32 %v2099_v9, %v2012_v8  ;;  %v2621_v13 = vadd.f32 %v2567_v11, %v2472_v44  ;;  %6688 = vmatprep.mubr.msk.bf16.mxu1 %vm7447_vm0, %v7446_v0  ;;  %6808 = vmatprep.mubr.msk.bf16.mxu0 %vm7447_vm0, %v7446_v0 }
 0x30e   : > { %v6450_v14 = vpop.f32.mrf.mxu1  ;;  %v6570_v15 = vpop.f32.mrf.mxu0  ;;  %v2569_v27 = vld [vmem:[#allocation2 + $0x151] sm:$0xff] }
 0x30f   : > { %2203 = vst [vmem:[#allocation2 + $0x167] sm:$0xff] %v2151_v12  ;;  %2675 = vst [vmem:[#allocation2 + $0x141] sm:$0xff] %v2621_v13  ;;  %v2107_v13 = vld [vmem:[#allocation2 + $0x1a7] sm:$0xff] }
 0x310   : > { %v2015_v17 = vpop.f32.mrf.mxu1  ;;  %v2475_v19 = vpop.f32.mrf.mxu0 }
 0x311   : > { %v2152_v20 = vadd.f32 %v2100_v18, %v2015_v17  ;;  %v2622_v21 = vadd.f32 %v2568_v28, %v2475_v19  ;;  %v7314_v17 = vld [vmem:[%s7579_s18 + $0xb0] sm:$0xff]  }
 0x312   : > { %v6451_v23 = vpop.f32.mrf.mxu1  ;;  %v6571_v46 = vpop.f32.mrf.mxu0  ;;  %v2570_v36 = vld [vmem:[#allocation2 + $0x159] sm:$0xff] }
 0x313   : > { %2204 = vst [vmem:[#allocation2 + $0x16f] sm:$0xff] %v2152_v20  ;;  %2676 = vst [vmem:[#allocation2 + $0x149] sm:$0xff] %v2622_v21  ;;  %v2108_v23 = vld [vmem:[#allocation2 + $0x1af] sm:$0x1] }
 0x314   : > { %v2020_v24 = vpop.f32.mrf.mxu1  ;;  %v2480_v26 = vpop.f32.mrf.mxu0  ;;  %6689 = vmatmul.mubr.bf16.gmra.mxu1 %v7311_v34  ;;  %6809 = vmatmul.mubr.bf16.gmra.mxu0 %v7310_v22 }
 0x315   : > { %v2153_v29 = vadd.f32 %v2101_v25, %v2020_v24  ;;  %v2623_v30 = vadd.f32 %v2569_v27, %v2480_v26  ;;  %6692 = vmatprep.mubr.msk.bf16.mxu1 %vm7447_vm0, %v7446_v0  ;;  %6812 = vmatprep.mubr.msk.bf16.mxu0 %vm7447_vm0, %v7446_v0 }
 0x316   : > { %v6454_v31 = vpop.f32.mrf.mxu1  ;;  %v6574_v32 = vpop.f32.mrf.mxu0  ;;  %v2571_v52 = vld [vmem:[#allocation2 + $0x161] sm:$0xff] }
 0x317   : > { %2205 = vst [vmem:[#allocation2 + $0x177] sm:$0xff] %v2153_v29  ;;  %2677 = vst [vmem:[#allocation2 + $0x151] sm:$0xff] %v2623_v30  ;;  %v7315_v32 = vld [vmem:[%s7579_s18 + $0xb8] sm:$0xff]  }
 0x318   : > { %v2023_v33 = vpop.f32.mrf.mxu1  ;;  %v2483_v37 = vpop.f32.mrf.mxu0 }
 0x319   : > { %v2154_v48 = vadd.f32 %v2102_v35, %v2023_v33  ;;  %v2624_v39 = vadd.f32 %v2570_v36, %v2483_v37 }
 0x31a   : > { %v6455_v41 = vpop.f32.mrf.mxu1  ;;  %v6575_v43 = vpop.f32.mrf.mxu0  ;;  %v2572_v58 = vld [vmem:[#allocation2 + $0x169] sm:$0xff] }
 0x31b   : > { %2206 = vst [vmem:[#allocation2 + $0x17f] sm:$0xff] %v2154_v48  ;;  %2678 = vst [vmem:[#allocation2 + $0x159] sm:$0xff] %v2624_v39 }
 0x31c   : > { %v2028_v45 = vpop.f32.mrf.mxu1  ;;  %v2488_v49 = vpop.f32.mrf.mxu0  ;;  %6693 = vmatmul.mubr.bf16.gmra.mxu1 %v7312_v38  ;;  %6813 = vmatmul.mubr.bf16.gmra.mxu0 %v7311_v34 }
 0x31d   : > { %v2155_v51 = vadd.f32 %v2103_v47, %v2028_v45  ;;  %v2625_v53 = vadd.f32 %v2571_v52, %v2488_v49  ;;  %6696 = vmatprep.mubr.msk.bf16.mxu1 %vm7447_vm0, %v7446_v0  ;;  %6816 = vmatprep.mubr.msk.bf16.mxu0 %vm7447_vm0, %v7446_v0 }
 0x31e   : > { %v6458_v54 = vpop.f32.mrf.mxu1  ;;  %v6578_v55 = vpop.f32.mrf.mxu0  ;;  %v2573_v1 = vld [vmem:[#allocation2 + $0x171] sm:$0xff] }
 0x31f   : > { %2207 = vst [vmem:[#allocation2 + $0x187] sm:$0xff] %v2155_v51  ;;  %2679 = vst [vmem:[#allocation2 + $0x161] sm:$0xff] %v2625_v53 }
 0x320   : > { %v2031_v56 = vpop.f32.mrf.mxu1  ;;  %v2491_v50 = vpop.f32.mrf.mxu0 }
 0x321   : > { %v2156_v40 = vadd.f32 %v2104_v57, %v2031_v56  ;;  %v2626_v59 = vadd.f32 %v2572_v58, %v2491_v50 }
 0x322   : > { %v6459_v10 = vpop.f32.mrf.mxu1  ;;  %v6579_v60 = vpop.f32.mrf.mxu0  ;;  %v2574_v8 = vld [vmem:[#allocation2 + $0x179] sm:$0xff] }
 0x323   : > { %2208 = vst [vmem:[#allocation2 + $0x18f] sm:$0xff] %v2156_v40  ;;  %2680 = vst [vmem:[#allocation2 + $0x169] sm:$0xff] %v2626_v59  ;;  %v7317_v10 = vld [vmem:[%s7579_s18 + $0xc8] sm:$0xff]  }
 0x324   : > { %v2036_v61 = vpop.f32.mrf.mxu1  ;;  %v2496_v63 = vpop.f32.mrf.mxu0  ;;  %6697 = vmatmul.mubr.bf16.gmra.mxu1 %v7313_v2  ;;  %6817 = vmatmul.mubr.bf16.gmra.mxu0 %v7312_v38  ;;  %v7316_v38 = vld [vmem:[%s7579_s18 + $0xc0] sm:$0xff]  }
 0x325   : > { %v2157_v42 = vadd.f32 %v2105_v62, %v2036_v61  ;;  %v2627_v3 = vadd.f32 %v2573_v1, %v2496_v63  ;;  %6700 = vmatprep.mubr.msk.bf16.mxu1 %vm7447_vm0, %v7446_v0  ;;  %6820 = vmatprep.mubr.msk.bf16.mxu0 %vm7447_vm0, %v7446_v0 }
 0x326   : > { %v6462_v16 = vpop.f32.mrf.mxu1  ;;  %v6582_v4 = vpop.f32.mrf.mxu0  ;;  %v2575_v15 = vld [vmem:[#allocation2 + $0x181] sm:$0xff] }
 0x327   : > { %2209 = vst [vmem:[#allocation2 + $0x197] sm:$0xff] %v2157_v42  ;;  %2681 = vst [vmem:[#allocation2 + $0x171] sm:$0xff] %v2627_v3  ;;  %v7318_v4 = vld [vmem:[%s7579_s18 + $0xd0] sm:$0xff]  }
 0x328   : > { %v2039_v5 = vpop.f32.mrf.mxu1  ;;  %v2499_v7 = vpop.f32.mrf.mxu0 }
 0x329   : > { %v2158_v9 = vadd.f32 %v2106_v6, %v2039_v5  ;;  %v2628_v44 = vadd.f32 %v2574_v8, %v2499_v7 }
 0x32a   : > { %v6463_v11 = vpop.f32.mrf.mxu1  ;;  %v6583_v22 = vpop.f32.mrf.mxu0  ;;  %v2576_v24 = vld [vmem:[#allocation2 + $0x189] sm:$0xff] }
 0x32b   : > { %2210 = vst [vmem:[#allocation2 + $0x19f] sm:$0xff] %v2158_v9  ;;  %2682 = vst [vmem:[#allocation2 + $0x179] sm:$0xff] %v2628_v44 }
 0x32c   : > { %v2044_v12 = vpop.f32.mrf.mxu1  ;;  %v2504_v14 = vpop.f32.mrf.mxu0  ;;  %6701 = vmatmul.mubr.bf16.gmra.mxu1 %v7314_v17  ;;  %6821 = vmatmul.mubr.bf16.gmra.mxu0 %v7313_v2 }
 0x32d   : > { %v2159_v18 = vadd.f32 %v2107_v13, %v2044_v12  ;;  %v2629_v19 = vadd.f32 %v2575_v15, %v2504_v14  ;;  %6704 = vmatprep.mubr.msk.bf16.mxu1 %vm7447_vm0, %v7446_v0  ;;  %6824 = vmatprep.mubr.msk.bf16.mxu0 %vm7447_vm0, %v7446_v0  ;;  %v3003_v12 = vld [vmem:[#allocation2] sm:$0xff] }
 0x32e   : > { %v6466_v28 = vpop.f32.mrf.mxu1  ;;  %v6586_v20 = vpop.f32.mrf.mxu0  ;;  %v2577_v31 = vld [vmem:[#allocation2 + $0x191] sm:$0xff] }
 0x32f   : > { %2211 = vst [vmem:[#allocation2 + $0x1a7] sm:$0xff] %v2159_v18  ;;  %2683 = vst [vmem:[#allocation2 + $0x181] sm:$0xff] %v2629_v19 }
 0x330   : > { %v2047_v21 = vpop.f32.mrf.mxu1  ;;  %v2507_v46 = vpop.f32.mrf.mxu0 }
 0x331   : > { %v2160_v25 = vadd.f32 %v2108_v23, %v2047_v21  ;;  %v2630_v26 = vadd.f32 %v2576_v24, %v2507_v46  ;;  %v7319_v24 = vld [vmem:[%s7579_s18] sm:$0xff]  }
 0x332   : > { %v6467_v27 = vpop.f32.mrf.mxu1  ;;  %v6587_v34 = vpop.f32.mrf.mxu0  ;;  %v2578_v39 = vld [vmem:[#allocation2 + $0x199] sm:$0xff] }
 0x333   : > { %2212 = vst [vmem:[#allocation2 + $0x1af] sm:$0x1] %v2160_v25  ;;  %2684 = vst [vmem:[#allocation2 + $0x189] sm:$0xff] %v2630_v26  ;;  %v3004_v25 = vld [vmem:[#allocation2 + $0x8] sm:$0xff] }
 0x334   : > { %v2052_v29 = vpop.f32.mrf.mxu1  ;;  %v2512_v30 = vpop.f32.mrf.mxu0  ;;  %6705 = vmatmul.mubr.bf16.gmra.mxu1 %v7315_v32  ;;  %6825 = vmatmul.mubr.bf16.gmra.mxu0 %v7314_v17 }
 0x335   : > { %v2631_v33 = vadd.f32 %v2577_v31, %v2512_v30  ;;  %6708 = vmatprep.mubr.msk.bf16.mxu1 %vm7447_vm0, %v7446_v0  ;;  %6828 = vmatprep.mubr.msk.bf16.mxu0 %vm7447_vm0, %v7446_v0 }
 0x336   : > { %v6470_v35 = vpop.f32.mrf.mxu1  ;;  %v6590_v37 = vpop.f32.mrf.mxu0  ;;  %v2579_v49 = vld [vmem:[#allocation2 + $0x1a1] sm:$0xff] }
 0x337   : > { %2685 = vst [vmem:[#allocation2 + $0x191] sm:$0xff] %v2631_v33 }
 0x338   : > { %v2054_v36 = vpop.f32.mrf.mxu1  ;;  %v2515_v48 = vpop.f32.mrf.mxu0 }
 0x339   : > { %v2632_v41 = vadd.f32 %v2578_v39, %v2515_v48  ;;  %v3005_v36 = vld [vmem:[#allocation2 + $0x10] sm:$0xff] }
 0x33a   : > { %v6471_v43 = vpop.f32.mrf.mxu1  ;;  %v6591_v45 = vpop.f32.mrf.mxu0  ;;  %v2580_v56 = vld [vmem:[#allocation2 + $0x1a9] sm:$0x7f] }
 0x33b   : > { %2686 = vst [vmem:[#allocation2 + $0x199] sm:$0xff] %v2632_v41 }
 0x33c   : > { %v2520_v47 = vpop.f32.mrf.mxu0  ;;  %v2788_v52 = vpop.f32.mrf.mxu1  ;;  %6709 = vmatmul.mubr.bf16.gmra.mxu1 %v7316_v38  ;;  %6829 = vmatmul.mubr.bf16.gmra.mxu0 %v7315_v32 }
 0x33d   : > { %v2633_v51 = vadd.f32 %v2579_v49, %v2520_v47  ;;  %6712 = vmatprep.mubr.msk.bf16.mxu1 %vm7447_vm0, %v7446_v0  ;;  %6832 = vmatprep.mubr.msk.bf16.mxu0 %vm7447_vm0, %v7446_v0  ;;  %v3112_v6 = vrot.slane %v2788_v52, 1 }
 0x33e   : > { %v6594_v53 = vpop.f32.mrf.mxu0  ;;  %v6614_v54 = vpop.f32.mrf.mxu1 }
 0x33f   : > { %2687 = vst [vmem:[#allocation2 + $0x1a1] sm:$0xff] %v2633_v51  ;;  %v7320_v53 = vld [vmem:[%s7579_s18 + $0x8] sm:$0xff]  }
 0x340   : > { %v2523_v55 = vpop.f32.mrf.mxu0  ;;  %v2791_v57 = vpop.f32.mrf.mxu1  ;;  %v3006_v54 = vld [vmem:[#allocation2 + $0x18] sm:$0xff] }
 0x341   : > { %v2634_v50 = vadd.f32 %v2580_v56, %v2523_v55  ;;  %v3113_v3 = vrot.slane %v2791_v57, 1 }
 0x342   : > { %v6595_v58 = vpop.f32.mrf.mxu0  ;;  %v6615_v40 = vpop.f32.mrf.mxu1 }
 0x343   : > { %2688 = vst [vmem:[#allocation2 + $0x1a9] sm:$0x7f] %v2634_v50  ;;  %v3114_v9 = vsel %vm3111_vm1, %v3112_v6, %v3113_v3 }
 0x344   : > { %v2796_v59 = vpop.f32.mrf.mxu1  ;;  %6713 = vmatmul.mubr.bf16.gmra.mxu1 %v7317_v10  ;;  %v3480_v60 = vpop.f32.mrf.mxu0  ;;  %6833 = vmatmul.mubr.bf16.gmra.mxu0 %v7316_v38  ;;  %v3273_v15 = vadd.f32 %v3114_v9, %v3003_v12  ;;  %v3008_v9 = vld [vmem:[#allocation2 + $0x28] sm:$0xff] }
 0x345   : > { %6716 = vmatprep.mubr.msk.bf16.mxu1 %vm7447_vm0, %v7446_v0  ;;  %6836 = vmatprep.mubr.msk.bf16.mxu0 %vm7447_vm0, %v7446_v0  ;;  %v3115_v44 = vrot.slane %v2796_v59, 1 }
 0x346   : > { %v6618_v61 = vpop.f32.mrf.mxu1  ;;  %v6738_v62 = vpop.f32.mrf.mxu0 }
 0x347   : > { %v3116_v19 = vsel %vm3111_vm1, %v3113_v3, %v3115_v44  ;;  %v3007_v62 = vld [vmem:[#allocation2 + $0x20] sm:$0xff] }
 0x348   : > { %v2799_v63 = vpop.f32.mrf.mxu1  ;;  %v3482_v1 = vpop.f32.mrf.mxu0  ;;  %v3274_v27 = vadd.f32 %v3116_v19, %v3004_v25 }
 0x349   : > { %v3117_v28 = vrot.slane %v2799_v63, 1 }
 0x34a   : > { %v6619_v2 = vpop.f32.mrf.mxu1  ;;  %v6739_v42 = vpop.f32.mrf.mxu0 }
 0x34b   : > { %v3118_v30 = vsel %vm3111_vm1, %v3115_v44, %v3117_v28 }
 0x34c   : > { %v8260_v16 = vpop.f32.mrf.mxu1  ;;  %6717 = vmatmul.mubr.bf16.gmra.mxu1 %v7318_v4  ;;  %v3486_v5 = vpop.f32.mrf.mxu0  ;;  %6837 = vmatmul.mubr.bf16.gmra.mxu0 %v7317_v10  ;;  %v3275_v39 = vadd.f32 %v3118_v30, %v3005_v36  ;;  %v7322_v30 = vld [vmem:[%s7579_s18 + $0x18] sm:$0xff]  }
 0x34d   : > { %6840 = vmatprep.mubr.msk.bf16.mxu0 %vm7447_vm0, %v7446_v0  ;;  %6860 = vmatprep.mubr.msk.bf16.mxu1 %vm7447_vm0, %v7446_v0  ;;  %v3798_v13 = vrot.slane %v3486_v5, 7  ;;  %v3119_v31 = vrot.slane %v8260_v16, 1 }
 0x34e   : > { %v6622_v7 = vpop.f32.mrf.mxu1  ;;  %v6742_v8 = vpop.f32.mrf.mxu0 }
 0x34f   : > { %v3120_v45 = vsel %vm3111_vm1, %v3117_v28, %v3119_v31  ;;  %v7321_v8 = vld [vmem:[%s7579_s18 + $0x10] sm:$0xff]   ;;  %v3009_v28 = vld [vmem:[#allocation2 + $0x30] sm:$0xff] }
 0x350   : > { %v8268_v11 = vpop.f32.mrf.mxu1  ;;  %v3489_v22 = vpop.f32.mrf.mxu0  ;;  %v3276_v56 = vadd.f32 %v3120_v45, %v3006_v54 }
 0x351   : > { %v3799_v14 = vrot.slane %v3489_v22, 7  ;;  %v3121_v47 = vrot.slane %v8268_v11, 1 }
 0x352   : > { %v6623_v17 = vpop.f32.mrf.mxu1  ;;  %v6743_v18 = vpop.f32.mrf.mxu0 }
 0x353   : > { %v3800_v20 = vsel %vm3797_vm2, %v3798_v13, %v3799_v14  ;;  %v3122_v58 = vsel %vm3111_vm1, %v3119_v31, %v3121_v47  ;;  %v3010_v31 = vld [vmem:[#allocation2 + $0x38] sm:$0xff] }
 0x354   : > { %v3953_v21 = vadd.f32 %v3800_v20, %v3273_v15  ;;  %v8272_v23 = vpop.f32.mrf.mxu1  ;;  %v3494_v46 = vpop.f32.mrf.mxu0  ;;  %6841 = vmatmul.mubr.bf16.gmra.mxu0 %v7318_v4  ;;  %6861 = vmatmul.mubr.bf16.vlgmr.msra.gmra.mxu1 %v7319_v24  ;;  %v3277_v1 = vadd.f32 %v3122_v58, %v3007_v62  ;;  %v7323_v58 = vld [vmem:[%s7579_s18 + $0x20] sm:$0xff]  }
 0x355   : > { %v3801_v26 = vrot.slane %v3494_v46, 7  ;;  %6864 = vmatprep.mubr.msk.bf16.mxu1 %vm7447_vm0, %v7446_v0  ;;  %6984 = vmatprep.mubr.msk.bf16.mxu0 %vm7447_vm0, %v7446_v0  ;;  %v3123_v40 = vrot.slane %v8272_v23, 1 }
 0x356   : > { %4005 = vst [vmem:[#allocation2] sm:$0xff] %v3953_v21  ;;  %v6626_v34 = vpop.f32.mrf.mxu1  ;;  %v6746_v29 = vpop.f32.mrf.mxu0 }
 0x357   : > { %v3802_v32 = vsel %vm3797_vm2, %v3799_v14, %v3801_v26  ;;  %v3124_v3 = vsel %vm3111_vm1, %v3121_v47, %v3123_v40  ;;  %v3011_v47 = vld [vmem:[#allocation2 + $0x40] sm:$0xff] }
 0x358   : > { %v3954_v33 = vadd.f32 %v3802_v32, %v3274_v27  ;;  %v8282_v35 = vpop.f32.mrf.mxu1  ;;  %v3497_v37 = vpop.f32.mrf.mxu0  ;;  %v3278_v11 = vadd.f32 %v3124_v3, %v3008_v9 }
 0x359   : > { %v3803_v48 = vrot.slane %v3497_v37, 7  ;;  %v3125_v16 = vrot.slane %v8282_v35, 1 }
 0x35a   : > { %4006 = vst [vmem:[#allocation2 + $0x8] sm:$0xff] %v3954_v33  ;;  %v6627_v41 = vpop.f32.mrf.mxu1  ;;  %v6747_v43 = vpop.f32.mrf.mxu0 }
 0x35b   : > { %v3804_v49 = vsel %vm3797_vm2, %v3801_v26, %v3803_v48  ;;  %v3126_v13 = vsel %vm3111_vm1, %v3123_v40, %v3125_v16  ;;  %v3012_v40 = vld [vmem:[#allocation2 + $0x48] sm:$0xff] }
 0x35c   : > { %v3955_v52 = vadd.f32 %v3804_v49, %v3275_v39  ;;  %v8287_v38 = vpop.f32.mrf.mxu1  ;;  %v3502_v51 = vpop.f32.mrf.mxu0  ;;  %6865 = vmatmul.mubr.bf16.gmra.mxu1 %v7320_v53  ;;  %6985 = vmatmul.mubr.bf16.vlgmr.msra.gmra.mxu0 %v7319_v24  ;;  %v3279_v21 = vadd.f32 %v3126_v13, %v3009_v28  ;;  %v7324_v13 = vld [vmem:[%s7579_s18 + $0x28] sm:$0xff]  }
 0x35d   : > { %v3805_v55 = vrot.slane %v3502_v51, 7  ;;  %6868 = vmatprep.mubr.msk.bf16.mxu1 %vm7447_vm0, %v7446_v0  ;;  %6988 = vmatprep.mubr.msk.bf16.mxu0 %vm7447_vm0, %v7446_v0  ;;  %v3127_v14 = vrot.slane %v8287_v38, 1 }
 0x35e   : > { %4007 = vst [vmem:[#allocation2 + $0x10] sm:$0xff] %v3955_v52  ;;  %v6630_v57 = vpop.f32.mrf.mxu1  ;;  %v6750_v50 = vpop.f32.mrf.mxu0 }
 0x35f   : > { %v3806_v59 = vsel %vm3797_vm2, %v3803_v48, %v3805_v55  ;;  %v3128_v24 = vsel %vm3111_vm1, %v3125_v16, %v3127_v14  ;;  %v3013_v16 = vld [vmem:[#allocation2 + $0x50] sm:$0xff] }
 0x360   : > { %v3956_v10 = vadd.f32 %v3806_v59, %v3276_v56  ;;  %v8297_v60 = vpop.f32.mrf.mxu1  ;;  %v3505_v61 = vpop.f32.mrf.mxu0  ;;  %v3280_v33 = vadd.f32 %v3128_v24, %v3010_v31 }
 0x361   : > { %v3807_v63 = vrot.slane %v3505_v61, 7  ;;  %v3129_v25 = vrot.slane %v8297_v60, 1 }
 0x362   : > { %4008 = vst [vmem:[#allocation2 + $0x18] sm:$0xff] %v3956_v10  ;;  %v6631_v2 = vpop.f32.mrf.mxu1  ;;  %v6751_v42 = vpop.f32.mrf.mxu0 }
 0x363   : > { %v3808_v4 = vsel %vm3797_vm2, %v3805_v55, %v3807_v63  ;;  %v3130_v36 = vsel %vm3111_vm1, %v3127_v14, %v3129_v25  ;;  %v3014_v14 = vld [vmem:[#allocation2 + $0x58] sm:$0xff] }
 0x364   : > { %v3957_v5 = vadd.f32 %v3808_v4, %v3277_v1  ;;  %v8302_v6 = vpop.f32.mrf.mxu1  ;;  %v3510_v7 = vpop.f32.mrf.mxu0  ;;  %6869 = vmatmul.mubr.bf16.gmra.mxu1 %v7321_v8  ;;  %6989 = vmatmul.mubr.bf16.gmra.mxu0 %v7320_v53  ;;  %v3281_v52 = vadd.f32 %v3130_v36, %v3011_v47  ;;  %v7325_v36 = vld [vmem:[%s7579_s18 + $0x30] sm:$0xff]  }
 0x365   : > { %v3809_v44 = vrot.slane %v3510_v7, 7  ;;  %6872 = vmatprep.mubr.msk.bf16.mxu1 %vm7447_vm0, %v7446_v0  ;;  %6992 = vmatprep.mubr.msk.bf16.mxu0 %vm7447_vm0, %v7446_v0  ;;  %v3131_v48 = vrot.slane %v8302_v6, 1 }
 0x366   : > { %4009 = vst [vmem:[#allocation2 + $0x20] sm:$0xff] %v3957_v5  ;;  %v6634_v22 = vpop.f32.mrf.mxu1  ;;  %v6754_v12 = vpop.f32.mrf.mxu0 }
 0x367   : > { %v3810_v15 = vsel %vm3797_vm2, %v3807_v63, %v3809_v44  ;;  %v3132_v53 = vsel %vm3111_vm1, %v3129_v25, %v3131_v48  ;;  %v3015_v25 = vld [vmem:[#allocation2 + $0x60] sm:$0xff] }
 0x368   : > { %v3958_v17 = vadd.f32 %v3810_v15, %v3278_v11  ;;  %v8312_v18 = vpop.f32.mrf.mxu1  ;;  %v3513_v19 = vpop.f32.mrf.mxu0  ;;  %v3282_v10 = vadd.f32 %v3132_v53, %v3012_v40 }
 0x369   : > { %v3811_v20 = vrot.slane %v3513_v19, 7  ;;  %v3133_v54 = vrot.slane %v8312_v18, 1 }
 0x36a   : > { %4010 = vst [vmem:[#allocation2 + $0x28] sm:$0xff] %v3958_v17  ;;  %v6635_v23 = vpop.f32.mrf.mxu1  ;;  %v6755_v46 = vpop.f32.mrf.mxu0 }
 0x36b   : > { %v3812_v26 = vsel %vm3797_vm2, %v3809_v44, %v3811_v20  ;;  %v3134_v62 = vsel %vm3111_vm1, %v3131_v48, %v3133_v54  ;;  %v3016_v48 = vld [vmem:[#allocation2 + $0x68] sm:$0xff] }
 0x36c   : > { %v3959_v27 = vadd.f32 %v3812_v26, %v3279_v21  ;;  %v8317_v34 = vpop.f32.mrf.mxu1  ;;  %v3518_v29 = vpop.f32.mrf.mxu0  ;;  %6873 = vmatmul.mubr.bf16.gmra.mxu1 %v7322_v30  ;;  %6993 = vmatmul.mubr.bf16.gmra.mxu0 %v7321_v8  ;;  %v3283_v5 = vadd.f32 %v3134_v62, %v3013_v16  ;;  %v7326_v62 = vld [vmem:[%s7579_s18 + $0x38] sm:$0xff]  }
 0x36d   : > { %v3813_v32 = vrot.slane %v3518_v29, 7  ;;  %6876 = vmatprep.mubr.msk.bf16.mxu1 %vm7447_vm0, %v7446_v0  ;;  %6996 = vmatprep.mubr.msk.bf16.mxu0 %vm7447_vm0, %v7446_v0  ;;  %v3135_v63 = vrot.slane %v8317_v34, 1 }
 0x36e   : > { %4011 = vst [vmem:[#allocation2 + $0x30] sm:$0xff] %v3959_v27  ;;  %v6638_v35 = vpop.f32.mrf.mxu1  ;;  %v6758_v37 = vpop.f32.mrf.mxu0 }
 0x36f   : > { %v3814_v39 = vsel %vm3797_vm2, %v3811_v20, %v3813_v32  ;;  %v3136_v8 = vsel %vm3111_vm1, %v3133_v54, %v3135_v63  ;;  %v3017_v54 = vld [vmem:[#allocation2 + $0x70] sm:$0xff] }
 0x370   : > { %v3960_v41 = vadd.f32 %v3814_v39, %v3280_v33  ;;  %v8327_v43 = vpop.f32.mrf.mxu1  ;;  %v3521_v45 = vpop.f32.mrf.mxu0  ;;  %v3284_v17 = vadd.f32 %v3136_v8, %v3014_v14 }
 0x371   : > { %v3815_v49 = vrot.slane %v3521_v45, 7  ;;  %v3137_v9 = vrot.slane %v8327_v43, 1 }
 0x372   : > { %4012 = vst [vmem:[#allocation2 + $0x38] sm:$0xff] %v3960_v41  ;;  %v6639_v38 = vpop.f32.mrf.mxu1  ;;  %v6759_v51 = vpop.f32.mrf.mxu0 }
 0x373   : > { %v3816_v55 = vsel %vm3797_vm2, %v3813_v32, %v3815_v49  ;;  %v3138_v28 = vsel %vm3111_vm1, %v3135_v63, %v3137_v9  ;;  %v3018_v63 = vld [vmem:[#allocation2 + $0x78] sm:$0xff] }
 0x374   : > { %v3961_v56 = vadd.f32 %v3816_v55, %v3281_v52  ;;  %v8332_v57 = vpop.f32.mrf.mxu1  ;;  %v3526_v50 = vpop.f32.mrf.mxu0  ;;  %6877 = vmatmul.mubr.bf16.gmra.mxu1 %v7323_v58  ;;  %6997 = vmatmul.mubr.bf16.gmra.mxu0 %v7322_v30  ;;  %v3285_v27 = vadd.f32 %v3138_v28, %v3015_v25  ;;  %v7327_v28 = vld [vmem:[%s7579_s18 + $0x40] sm:$0xff]  }
 0x375   : > { %v3817_v59 = vrot.slane %v3526_v50, 7  ;;  %6880 = vmatprep.mubr.msk.bf16.mxu1 %vm7447_vm0, %v7446_v0  ;;  %7000 = vmatprep.mubr.msk.bf16.mxu0 %vm7447_vm0, %v7446_v0  ;;  %v3139_v20 = vrot.slane %v8332_v57, 1 }
 0x376   : > { %4013 = vst [vmem:[#allocation2 + $0x40] sm:$0xff] %v3961_v56  ;;  %v6642_v60 = vpop.f32.mrf.mxu1  ;;  %v6762_v61 = vpop.f32.mrf.mxu0 }
 0x377   : > { %v3818_v1 = vsel %vm3797_vm2, %v3815_v49, %v3817_v59  ;;  %v3140_v30 = vsel %vm3111_vm1, %v3137_v9, %v3139_v20  ;;  %v3019_v9 = vld [vmem:[#allocation2 + $0x80] sm:$0xff] }
 0x378   : > { %v3962_v2 = vadd.f32 %v3818_v1, %v3282_v10  ;;  %v8342_v42 = vpop.f32.mrf.mxu1  ;;  %v3529_v3 = vpop.f32.mrf.mxu0  ;;  %v3286_v41 = vadd.f32 %v3140_v30, %v3016_v48 }
 0x379   : > { %v3819_v4 = vrot.slane %v3529_v3, 7  ;;  %v3141_v31 = vrot.slane %v8342_v42, 1 }
 0x37a   : > { %4014 = vst [vmem:[#allocation2 + $0x48] sm:$0xff] %v3962_v2  ;;  %v6643_v6 = vpop.f32.mrf.mxu1  ;;  %v6763_v7 = vpop.f32.mrf.mxu0 }
 0x37b   : > { %v3820_v44 = vsel %vm3797_vm2, %v3817_v59, %v3819_v4  ;;  %v3142_v47 = vsel %vm3111_vm1, %v3139_v20, %v3141_v31  ;;  %v3020_v20 = vld [vmem:[#allocation2 + $0x88] sm:$0xff] }
 0x37c   : > { %v3963_v11 = vadd.f32 %v3820_v44, %v3283_v5  ;;  %v8347_v22 = vpop.f32.mrf.mxu1  ;;  %v3534_v12 = vpop.f32.mrf.mxu0  ;;  %6881 = vmatmul.mubr.bf16.gmra.mxu1 %v7324_v13  ;;  %7001 = vmatmul.mubr.bf16.gmra.mxu0 %v7323_v58  ;;  %v3287_v56 = vadd.f32 %v3142_v47, %v3017_v54  ;;  %v7328_v47 = vld [vmem:[%s7579_s18 + $0x48] sm:$0xff]  }
 0x37d   : > { %v3821_v15 = vrot.slane %v3534_v12, 7  ;;  %6884 = vmatprep.mubr.msk.bf16.mxu1 %vm7447_vm0, %v7446_v0  ;;  %7004 = vmatprep.mubr.msk.bf16.mxu0 %vm7447_vm0, %v7446_v0  ;;  %v3143_v49 = vrot.slane %v8347_v22, 1 }
 0x37e   : > { %4015 = vst [vmem:[#allocation2 + $0x50] sm:$0xff] %v3963_v11  ;;  %v6646_v18 = vpop.f32.mrf.mxu1  ;;  %v6766_v19 = vpop.f32.mrf.mxu0 }
 0x37f   : > { %v3822_v21 = vsel %vm3797_vm2, %v3819_v4, %v3821_v15  ;;  %v3144_v58 = vsel %vm3111_vm1, %v3141_v31, %v3143_v49  ;;  %v3021_v31 = vld [vmem:[#allocation2 + $0x90] sm:$0xff] }
 0x380   : > { %v3964_v23 = vadd.f32 %v3822_v21, %v3284_v17  ;;  %v8357_v46 = vpop.f32.mrf.mxu1  ;;  %v3537_v24 = vpop.f32.mrf.mxu0  ;;  %v3288_v2 = vadd.f32 %v3144_v58, %v3018_v63 }
 0x381   : > { %v3823_v26 = vrot.slane %v3537_v24, 7  ;;  %v3145_v40 = vrot.slane %v8357_v46, 1 }
 0x382   : > { %4016 = vst [vmem:[#allocation2 + $0x58] sm:$0xff] %v3964_v23  ;;  %v6647_v34 = vpop.f32.mrf.mxu1  ;;  %v6767_v29 = vpop.f32.mrf.mxu0 }
 0x383   : > { %v3824_v32 = vsel %vm3797_vm2, %v3821_v15, %v3823_v26  ;;  %v3146_v16 = vsel %vm3111_vm1, %v3143_v49, %v3145_v40  ;;  %v3022_v49 = vld [vmem:[#allocation2 + $0x98] sm:$0xff] }
 0x384   : > { %v3965_v33 = vadd.f32 %v3824_v32, %v3285_v27  ;;  %v8362_v35 = vpop.f32.mrf.mxu1  ;;  %v3542_v37 = vpop.f32.mrf.mxu0  ;;  %6885 = vmatmul.mubr.bf16.gmra.mxu1 %v7325_v36  ;;  %7005 = vmatmul.mubr.bf16.gmra.mxu0 %v7324_v13  ;;  %v3289_v11 = vadd.f32 %v3146_v16, %v3019_v9  ;;  %v7329_v16 = vld [vmem:[%s7579_s18 + $0x50] sm:$0xff]  }
 0x385   : > { %v3825_v39 = vrot.slane %v3542_v37, 7  ;;  %6888 = vmatprep.mubr.msk.bf16.mxu1 %vm7447_vm0, %v7446_v0  ;;  %7008 = vmatprep.mubr.msk.bf16.mxu0 %vm7447_vm0, %v7446_v0  ;;  %v3147_v4 = vrot.slane %v8362_v35, 1 }
 0x386   : > { %4017 = vst [vmem:[#allocation2 + $0x60] sm:$0xff] %v3965_v33  ;;  %v6650_v43 = vpop.f32.mrf.mxu1  ;;  %v6770_v45 = vpop.f32.mrf.mxu0 }
 0x387   : > { %v3826_v52 = vsel %vm3797_vm2, %v3823_v26, %v3825_v39  ;;  %v3148_v13 = vsel %vm3111_vm1, %v3145_v40, %v3147_v4  ;;  %v3023_v40 = vld [vmem:[#allocation2 + $0xa0] sm:$0xff] }
 0x388   : > { %v3966_v38 = vadd.f32 %v3826_v52, %v3286_v41  ;;  %v8372_v51 = vpop.f32.mrf.mxu1  ;;  %v3545_v53 = vpop.f32.mrf.mxu0  ;;  %v3290_v23 = vadd.f32 %v3148_v13, %v3020_v20 }
 0x389   : > { %v3827_v55 = vrot.slane %v3545_v53, 7  ;;  %v3149_v14 = vrot.slane %v8372_v51, 1 }
 0x38a   : > { %4018 = vst [vmem:[#allocation2 + $0x68] sm:$0xff] %v3966_v38  ;;  %v6651_v57 = vpop.f32.mrf.mxu1  ;;  %v6771_v50 = vpop.f32.mrf.mxu0 }
 0x38b   : > { %v3828_v59 = vsel %vm3797_vm2, %v3825_v39, %v3827_v55  ;;  %v3150_v25 = vsel %vm3111_vm1, %v3147_v4, %v3149_v14  ;;  %v3024_v4 = vld [vmem:[#allocation2 + $0xa8] sm:$0xff] }
 0x38c   : > { %v3967_v10 = vadd.f32 %v3828_v59, %v3287_v56  ;;  %v8377_v60 = vpop.f32.mrf.mxu1  ;;  %v3550_v61 = vpop.f32.mrf.mxu0  ;;  %6889 = vmatmul.mubr.bf16.gmra.mxu1 %v7326_v62  ;;  %7009 = vmatmul.mubr.bf16.gmra.mxu0 %v7325_v36  ;;  %v3291_v33 = vadd.f32 %v3150_v25, %v3021_v31  ;;  %v7330_v25 = vld [vmem:[%s7579_s18 + $0x58] sm:$0xff]  }
 0x38d   : > { %v3829_v1 = vrot.slane %v3550_v61, 7  ;;  %6892 = vmatprep.mubr.msk.bf16.mxu1 %vm7447_vm0, %v7446_v0  ;;  %7012 = vmatprep.mubr.msk.bf16.mxu0 %vm7447_vm0, %v7446_v0  ;;  %v3151_v26 = vrot.slane %v8377_v60, 1 }
 0x38e   : > { %4019 = vst [vmem:[#allocation2 + $0x70] sm:$0xff] %v3967_v10  ;;  %v6654_v42 = vpop.f32.mrf.mxu1  ;;  %v6774_v3 = vpop.f32.mrf.mxu0 }
 0x38f   : > { %v3830_v5 = vsel %vm3797_vm2, %v3827_v55, %v3829_v1  ;;  %v3152_v36 = vsel %vm3111_vm1, %v3149_v14, %v3151_v26  ;;  %v3025_v14 = vld [vmem:[#allocation2 + $0xb0] sm:$0xff] }
 0x390   : > { %v3968_v6 = vadd.f32 %v3830_v5, %v3288_v2  ;;  %v8387_v7 = vpop.f32.mrf.mxu1  ;;  %v3553_v8 = vpop.f32.mrf.mxu0  ;;  %v3292_v38 = vadd.f32 %v3152_v36, %v3022_v49 }
 0x391   : > { %v3831_v44 = vrot.slane %v3553_v8, 7  ;;  %v3153_v48 = vrot.slane %v8387_v7, 1 }
 0x392   : > { %4020 = vst [vmem:[#allocation2 + $0x78] sm:$0xff] %v3968_v6  ;;  %v6655_v22 = vpop.f32.mrf.mxu1  ;;  %v6775_v12 = vpop.f32.mrf.mxu0 }
 0x393   : > { %v3832_v15 = vsel %vm3797_vm2, %v3829_v1, %v3831_v44  ;;  %v3154_v54 = vsel %vm3111_vm1, %v3151_v26, %v3153_v48  ;;  %v3026_v26 = vld [vmem:[#allocation2 + $0xb8] sm:$0xff] }
 0x394   : > { %v3969_v17 = vadd.f32 %v3832_v15, %v3289_v11  ;;  %v8392_v18 = vpop.f32.mrf.mxu1  ;;  %v3558_v19 = vpop.f32.mrf.mxu0  ;;  %6893 = vmatmul.mubr.bf16.gmra.mxu1 %v7327_v28  ;;  %7013 = vmatmul.mubr.bf16.gmra.mxu0 %v7326_v62  ;;  %v3293_v10 = vadd.f32 %v3154_v54, %v3023_v40  ;;  %v7331_v54 = vld [vmem:[%s7579_s18 + $0x60] sm:$0xff]  }
 0x395   : > { %v3833_v21 = vrot.slane %v3558_v19, 7  ;;  %6896 = vmatprep.mubr.msk.bf16.mxu1 %vm7447_vm0, %v7446_v0  ;;  %7016 = vmatprep.mubr.msk.bf16.mxu0 %vm7447_vm0, %v7446_v0  ;;  %v3155_v55 = vrot.slane %v8392_v18, 1 }
 0x396   : > { %4021 = vst [vmem:[#allocation2 + $0x80] sm:$0xff] %v3969_v17  ;;  %v6658_v46 = vpop.f32.mrf.mxu1  ;;  %v6778_v24 = vpop.f32.mrf.mxu0 }
 0x397   : > { %v3834_v27 = vsel %vm3797_vm2, %v3831_v44, %v3833_v21  ;;  %v3156_v62 = vsel %vm3111_vm1, %v3153_v48, %v3155_v55  ;;  %v3027_v48 = vld [vmem:[#allocation2 + $0xc0] sm:$0xff] }
 0x398   : > { %v3970_v34 = vadd.f32 %v3834_v27, %v3290_v23  ;;  %v8402_v29 = vpop.f32.mrf.mxu1  ;;  %v3561_v30 = vpop.f32.mrf.mxu0  ;;  %v3294_v6 = vadd.f32 %v3156_v62, %v3024_v4 }
 0x399   : > { %v3835_v32 = vrot.slane %v3561_v30, 7  ;;  %v3157_v63 = vrot.slane %v8402_v29, 1 }
 0x39a   : > { %4022 = vst [vmem:[#allocation2 + $0x88] sm:$0xff] %v3970_v34  ;;  %v6659_v35 = vpop.f32.mrf.mxu1  ;;  %v6779_v37 = vpop.f32.mrf.mxu0 }
 0x39b   : > { %v3836_v39 = vsel %vm3797_vm2, %v3833_v21, %v3835_v32  ;;  %v3158_v9 = vsel %vm3111_vm1, %v3155_v55, %v3157_v63  ;;  %v3028_v55 = vld [vmem:[#allocation2 + $0xc8] sm:$0xff] }
 0x39c   : > { %v3971_v41 = vadd.f32 %v3836_v39, %v3291_v33  ;;  %v8407_v43 = vpop.f32.mrf.mxu1  ;;  %v3566_v45 = vpop.f32.mrf.mxu0  ;;  %6897 = vmatmul.mubr.bf16.gmra.mxu1 %v7328_v47  ;;  %7017 = vmatmul.mubr.bf16.gmra.mxu0 %v7327_v28  ;;  %v3295_v17 = vadd.f32 %v3158_v9, %v3025_v14  ;;  %v7332_v9 = vld [vmem:[%s7579_s18 + $0x68] sm:$0xff]  }
 0x39d   : > { %v3837_v52 = vrot.slane %v3566_v45, 7  ;;  %6900 = vmatprep.mubr.msk.bf16.mxu1 %vm7447_vm0, %v7446_v0  ;;  %7020 = vmatprep.mubr.msk.bf16.mxu0 %vm7447_vm0, %v7446_v0  ;;  %v3159_v44 = vrot.slane %v8407_v43, 1 }
 0x39e   : > { %4023 = vst [vmem:[#allocation2 + $0x90] sm:$0xff] %v3971_v41  ;;  %v6662_v51 = vpop.f32.mrf.mxu1  ;;  %v6782_v53 = vpop.f32.mrf.mxu0 }
 0x39f   : > { %v3838_v56 = vsel %vm3797_vm2, %v3835_v32, %v3837_v52  ;;  %v3160_v28 = vsel %vm3111_vm1, %v3157_v63, %v3159_v44  ;;  %v3029_v63 = vld [vmem:[#allocation2 + $0xd0] sm:$0xff] }
 0x3a0   : > { %v3972_v57 = vadd.f32 %v3838_v56, %v3292_v38  ;;  %v8417_v50 = vpop.f32.mrf.mxu1  ;;  %v3569_v58 = vpop.f32.mrf.mxu0  ;;  %v3296_v34 = vadd.f32 %v3160_v28, %v3026_v26 }
 0x3a1   : > { %v3839_v59 = vrot.slane %v3569_v58, 7  ;;  %v3161_v20 = vrot.slane %v8417_v50, 1 }
 0x3a2   : > { %4024 = vst [vmem:[#allocation2 + $0x98] sm:$0xff] %v3972_v57  ;;  %v6663_v60 = vpop.f32.mrf.mxu1  ;;  %v6783_v61 = vpop.f32.mrf.mxu0 }
 0x3a3   : > { %v3840_v1 = vsel %vm3797_vm2, %v3837_v52, %v3839_v59  ;;  %v3162_v31 = vsel %vm3111_vm1, %v3159_v44, %v3161_v20  ;;  %v3030_v44 = vld [vmem:[#allocation2 + $0xd8] sm:$0xff] }
 0x3a4   : > { %v3973_v2 = vadd.f32 %v3840_v1, %v3293_v10  ;;  %v8422_v42 = vpop.f32.mrf.mxu1  ;;  %v3574_v3 = vpop.f32.mrf.mxu0  ;;  %6901 = vmatmul.mubr.bf16.gmra.mxu1 %v7329_v16  ;;  %7021 = vmatmul.mubr.bf16.gmra.mxu0 %v7328_v47  ;;  %v3297_v41 = vadd.f32 %v3162_v31, %v3027_v48  ;;  %v7333_v31 = vld [vmem:[%s7579_s18 + $0x70] sm:$0xff]  }
 0x3a5   : > { %v3841_v5 = vrot.slane %v3574_v3, 7  ;;  %6904 = vmatprep.mubr.msk.bf16.mxu1 %vm7447_vm0, %v7446_v0  ;;  %7024 = vmatprep.mubr.msk.bf16.mxu0 %vm7447_vm0, %v7446_v0  ;;  %v3163_v32 = vrot.slane %v8422_v42, 1 }
 0x3a6   : > { %4025 = vst [vmem:[#allocation2 + $0xa0] sm:$0xff] %v3973_v2  ;;  %v6666_v7 = vpop.f32.mrf.mxu1  ;;  %v6786_v8 = vpop.f32.mrf.mxu0 }
 0x3a7   : > { %v3842_v11 = vsel %vm3797_vm2, %v3839_v59, %v3841_v5  ;;  %v3164_v47 = vsel %vm3111_vm1, %v3161_v20, %v3163_v32  ;;  %v3031_v20 = vld [vmem:[#allocation2 + $0xe0] sm:$0xff] }
 0x3a8   : > { %v3974_v22 = vadd.f32 %v3842_v11, %v3294_v6  ;;  %v8432_v12 = vpop.f32.mrf.mxu1  ;;  %v3577_v13 = vpop.f32.mrf.mxu0  ;;  %v3298_v57 = vadd.f32 %v3164_v47, %v3028_v55 }
 0x3a9   : > { %v3843_v15 = vrot.slane %v3577_v13, 7  ;;  %v3165_v49 = vrot.slane %v8432_v12, 1 }
 0x3aa   : > { %4026 = vst [vmem:[#allocation2 + $0xa8] sm:$0xff] %v3974_v22  ;;  %v6667_v18 = vpop.f32.mrf.mxu1  ;;  %v6787_v19 = vpop.f32.mrf.mxu0 }
 0x3ab   : > { %v3844_v21 = vsel %vm3797_vm2, %v3841_v5, %v3843_v15  ;;  %v3166_v40 = vsel %vm3111_vm1, %v3163_v32, %v3165_v49  ;;  %v3032_v32 = vld [vmem:[#allocation2 + $0xe8] sm:$0xff] }
 0x3ac   : > { %v3975_v23 = vadd.f32 %v3844_v21, %v3295_v17  ;;  %v8437_v46 = vpop.f32.mrf.mxu1  ;;  %v3582_v24 = vpop.f32.mrf.mxu0  ;;  %6905 = vmatmul.mubr.bf16.gmra.mxu1 %v7330_v25  ;;  %7025 = vmatmul.mubr.bf16.gmra.mxu0 %v7329_v16  ;;  %v3299_v2 = vadd.f32 %v3166_v40, %v3029_v63  ;;  %v7334_v40 = vld [vmem:[%s7579_s18 + $0x78] sm:$0xff]  }
 0x3ad   : > { %v3845_v27 = vrot.slane %v3582_v24, 7  ;;  %6908 = vmatprep.mubr.msk.bf16.mxu1 %vm7447_vm0, %v7446_v0  ;;  %7028 = vmatprep.mubr.msk.bf16.mxu0 %vm7447_vm0, %v7446_v0  ;;  %v3167_v59 = vrot.slane %v8437_v46, 1 }
 0x3ae   : > { %4027 = vst [vmem:[#allocation2 + $0xb0] sm:$0xff] %v3975_v23  ;;  %v6670_v29 = vpop.f32.mrf.mxu1  ;;  %v6790_v30 = vpop.f32.mrf.mxu0 }
 0x3af   : > { %v3846_v33 = vsel %vm3797_vm2, %v3843_v15, %v3845_v27  ;;  %v3168_v16 = vsel %vm3111_vm1, %v3165_v49, %v3167_v59  ;;  %v3033_v49 = vld [vmem:[#allocation2 + $0xf0] sm:$0xff] }
 0x3b0   : > { %v3976_v35 = vadd.f32 %v3846_v33, %v3296_v34  ;;  %v8447_v37 = vpop.f32.mrf.mxu1  ;;  %v3585_v36 = vpop.f32.mrf.mxu0  ;;  %v3300_v22 = vadd.f32 %v3168_v16, %v3030_v44 }
 0x3b1   : > { %v3847_v39 = vrot.slane %v3585_v36, 7  ;;  %v3169_v4 = vrot.slane %v8447_v37, 1 }
 0x3b2   : > { %4028 = vst [vmem:[#allocation2 + $0xb8] sm:$0xff] %v3976_v35  ;;  %v6671_v43 = vpop.f32.mrf.mxu1  ;;  %v6791_v45 = vpop.f32.mrf.mxu0 }
 0x3b3   : > { %v3848_v52 = vsel %vm3797_vm2, %v3845_v27, %v3847_v39  ;;  %v3170_v14 = vsel %vm3111_vm1, %v3167_v59, %v3169_v4  ;;  %v3034_v59 = vld [vmem:[#allocation2 + $0xf8] sm:$0xff] }
 0x3b4   : > { %v3977_v38 = vadd.f32 %v3848_v52, %v3297_v41  ;;  %v8452_v51 = vpop.f32.mrf.mxu1  ;;  %v3590_v53 = vpop.f32.mrf.mxu0  ;;  %6909 = vmatmul.mubr.bf16.gmra.mxu1 %v7331_v54  ;;  %7029 = vmatmul.mubr.bf16.gmra.mxu0 %v7330_v25  ;;  %v3301_v23 = vadd.f32 %v3170_v14, %v3031_v20  ;;  %v7335_v14 = vld [vmem:[%s7579_s18 + $0x80] sm:$0xff]  }
 0x3b5   : > { %v3849_v56 = vrot.slane %v3590_v53, 7  ;;  %6912 = vmatprep.mubr.msk.bf16.mxu1 %vm7447_vm0, %v7446_v0  ;;  %7032 = vmatprep.mubr.msk.bf16.mxu0 %vm7447_vm0, %v7446_v0  ;;  %v3171_v15 = vrot.slane %v8452_v51, 1 }
 0x3b6   : > { %4029 = vst [vmem:[#allocation2 + $0xc0] sm:$0xff] %v3977_v38  ;;  %v6674_v50 = vpop.f32.mrf.mxu1  ;;  %v6794_v58 = vpop.f32.mrf.mxu0 }
 0x3b7   : > { %v3850_v10 = vsel %vm3797_vm2, %v3847_v39, %v3849_v56  ;;  %v3172_v25 = vsel %vm3111_vm1, %v3169_v4, %v3171_v15  ;;  %v3035_v4 = vld [vmem:[#allocation2 + $0x100] sm:$0xff] }
 0x3b8   : > { %v3978_v60 = vadd.f32 %v3850_v10, %v3298_v57  ;;  %v8462_v61 = vpop.f32.mrf.mxu1  ;;  %v3593_v62 = vpop.f32.mrf.mxu0  ;;  %v3302_v35 = vadd.f32 %v3172_v25, %v3032_v32 }
 0x3b9   : > { %v3851_v1 = vrot.slane %v3593_v62, 7  ;;  %v3173_v26 = vrot.slane %v8462_v61, 1 }
 0x3ba   : > { %4030 = vst [vmem:[#allocation2 + $0xc8] sm:$0xff] %v3978_v60  ;;  %v6675_v42 = vpop.f32.mrf.mxu1  ;;  %v6795_v3 = vpop.f32.mrf.mxu0 }
 0x3bb   : > { %v3852_v5 = vsel %vm3797_vm2, %v3849_v56, %v3851_v1  ;;  %v3174_v48 = vsel %vm3111_vm1, %v3171_v15, %v3173_v26  ;;  %v3036_v15 = vld [vmem:[#allocation2 + $0x108] sm:$0xff] }
 0x3bc   : > { %v3979_v6 = vadd.f32 %v3852_v5, %v3299_v2  ;;  %v8467_v7 = vpop.f32.mrf.mxu1  ;;  %v3598_v8 = vpop.f32.mrf.mxu0  ;;  %6913 = vmatmul.mubr.bf16.gmra.mxu1 %v7332_v9  ;;  %7033 = vmatmul.mubr.bf16.gmra.mxu0 %v7331_v54  ;;  %v3303_v38 = vadd.f32 %v3174_v48, %v3033_v49  ;;  %v7336_v48 = vld [vmem:[%s7579_s18 + $0x88] sm:$0xff]  }
 0x3bd   : > { %v3853_v11 = vrot.slane %v3598_v8, 7  ;;  %6916 = vmatprep.mubr.msk.bf16.mxu1 %vm7447_vm0, %v7446_v0  ;;  %7036 = vmatprep.mubr.msk.bf16.mxu0 %vm7447_vm0, %v7446_v0  ;;  %v3175_v39 = vrot.slane %v8467_v7, 1 }
 0x3be   : > { %4031 = vst [vmem:[#allocation2 + $0xd0] sm:$0xff] %v3979_v6  ;;  %v6678_v12 = vpop.f32.mrf.mxu1  ;;  %v6798_v13 = vpop.f32.mrf.mxu0 }
 0x3bf   : > { %v3854_v17 = vsel %vm3797_vm2, %v3851_v1, %v3853_v11  ;;  %v3176_v54 = vsel %vm3111_vm1, %v3173_v26, %v3175_v39  ;;  %v3037_v26 = vld [vmem:[#allocation2 + $0x110] sm:$0xff] }
 0x3c0   : > { %v3980_v18 = vadd.f32 %v3854_v17, %v3300_v22  ;;  %v8477_v19 = vpop.f32.mrf.mxu1  ;;  %v3601_v28 = vpop.f32.mrf.mxu0  ;;  %v3304_v60 = vadd.f32 %v3176_v54, %v3034_v59 }
 0x3c1   : > { %v3855_v21 = vrot.slane %v3601_v28, 7  ;;  %v3177_v55 = vrot.slane %v8477_v19, 1 }
 0x3c2   : > { %4032 = vst [vmem:[#allocation2 + $0xd8] sm:$0xff] %v3980_v18  ;;  %v6679_v46 = vpop.f32.mrf.mxu1  ;;  %v6799_v24 = vpop.f32.mrf.mxu0 }
 0x3c3   : > { %v3856_v27 = vsel %vm3797_vm2, %v3853_v11, %v3855_v21  ;;  %v3178_v63 = vsel %vm3111_vm1, %v3175_v39, %v3177_v55  ;;  %v3038_v39 = vld [vmem:[#allocation2 + $0x118] sm:$0xff] }
 0x3c4   : > { %v3981_v34 = vadd.f32 %v3856_v27, %v3301_v23  ;;  %v8482_v29 = vpop.f32.mrf.mxu1  ;;  %v3606_v30 = vpop.f32.mrf.mxu0  ;;  %6917 = vmatmul.mubr.bf16.gmra.mxu1 %v7333_v31  ;;  %7037 = vmatmul.mubr.bf16.gmra.mxu0 %v7332_v9  ;;  %v3305_v6 = vadd.f32 %v3178_v63, %v3035_v4  ;;  %v7337_v63 = vld [vmem:[%s7579_s18 + $0x90] sm:$0xff]  }
 0x3c5   : > { %v3857_v33 = vrot.slane %v3606_v30, 7  ;;  %6920 = vmatprep.mubr.msk.bf16.mxu1 %vm7447_vm0, %v7446_v0  ;;  %7040 = vmatprep.mubr.msk.bf16.mxu0 %vm7447_vm0, %v7446_v0  ;;  %v3179_v1 = vrot.slane %v8482_v29, 1 }
 0x3c6   : > { %4033 = vst [vmem:[#allocation2 + $0xe0] sm:$0xff] %v3981_v34  ;;  %v6682_v37 = vpop.f32.mrf.mxu1  ;;  %v6802_v36 = vpop.f32.mrf.mxu0 }
 0x3c7   : > { %v3858_v41 = vsel %vm3797_vm2, %v3855_v21, %v3857_v33  ;;  %v3180_v9 = vsel %vm3111_vm1, %v3177_v55, %v3179_v1  ;;  %v3039_v55 = vld [vmem:[#allocation2 + $0x120] sm:$0xff] }
 0x3c8   : > { %v3982_v43 = vadd.f32 %v3858_v41, %v3302_v35  ;;  %v8492_v45 = vpop.f32.mrf.mxu1  ;;  %v3609_v47 = vpop.f32.mrf.mxu0  ;;  %v3306_v18 = vadd.f32 %v3180_v9, %v3036_v15 }
 0x3c9   : > { %v3859_v52 = vrot.slane %v3609_v47, 7  ;;  %v3181_v44 = vrot.slane %v8492_v45, 1 }
 0x3ca   : > { %4034 = vst [vmem:[#allocation2 + $0xe8] sm:$0xff] %v3982_v43  ;;  %v6683_v51 = vpop.f32.mrf.mxu1  ;;  %v6803_v53 = vpop.f32.mrf.mxu0 }
 0x3cb   : > { %v3860_v56 = vsel %vm3797_vm2, %v3857_v33, %v3859_v52  ;;  %v3182_v20 = vsel %vm3111_vm1, %v3179_v1, %v3181_v44  ;;  %v3040_v1 = vld [vmem:[#allocation2 + $0x128] sm:$0xff] }
 0x3cc   : > { %v3983_v57 = vadd.f32 %v3860_v56, %v3303_v38  ;;  %v8497_v50 = vpop.f32.mrf.mxu1  ;;  %v3614_v58 = vpop.f32.mrf.mxu0  ;;  %6921 = vmatmul.mubr.bf16.gmra.mxu1 %v7334_v40  ;;  %7041 = vmatmul.mubr.bf16.gmra.mxu0 %v7333_v31  ;;  %v3307_v34 = vadd.f32 %v3182_v20, %v3037_v26  ;;  %v7338_v20 = vld [vmem:[%s7579_s18 + $0x98] sm:$0xff]  }
 0x3cd   : > { %v3861_v10 = vrot.slane %v3614_v58, 7  ;;  %6924 = vmatprep.mubr.msk.bf16.mxu1 %vm7447_vm0, %v7446_v0  ;;  %7044 = vmatprep.mubr.msk.bf16.mxu0 %vm7447_vm0, %v7446_v0  ;;  %v3183_v21 = vrot.slane %v8497_v50, 1 }
 0x3ce   : > { %4035 = vst [vmem:[#allocation2 + $0xf0] sm:$0xff] %v3983_v57  ;;  %v6686_v61 = vpop.f32.mrf.mxu1  ;;  %v6806_v62 = vpop.f32.mrf.mxu0 }
 0x3cf   : > { %v3862_v2 = vsel %vm3797_vm2, %v3859_v52, %v3861_v10  ;;  %v3184_v31 = vsel %vm3111_vm1, %v3181_v44, %v3183_v21  ;;  %v3041_v44 = vld [vmem:[#allocation2 + $0x130] sm:$0xff] }
 0x3d0   : > { %v3984_v42 = vadd.f32 %v3862_v2, %v3304_v60  ;;  %v8507_v3 = vpop.f32.mrf.mxu1  ;;  %v3617_v16 = vpop.f32.mrf.mxu0  ;;  %v3308_v43 = vadd.f32 %v3184_v31, %v3038_v39 }
 0x3d1   : > { %v3863_v5 = vrot.slane %v3617_v16, 7  ;;  %v3185_v32 = vrot.slane %v8507_v3, 1 }
 0x3d2   : > { %4036 = vst [vmem:[#allocation2 + $0xf8] sm:$0xff] %v3984_v42  ;;  %v6687_v7 = vpop.f32.mrf.mxu1  ;;  %v6807_v8 = vpop.f32.mrf.mxu0 }
 0x3d3   : > { %v3864_v11 = vsel %vm3797_vm2, %v3861_v10, %v3863_v5  ;;  %v3186_v49 = vsel %vm3111_vm1, %v3183_v21, %v3185_v32  ;;  %v3042_v21 = vld [vmem:[#allocation2 + $0x138] sm:$0xff] }
 0x3d4   : > { %v3985_v22 = vadd.f32 %v3864_v11, %v3305_v6  ;;  %v8512_v12 = vpop.f32.mrf.mxu1  ;;  %v3622_v13 = vpop.f32.mrf.mxu0  ;;  %6925 = vmatmul.mubr.bf16.gmra.mxu1 %v7335_v14  ;;  %7045 = vmatmul.mubr.bf16.gmra.mxu0 %v7334_v40  ;;  %v3309_v57 = vadd.f32 %v3186_v49, %v3039_v55  ;;  %v7339_v49 = vld [vmem:[%s7579_s18 + $0xa0] sm:$0xff]  }
 0x3d5   : > { %v3865_v17 = vrot.slane %v3622_v13, 7  ;;  %6928 = vmatprep.mubr.msk.bf16.mxu1 %vm7447_vm0, %v7446_v0  ;;  %7048 = vmatprep.mubr.msk.bf16.mxu0 %vm7447_vm0, %v7446_v0  ;;  %v3187_v52 = vrot.slane %v8512_v12, 1 }
 0x3d6   : > { %4037 = vst [vmem:[#allocation2 + $0x100] sm:$0xff] %v3985_v22  ;;  %v6690_v19 = vpop.f32.mrf.mxu1  ;;  %v6810_v28 = vpop.f32.mrf.mxu0 }
 0x3d7   : > { %v3866_v23 = vsel %vm3797_vm2, %v3863_v5, %v3865_v17  ;;  %v3188_v40 = vsel %vm3111_vm1, %v3185_v32, %v3187_v52  ;;  %v3043_v32 = vld [vmem:[#allocation2 + $0x140] sm:$0xff] }
 0x3d8   : > { %v3986_v46 = vadd.f32 %v3866_v23, %v3306_v18  ;;  %v8522_v24 = vpop.f32.mrf.mxu1  ;;  %v3625_v25 = vpop.f32.mrf.mxu0  ;;  %v3310_v42 = vadd.f32 %v3188_v40, %v3040_v1 }
 0x3d9   : > { %v3867_v27 = vrot.slane %v3625_v25, 7  ;;  %v3189_v59 = vrot.slane %v8522_v24, 1 }
 0x3da   : > { %4038 = vst [vmem:[#allocation2 + $0x108] sm:$0xff] %v3986_v46  ;;  %v6691_v29 = vpop.f32.mrf.mxu1  ;;  %v6811_v30 = vpop.f32.mrf.mxu0 }
 0x3db   : > { %v3868_v33 = vsel %vm3797_vm2, %v3865_v17, %v3867_v27  ;;  %v3190_v4 = vsel %vm3111_vm1, %v3187_v52, %v3189_v59  ;;  %v3044_v52 = vld [vmem:[#allocation2 + $0x148] sm:$0xff] }
 0x3dc   : > { %v3987_v35 = vadd.f32 %v3868_v33, %v3307_v34  ;;  %v8527_v37 = vpop.f32.mrf.mxu1  ;;  %v3630_v36 = vpop.f32.mrf.mxu0  ;;  %6929 = vmatmul.mubr.bf16.gmra.mxu1 %v7336_v48  ;;  %7049 = vmatmul.mubr.bf16.gmra.mxu0 %v7335_v14  ;;  %v3311_v22 = vadd.f32 %v3190_v4, %v3041_v44  ;;  %v7340_v4 = vld [vmem:[%s7579_s18 + $0xa8] sm:$0xff]  }
 0x3dd   : > { %v3869_v41 = vrot.slane %v3630_v36, 7  ;;  %6932 = vmatprep.mubr.msk.bf16.mxu1 %vm7447_vm0, %v7446_v0  ;;  %7052 = vmatprep.mubr.msk.bf16.mxu0 %vm7447_vm0, %v7446_v0  ;;  %v3191_v5 = vrot.slane %v8527_v37, 1 }
 0x3de   : > { %4039 = vst [vmem:[#allocation2 + $0x110] sm:$0xff] %v3987_v35  ;;  %v6694_v45 = vpop.f32.mrf.mxu1  ;;  %v6814_v47 = vpop.f32.mrf.mxu0 }
 0x3df   : > { %v3870_v38 = vsel %vm3797_vm2, %v3867_v27, %v3869_v41  ;;  %v3192_v14 = vsel %vm3111_vm1, %v3189_v59, %v3191_v5  ;;  %v3045_v59 = vld [vmem:[#allocation2 + $0x150] sm:$0xff] }
 0x3e0   : > { %v3988_v51 = vadd.f32 %v3870_v38, %v3308_v43  ;;  %v8537_v53 = vpop.f32.mrf.mxu1  ;;  %v3633_v54 = vpop.f32.mrf.mxu0  ;;  %v3312_v46 = vadd.f32 %v3192_v14, %v3042_v21 }
 0x3e1   : > { %v3871_v56 = vrot.slane %v3633_v54, 7  ;;  %v3193_v15 = vrot.slane %v8537_v53, 1 }
 0x3e2   : > { %4040 = vst [vmem:[#allocation2 + $0x118] sm:$0xff] %v3988_v51  ;;  %v6695_v50 = vpop.f32.mrf.mxu1  ;;  %v6815_v58 = vpop.f32.mrf.mxu0 }
 0x3e3   : > { %v3872_v10 = vsel %vm3797_vm2, %v3869_v41, %v3871_v56  ;;  %v3194_v26 = vsel %vm3111_vm1, %v3191_v5, %v3193_v15  ;;  %v3046_v5 = vld [vmem:[#allocation2 + $0x158] sm:$0xff] }
 0x3e4   : > { %v3989_v60 = vadd.f32 %v3872_v10, %v3309_v57  ;;  %v8542_v61 = vpop.f32.mrf.mxu1  ;;  %v3638_v62 = vpop.f32.mrf.mxu0  ;;  %6933 = vmatmul.mubr.bf16.gmra.mxu1 %v7337_v63  ;;  %7053 = vmatmul.mubr.bf16.gmra.mxu0 %v7336_v48  ;;  %v3313_v35 = vadd.f32 %v3194_v26, %v3043_v32  ;;  %v7341_v26 = vld [vmem:[%s7579_s18 + $0xb0] sm:$0xff]  }
 0x3e5   : > { %v3873_v2 = vrot.slane %v3638_v62, 7  ;;  %6936 = vmatprep.mubr.msk.bf16.mxu1 %vm7447_vm0, %v7446_v0  ;;  %7056 = vmatprep.mubr.msk.bf16.mxu0 %vm7447_vm0, %v7446_v0  ;;  %v3195_v27 = vrot.slane %v8542_v61, 1 }
 0x3e6   : > { %4041 = vst [vmem:[#allocation2 + $0x120] sm:$0xff] %v3989_v60  ;;  %v6698_v3 = vpop.f32.mrf.mxu1  ;;  %v6818_v16 = vpop.f32.mrf.mxu0 }
 0x3e7   : > { %v3874_v6 = vsel %vm3797_vm2, %v3871_v56, %v3873_v2  ;;  %v3196_v48 = vsel %vm3111_vm1, %v3193_v15, %v3195_v27  ;;  %v3047_v15 = vld [vmem:[#allocation2 + $0x160] sm:$0xff] }
 0x3e8   : > { %v3990_v7 = vadd.f32 %v3874_v6, %v3310_v42  ;;  %v8552_v8 = vpop.f32.mrf.mxu1  ;;  %v3641_v9 = vpop.f32.mrf.mxu0  ;;  %v3314_v51 = vadd.f32 %v3196_v48, %v3044_v52 }
 0x3e9   : > { %v3875_v11 = vrot.slane %v3641_v9, 7  ;;  %v3197_v39 = vrot.slane %v8552_v8, 1 }
 0x3ea   : > { %4042 = vst [vmem:[#allocation2 + $0x128] sm:$0xff] %v3990_v7  ;;  %v6699_v12 = vpop.f32.mrf.mxu1  ;;  %v6819_v13 = vpop.f32.mrf.mxu0 }
 0x3eb   : > { %v3876_v17 = vsel %vm3797_vm2, %v3873_v2, %v3875_v11  ;;  %v3198_v55 = vsel %vm3111_vm1, %v3195_v27, %v3197_v39  ;;  %v3048_v27 = vld [vmem:[#allocation2 + $0x168] sm:$0xff] }
 0x3ec   : > { %v3991_v18 = vadd.f32 %v3876_v17, %v3311_v22  ;;  %v8557_v19 = vpop.f32.mrf.mxu1  ;;  %v3646_v28 = vpop.f32.mrf.mxu0  ;;  %6937 = vmatmul.mubr.bf16.gmra.mxu1 %v7338_v20  ;;  %7057 = vmatmul.mubr.bf16.gmra.mxu0 %v7337_v63  ;;  %v3315_v60 = vadd.f32 %v3198_v55, %v3045_v59  ;;  %v7342_v55 = vld [vmem:[%s7579_s18 + $0xb8] sm:$0xff]  }
 0x3ed   : > { %v3877_v23 = vrot.slane %v3646_v28, 7  ;;  %6940 = vmatprep.mubr.msk.bf16.mxu1 %vm7447_vm0, %v7446_v0  ;;  %7060 = vmatprep.mubr.msk.bf16.mxu0 %vm7447_vm0, %v7446_v0  ;;  %v3199_v56 = vrot.slane %v8557_v19, 1 }
 0x3ee   : > { %4043 = vst [vmem:[#allocation2 + $0x130] sm:$0xff] %v3991_v18  ;;  %v6702_v24 = vpop.f32.mrf.mxu1  ;;  %v6822_v25 = vpop.f32.mrf.mxu0 }
 0x3ef   : > { %v3878_v34 = vsel %vm3797_vm2, %v3875_v11, %v3877_v23  ;;  %v3200_v63 = vsel %vm3111_vm1, %v3197_v39, %v3199_v56  ;;  %v3049_v39 = vld [vmem:[#allocation2 + $0x170] sm:$0xff] }
 0x3f0   : > { %v3992_v29 = vadd.f32 %v3878_v34, %v3312_v46  ;;  %v8567_v30 = vpop.f32.mrf.mxu1  ;;  %v3649_v31 = vpop.f32.mrf.mxu0  ;;  %v3316_v7 = vadd.f32 %v3200_v63, %v3046_v5 }
 0x3f1   : > { %v3879_v33 = vrot.slane %v3649_v31, 7  ;;  %v3201_v1 = vrot.slane %v8567_v30, 1 }
 0x3f2   : > { %4044 = vst [vmem:[#allocation2 + $0x138] sm:$0xff] %v3992_v29  ;;  %v6703_v37 = vpop.f32.mrf.mxu1  ;;  %v6823_v36 = vpop.f32.mrf.mxu0 }
 0x3f3   : > { %v3880_v41 = vsel %vm3797_vm2, %v3877_v23, %v3879_v33  ;;  %v3202_v44 = vsel %vm3111_vm1, %v3199_v56, %v3201_v1  ;;  %v3050_v56 = vld [vmem:[#allocation2 + $0x178] sm:$0xff] }
 0x3f4   : > { %v3993_v43 = vadd.f32 %v3880_v41, %v3313_v35  ;;  %v8572_v45 = vpop.f32.mrf.mxu1  ;;  %v3654_v47 = vpop.f32.mrf.mxu0  ;;  %6941 = vmatmul.mubr.bf16.gmra.mxu1 %v7339_v49  ;;  %7061 = vmatmul.mubr.bf16.gmra.mxu0 %v7338_v20  ;;  %v3317_v18 = vadd.f32 %v3202_v44, %v3047_v15 }
 0x3f5   : > { %v3881_v38 = vrot.slane %v3654_v47, 7  ;;  %6944 = vmatprep.mubr.msk.bf16.mxu1 %vm7447_vm0, %v7446_v0  ;;  %7064 = vmatprep.mubr.msk.bf16.mxu0 %vm7447_vm0, %v7446_v0  ;;  %v3203_v11 = vrot.slane %v8572_v45, 1 }
 0x3f6   : > { %4045 = vst [vmem:[#allocation2 + $0x140] sm:$0xff] %v3993_v43  ;;  %v6706_v53 = vpop.f32.mrf.mxu1  ;;  %v6826_v54 = vpop.f32.mrf.mxu0 }
 0x3f7   : > { %v3882_v57 = vsel %vm3797_vm2, %v3879_v33, %v3881_v38  ;;  %v3204_v20 = vsel %vm3111_vm1, %v3201_v1, %v3203_v11 }
 0x3f8   : > { %v3994_v50 = vadd.f32 %v3882_v57, %v3314_v51  ;;  %v8582_v58 = vpop.f32.mrf.mxu1  ;;  %v3657_v40 = vpop.f32.mrf.mxu0  ;;  %v3318_v29 = vadd.f32 %v3204_v20, %v3048_v27  ;;  %v7343_v20 = vld [vmem:[%s7579_s18 + $0xc0] sm:$0xff]  }
 0x3f9   : > { %v3883_v10 = vrot.slane %v3657_v40, 7  ;;  %v3205_v21 = vrot.slane %v8582_v58, 1 }
 0x3fa   : > { %4046 = vst [vmem:[#allocation2 + $0x148] sm:$0xff] %v3994_v50  ;;  %v6707_v61 = vpop.f32.mrf.mxu1  ;;  %v6827_v62 = vpop.f32.mrf.mxu0 }
 0x3fb   : > { %v3884_v2 = vsel %vm3797_vm2, %v3881_v38, %v3883_v10  ;;  %v3206_v32 = vsel %vm3111_vm1, %v3203_v11, %v3205_v21  ;;  %v3054_v62 = vld [vmem:[#allocation2 + $0x198] sm:$0xff] }
 0x3fc   : > { %v3995_v42 = vadd.f32 %v3884_v2, %v3315_v60  ;;  %v8587_v3 = vpop.f32.mrf.mxu1  ;;  %v3662_v16 = vpop.f32.mrf.mxu0  ;;  %6945 = vmatmul.mubr.bf16.gmra.mxu1 %v7340_v4  ;;  %7065 = vmatmul.mubr.bf16.gmra.mxu0 %v7339_v49  ;;  %v3319_v43 = vadd.f32 %v3206_v32, %v3049_v39 }
 0x3fd   : > { %v3885_v6 = vrot.slane %v3662_v16, 7  ;;  %6948 = vmatprep.mubr.msk.bf16.mxu1 %vm7447_vm0, %v7446_v0  ;;  %7068 = vmatprep.mubr.msk.bf16.mxu0 %vm7447_vm0, %v7446_v0  ;;  %v3207_v33 = vrot.slane %v8587_v3, 1 }
 0x3fe   : > { %4047 = vst [vmem:[#allocation2 + $0x150] sm:$0xff] %v3995_v42  ;;  %v6710_v8 = vpop.f32.mrf.mxu1  ;;  %v6830_v9 = vpop.f32.mrf.mxu0 }
 0x3ff   : > { %v3886_v22 = vsel %vm3797_vm2, %v3883_v10, %v3885_v6  ;;  %v3208_v49 = vsel %vm3111_vm1, %v3205_v21, %v3207_v33  ;;  %v3056_v8 = vld [vmem:[#allocation2 + $0x1a8] sm:$0x7f] }
 0x400   : > { %v3996_v12 = vadd.f32 %v3886_v22, %v3316_v7  ;;  %v8597_v13 = vpop.f32.mrf.mxu1  ;;  %v3665_v14 = vpop.f32.mrf.mxu0  ;;  %v3320_v40 = vadd.f32 %v3208_v49, %v3050_v56  ;;  %v3055_v22 = vld [vmem:[#allocation2 + $0x1a0] sm:$0xff]  ;;  %v3052_v21 = vld [vmem:[#allocation2 + $0x188] sm:$0xff] }
 0x401   : > { %v3887_v17 = vrot.slane %v3665_v14, 7  ;;  %v3209_v52 = vrot.slane %v8597_v13, 1  ;;  %v8638_v14 = vld [vmem:[%s8959_s2] ss:$0 sm:$0xff] }
 0x402   : > { %4048 = vst [vmem:[#allocation2 + $0x158] sm:$0xff] %v3996_v12  ;;  %v6711_v19 = vpop.f32.mrf.mxu1  ;;  %v6831_v28 = vpop.f32.mrf.mxu0 }
 0x403   : > { %v3888_v23 = vsel %vm3797_vm2, %v3885_v6, %v3887_v17  ;;  %v3210_v60 = vsel %vm3111_vm1, %v3207_v33, %v3209_v52 }
 0x404   : > { %v3997_v46 = vadd.f32 %v3888_v23, %v3317_v18  ;;  %v8602_v24 = vpop.f32.mrf.mxu1  ;;  %v3670_v25 = vpop.f32.mrf.mxu0  ;;  %6949 = vmatmul.mubr.bf16.gmra.mxu1 %v7341_v26  ;;  %7069 = vmatmul.mubr.bf16.gmra.mxu0 %v7340_v4  ;;  %v3051_v4 = vld [vmem:[#allocation2 + $0x180] sm:$0xff] }
 0x405   : > { %v3889_v34 = vrot.slane %v3670_v25, 7  ;;  %6952 = vmatprep.mubr.msk.bf16.mxu1 %vm7447_vm0, %v7446_v0  ;;  %7072 = vmatprep.mubr.msk.bf16.mxu0 %vm7447_vm0, %v7446_v0  ;;  %v3211_v61 = vrot.slane %v8602_v24, 1  ;;  %v3321_v7 = vadd.f32 %v3210_v60, %v3051_v4  ;;  %v8646_v23 = vld [vmem:[%s8960_s3] ss:$0 sm:$0xff] }
 0x406   : > { %4049 = vst [vmem:[#allocation2 + $0x160] sm:$0xff] %v3997_v46  ;;  %v6714_v30 = vpop.f32.mrf.mxu1  ;;  %v6834_v31 = vpop.f32.mrf.mxu0 }
 0x407   : > { %v3890_v35 = vsel %vm3797_vm2, %v3887_v17, %v3889_v34  ;;  %v3212_v11 = vsel %vm3111_vm1, %v3209_v52, %v3211_v61 }
 0x408   : > { %v3998_v37 = vadd.f32 %v3890_v35, %v3318_v29  ;;  %v8612_v36 = vpop.f32.mrf.mxu1  ;;  %v3673_v48 = vpop.f32.mrf.mxu0  ;;  %v3322_v24 = vadd.f32 %v3212_v11, %v3052_v21  ;;  %v3053_v35 = vld [vmem:[#allocation2 + $0x190] sm:$0xff] }
 0x409   : > { %v3891_v41 = vrot.slane %v3673_v48, 7  ;;  %v3213_v57 = vrot.slane %v8612_v36, 1 }
 0x40a   : > { %4050 = vst [vmem:[#allocation2 + $0x168] sm:$0xff] %v3998_v37  ;;  %v6715_v45 = vpop.f32.mrf.mxu1  ;;  %v6835_v47 = vpop.f32.mrf.mxu0 }
 0x40b   : > { %v3892_v38 = vsel %vm3797_vm2, %v3889_v34, %v3891_v41  ;;  %v3214_v34 = vsel %vm3111_vm1, %v3211_v61, %v3213_v57 }
 0x40c   : > { %v3999_v51 = vadd.f32 %v3892_v38, %v3319_v43  ;;  %v2996_v53 = vpop.f32.mrf.mxu1  ;;  %v3678_v54 = vpop.f32.mrf.mxu0  ;;  %6953 = vmatmul.mubr.bf16.gmra.mxu1 %v7342_v55  ;;  %7073 = vmatmul.mubr.bf16.gmra.mxu0 %v7341_v26  ;;  %v3323_v48 = vadd.f32 %v3214_v34, %v3053_v35 }
 0x40d   : > { %v3215_v50 = vrot.slane %v2996_v53, 1  ;;  %v3893_v58 = vrot.slane %v3678_v54, 7  ;;  %6956 = vmatprep.mubr.msk.bf16.mxu1 %vm7447_vm0, %v7446_v0  ;;  %7076 = vmatprep.mubr.msk.bf16.mxu0 %vm7447_vm0, %v7446_v0 }
 0x40e   : > { %4051 = vst [vmem:[#allocation2 + $0x170] sm:$0xff] %v3999_v51  ;;  %v6718_v59 = vpop.f32.mrf.mxu1  ;;  %v6838_v10 = vpop.f32.mrf.mxu0  ;;  %v7344_v51 = vld [vmem:[%s7579_s18 + $0xc8] sm:$0xff]  }
 0x40f   : > { %v3216_v63 = vsel %vm3111_vm1, %v3213_v57, %v3215_v50  ;;  %v3894_v1 = vsel %vm3797_vm2, %v3891_v41, %v3893_v58 }
 0x410   : > { %v3324_v2 = vadd.f32 %v3216_v63, %v3054_v62  ;;  %v4000_v42 = vadd.f32 %v3894_v1, %v3320_v40  ;;  %v2999_v3 = vpop.f32.mrf.mxu1  ;;  %v3681_v16 = vpop.f32.mrf.mxu0  ;;  %v7345_v62 = vld [vmem:[%s7579_s18 + $0xd0] sm:$0xff]  }
 0x411   : > { %v3217_v5 = vrot.slane %v2999_v3, 1  ;;  %v3895_v6 = vrot.slane %v3681_v16, 7 }
 0x412   : > { %3378 = vst [vmem:[#allocation2 + $0x198] sm:$0xff] %v3324_v2  ;;  %4052 = vst [vmem:[#allocation2 + $0x178] sm:$0xff] %v4000_v42  ;;  %v6719_v9 = vpop.f32.mrf.mxu1  ;;  %v6839_v44 = vpop.f32.mrf.mxu0 }
 0x413   : > { %v3218_v12 = vsel %vm3111_vm1, %v3215_v50, %v3217_v5  ;;  %v3326_v13 = vadd.f32 %v3217_v5, %v3056_v8  ;;  %v3896_v15 = vsel %vm3797_vm2, %v3893_v58, %v3895_v6  ;;  %v4368_v44 = vld [vmem:[#allocation2] sm:$0xff] }
 0x414   : > { %v3325_v17 = vadd.f32 %v3218_v12, %v3055_v22  ;;  %v4001_v18 = vadd.f32 %v3896_v15, %v3321_v7  ;;  %v3686_v19 = vpop.f32.mrf.mxu0  ;;  %v4156_v28 = vpop.f32.mrf.mxu1  ;;  %6957 = vmatmul.mubr.bf16.gmra.mxu1 %v7343_v20  ;;  %7077 = vmatmul.mubr.bf16.gmra.mxu0 %v7342_v55 }
 0x415   : > { %3380 = vst [vmem:[#allocation2 + $0x1a8] sm:$0x7f] %v3326_v13  ;;  %v3897_v46 = vrot.slane %v3686_v19, 7  ;;  %6960 = vmatprep.mubr.msk.bf16.mxu1 %vm7447_vm0, %v7446_v0  ;;  %7080 = vmatprep.mubr.msk.bf16.mxu0 %vm7447_vm0, %v7446_v0  ;;  %v4369_v28 = vld [vmem:[#allocation2 + $0x8] sm:$0xff] }
 0x416   : > { %3379 = vst [vmem:[#allocation2 + $0x1a0] sm:$0xff] %v3325_v17  ;;  %v5301_v25 = vmul.f32 %v8638_v14, %v3325_v17  ;;  %4053 = vst [vmem:[#allocation2 + $0x180] sm:$0xff] %v4001_v18  ;;  %v6842_v26 = vpop.f32.mrf.mxu0  ;;  %v6862_v27 = vpop.f32.mrf.mxu1 }
 0x417   : > { %v3898_v29 = vsel %vm3797_vm2, %v3895_v6, %v3897_v46 }
 0x418   : > { %v5362_v30 = vadd.f32 %v8646_v23, %v5301_v25  ;;  %v4002_v31 = vadd.f32 %v3898_v29, %v3322_v24  ;;  %v3689_v32 = vpop.f32.mrf.mxu0  ;;  %v4158_v33 = vpop.f32.mrf.mxu1 }
 0x419   : > { %v3744_v37 = vld [vmem:[#allocation2 + $0x198] sm:$0x1]  ;;  %v3899_v36 = vrot.slane %v3689_v32, 7 }
 0x41a   : > { %v5416_v39 = vmax.f32 %v5362_v30, 0.0  ;;  %4054 = vst [vmem:[#allocation2 + $0x188] sm:$0xff] %v4002_v31  ;;  %v6843_v41 = vpop.f32.mrf.mxu0  ;;  %v6863_v43 = vpop.f32.mrf.mxu1  ;;  %v4370_v31 = vld [vmem:[#allocation2 + $0x10] sm:$0xff] }
 0x41b   : > { %v3900_v45 = vsel %vm3797_vm2, %v3897_v46, %v3899_v36  ;;  %v4004_v47 = vadd.f32 %v3899_v36, %v3744_v37 }
 0x41c   : > { %v5241_v49 = vld [vmem:[#allocation2 + $0x1a8] sm:$0xff]  ;;  %5471 = vst.msk [vmem:[%s8659_s22 + $0x1a0] sm:$0xff] %vm5418_vm3, %v5416_v39  ;;  %v4003_v52 = vadd.f32 %v3900_v45, %v3323_v48  ;;  %v4162_v38 = vpop.f32.mrf.mxu1  ;;  %6961 = vmatmul.mubr.bf16.gmra.mxu1 %v7344_v51  ;;  %v4620_v53 = vpop.f32.mrf.mxu0  ;;  %7081 = vmatmul.mubr.bf16.gmra.mxu0 %v7343_v20 }
 0x41d   : > { %v5302_v54 = vmul.f32 %v8638_v14, %v5241_v49  ;;  %4056 = vst [vmem:[#allocation2 + $0x198] sm:$0x1] %v4004_v47  ;;  %6964 = vmatprep.mubr.msk.bf16.mxu1 %vm7447_vm0, %v7446_v0  ;;  %7084 = vmatprep.mubr.msk.bf16.mxu0 %vm7447_vm0, %v7446_v0  ;;  %v4371_v49 = vld [vmem:[#allocation2 + $0x18] sm:$0xff] }
 0x41e   : > { %4055 = vst [vmem:[#allocation2 + $0x190] sm:$0xff] %v4003_v52  ;;  %v6866_v55 = vpop.f32.mrf.mxu1  ;;  %v6986_v56 = vpop.f32.mrf.mxu0 }
 0x41f   : > { %v5363_v57 = vadd.f32 %v8646_v23, %v5302_v54 }
 0x420   : > { %v4164_v50 = vpop.f32.mrf.mxu1  ;;  %v4622_v58 = vpop.f32.mrf.mxu0 }
 0x421   : > { %v5417_v40 = vmax.f32 %v5363_v57, 0.0  ;;  %v4419_v12 = vadd.f32 %v4368_v44, %v4164_v50 }
 0x422   : > { %v6867_v59 = vpop.f32.mrf.mxu1  ;;  %v6987_v10 = vpop.f32.mrf.mxu0 }
 0x423   : > { %5472 = vst.msk [vmem:[%s8659_s22 + $0x1a8] sm:$0xff] %vm5418_vm3, %v5417_v40  ;;  %v4372_v59 = vld [vmem:[#allocation2 + $0x20] sm:$0xff] }
 0x424   : > { %v5239_v60 = vld [vmem:[#allocation2 + $0x198] sm:$0xff]  ;;  %v4169_v61 = vpop.f32.mrf.mxu1  ;;  %6965 = vmatmul.mubr.bf16.gmra.mxu1 %v7345_v62  ;;  %v4626_v63 = vpop.f32.mrf.mxu0  ;;  %7085 = vmatmul.mubr.bf16.gmra.mxu0 %v7344_v51 }
 0x425   : > { %v5300_v1 = vmul.f32 %v8638_v14, %v5239_v60  ;;  %7088 = vmatprep.mubr.msk.bf16.mxu0 %vm7447_vm0, %v7446_v0  ;;  %v4420_v21 = vadd.f32 %v4369_v28, %v4169_v61 }
 0x426   : > { %v6870_v2 = vpop.f32.mrf.mxu1  ;;  %v6990_v42 = vpop.f32.mrf.mxu0 }
 0x427   : > { %v5361_v3 = vadd.f32 %v8646_v23, %v5300_v1 }
 0x428   : > { %v4172_v16 = vpop.f32.mrf.mxu1  ;;  %v4628_v4 = vpop.f32.mrf.mxu0 }
 0x429   : > { %v5415_v5 = vmax.f32 %v5361_v3, 0.0  ;;  %v4934_v11 = vrot.slane %v4628_v4, 1  ;;  %v4421_v33 = vadd.f32 %v4370_v31, %v4172_v16 }
 0x42a   : > { %v6871_v6 = vpop.f32.mrf.mxu1  ;;  %v6991_v7 = vpop.f32.mrf.mxu0 }
 0x42b   : > { %5470 = vst.msk [vmem:[%s8659_s22 + $0x198] sm:$0xff] %vm5418_vm3, %v5415_v5  ;;  %v4373_v5 = vld [vmem:[#allocation2 + $0x28] sm:$0xff] }
 0x42c   : > { %v4177_v8 = vpop.f32.mrf.mxu1  ;;  %v4633_v9 = vpop.f32.mrf.mxu0  ;;  %7089 = vmatmul.mubr.bf16.gmra.mxu0 %v7345_v62 }
 0x42d   : > { %v4935_v22 = vrot.slane %v4633_v9, 1  ;;  %v4422_v38 = vadd.f32 %v4371_v49, %v4177_v8 }
 0x42e   : > { %v6874_v13 = vpop.f32.mrf.mxu1  ;;  %v6994_v0 = vpop.f32.mrf.mxu0 }
 0x42f   : > { %v4936_v15 = vsel %vm3111_vm1, %v4934_v11, %v4935_v22 }
 0x430   : > { %v5086_v17 = vadd.f32 %v4936_v15, %v4419_v12  ;;  %v4180_v18 = vpop.f32.mrf.mxu1  ;;  %v4636_v19 = vpop.f32.mrf.mxu0 }
 0x431   : > { %v4937_v20 = vrot.slane %v4636_v19, 1  ;;  %v4423_v60 = vadd.f32 %v4372_v59, %v4180_v18 }
 0x432   : > { %5137 = vst [vmem:[#allocation2] sm:$0xff] %v5086_v17  ;;  %v5249_v46 = vmul.f32 %v8638_v14, %v5086_v17  ;;  %v6875_v24 = vpop.f32.mrf.mxu1  ;;  %v6995_v25 = vpop.f32.mrf.mxu0  ;;  %v4374_v17 = vld [vmem:[#allocation2 + $0x30] sm:$0xff] }
 0x433   : > { %v4938_v26 = vsel %vm3111_vm1, %v4935_v22, %v4937_v20 }
 0x434   : > { %v5310_v27 = vadd.f32 %v8646_v23, %v5249_v46  ;;  %v5087_v34 = vadd.f32 %v4938_v26, %v4420_v21  ;;  %v4185_v29 = vpop.f32.mrf.mxu1  ;;  %v4641_v30 = vpop.f32.mrf.mxu0 }
 0x435   : > { %v4939_v32 = vrot.slane %v4641_v30, 1  ;;  %v4424_v7 = vadd.f32 %v4373_v5, %v4185_v29  ;;  %v4375_v29 = vld [vmem:[#allocation2 + $0x38] sm:$0xff] }
 0x436   : > { %v5364_v35 = vmax.f32 %v5310_v27, 0.0  ;;  %5138 = vst [vmem:[#allocation2 + $0x8] sm:$0xff] %v5087_v34  ;;  %v5250_v37 = vmul.f32 %v8638_v14, %v5087_v34  ;;  %v6878_v36 = vpop.f32.mrf.mxu1  ;;  %v6998_v48 = vpop.f32.mrf.mxu0 }
 0x437   : > { %v4940_v39 = vsel %vm3111_vm1, %v4937_v20, %v4939_v32 }
 0x438   : > { %5419 = vst.msk [vmem:[%s8659_s22] sm:$0xff] %vm5418_vm3, %v5364_v35  ;;  %v5311_v41 = vadd.f32 %v8646_v23, %v5250_v37  ;;  %v5088_v43 = vadd.f32 %v4940_v39, %v4421_v33  ;;  %v4188_v45 = vpop.f32.mrf.mxu1  ;;  %v4644_v47 = vpop.f32.mrf.mxu0 }
 0x439   : > { %v4941_v52 = vrot.slane %v4644_v47, 1  ;;  %v4425_v19 = vadd.f32 %v4374_v17, %v4188_v45  ;;  %v4376_v45 = vld [vmem:[#allocation2 + $0x40] sm:$0xff] }
 0x43a   : > { %v5365_v51 = vmax.f32 %v5311_v41, 0.0  ;;  %5139 = vst [vmem:[#allocation2 + $0x10] sm:$0xff] %v5088_v43  ;;  %v5251_v53 = vmul.f32 %v8638_v14, %v5088_v43  ;;  %v6879_v54 = vpop.f32.mrf.mxu1  ;;  %v6999_v55 = vpop.f32.mrf.mxu0 }
 0x43b   : > { %v4942_v56 = vsel %vm3111_vm1, %v4939_v32, %v4941_v52 }
 0x43c   : > { %5420 = vst.msk [vmem:[%s8659_s22 + $0x8] sm:$0xff] %vm5418_vm3, %v5365_v51  ;;  %v5312_v57 = vadd.f32 %v8646_v23, %v5251_v53  ;;  %v5089_v50 = vadd.f32 %v4942_v56, %v4422_v38  ;;  %v4193_v58 = vpop.f32.mrf.mxu1  ;;  %v4649_v40 = vpop.f32.mrf.mxu0 }
 0x43d   : > { %v4943_v10 = vrot.slane %v4649_v40, 1  ;;  %v4426_v31 = vadd.f32 %v4375_v29, %v4193_v58  ;;  %v4377_v58 = vld [vmem:[#allocation2 + $0x48] sm:$0xff] }
 0x43e   : > { %v5366_v61 = vmax.f32 %v5312_v57, 0.0  ;;  %5140 = vst [vmem:[#allocation2 + $0x18] sm:$0xff] %v5089_v50  ;;  %v5252_v62 = vmul.f32 %v8638_v14, %v5089_v50  ;;  %v6882_v63 = vpop.f32.mrf.mxu1  ;;  %v7002_v1 = vpop.f32.mrf.mxu0 }
 0x43f   : > { %v4944_v2 = vsel %vm3111_vm1, %v4941_v52, %v4943_v10 }
 0x440   : > { %5421 = vst.msk [vmem:[%s8659_s22 + $0x10] sm:$0xff] %vm5418_vm3, %v5366_v61  ;;  %v5313_v42 = vadd.f32 %v8646_v23, %v5252_v62  ;;  %v5090_v3 = vadd.f32 %v4944_v2, %v4423_v60  ;;  %v4196_v16 = vpop.f32.mrf.mxu1  ;;  %v4652_v4 = vpop.f32.mrf.mxu0 }
 0x441   : > { %v4945_v6 = vrot.slane %v4652_v4, 1  ;;  %v4427_v49 = vadd.f32 %v4376_v45, %v4196_v16  ;;  %v4378_v16 = vld [vmem:[#allocation2 + $0x50] sm:$0xff] }
 0x442   : > { %v5367_v8 = vmax.f32 %v5313_v42, 0.0  ;;  %5141 = vst [vmem:[#allocation2 + $0x20] sm:$0xff] %v5090_v3  ;;  %v5253_v9 = vmul.f32 %v8638_v14, %v5090_v3  ;;  %v6883_v44 = vpop.f32.mrf.mxu1  ;;  %v7003_v11 = vpop.f32.mrf.mxu0 }
 0x443   : > { %v4946_v22 = vsel %vm3111_vm1, %v4943_v10, %v4945_v6 }
 0x444   : > { %5422 = vst.msk [vmem:[%s8659_s22 + $0x18] sm:$0xff] %vm5418_vm3, %v5367_v8  ;;  %v5314_v12 = vadd.f32 %v8646_v23, %v5253_v9  ;;  %v5091_v13 = vadd.f32 %v4946_v22, %v4424_v7  ;;  %v4201_v0 = vpop.f32.mrf.mxu1  ;;  %v4657_v15 = vpop.f32.mrf.mxu0 }
 0x445   : > { %v4947_v18 = vrot.slane %v4657_v15, 1  ;;  %v4428_v59 = vadd.f32 %v4377_v58, %v4201_v0  ;;  %v4379_v0 = vld [vmem:[#allocation2 + $0x58] sm:$0xff] }
 0x446   : > { %v5368_v28 = vmax.f32 %v5314_v12, 0.0  ;;  %5142 = vst [vmem:[#allocation2 + $0x28] sm:$0xff] %v5091_v13  ;;  %v5254_v20 = vmul.f32 %v8638_v14, %v5091_v13  ;;  %v6886_v21 = vpop.f32.mrf.mxu1  ;;  %v7006_v46 = vpop.f32.mrf.mxu0 }
 0x447   : > { %v4948_v24 = vsel %vm3111_vm1, %v4945_v6, %v4947_v18 }
 0x448   : > { %5423 = vst.msk [vmem:[%s8659_s22 + $0x20] sm:$0xff] %vm5418_vm3, %v5368_v28  ;;  %v5315_v25 = vadd.f32 %v8646_v23, %v5254_v20  ;;  %v5092_v26 = vadd.f32 %v4948_v24, %v4425_v19  ;;  %v4204_v27 = vpop.f32.mrf.mxu1  ;;  %v4660_v34 = vpop.f32.mrf.mxu0 }
 0x449   : > { %v4949_v30 = vrot.slane %v4660_v34, 1  ;;  %v4429_v5 = vadd.f32 %v4378_v16, %v4204_v27  ;;  %v4380_v27 = vld [vmem:[#allocation2 + $0x60] sm:$0xff] }
 0x44a   : > { %v5369_v32 = vmax.f32 %v5315_v25, 0.0  ;;  %5143 = vst [vmem:[#allocation2 + $0x30] sm:$0xff] %v5092_v26  ;;  %v5255_v33 = vmul.f32 %v8638_v14, %v5092_v26  ;;  %v6887_v35 = vpop.f32.mrf.mxu1  ;;  %v7007_v37 = vpop.f32.mrf.mxu0 }
 0x44b   : > { %v4950_v36 = vsel %vm3111_vm1, %v4947_v18, %v4949_v30 }
 0x44c   : > { %5424 = vst.msk [vmem:[%s8659_s22 + $0x28] sm:$0xff] %vm5418_vm3, %v5369_v32  ;;  %v5316_v48 = vadd.f32 %v8646_v23, %v5255_v33  ;;  %v5093_v39 = vadd.f32 %v4950_v36, %v4426_v31  ;;  %v4209_v41 = vpop.f32.mrf.mxu1  ;;  %v4665_v43 = vpop.f32.mrf.mxu0 }
 0x44d   : > { %v4951_v47 = vrot.slane %v4665_v43, 1  ;;  %v4430_v17 = vadd.f32 %v4379_v0, %v4209_v41  ;;  %v4381_v41 = vld [vmem:[#allocation2 + $0x68] sm:$0xff] }
 0x44e   : > { %v5370_v52 = vmax.f32 %v5316_v48, 0.0  ;;  %5144 = vst [vmem:[#allocation2 + $0x38] sm:$0xff] %v5093_v39  ;;  %v5256_v38 = vmul.f32 %v8638_v14, %v5093_v39  ;;  %v6890_v51 = vpop.f32.mrf.mxu1  ;;  %v7010_v53 = vpop.f32.mrf.mxu0 }
 0x44f   : > { %v4952_v54 = vsel %vm3111_vm1, %v4949_v30, %v4951_v47 }
 0x450   : > { %5425 = vst.msk [vmem:[%s8659_s22 + $0x30] sm:$0xff] %vm5418_vm3, %v5370_v52  ;;  %v5317_v55 = vadd.f32 %v8646_v23, %v5256_v38  ;;  %v5094_v56 = vadd.f32 %v4952_v54, %v4427_v49  ;;  %v4212_v57 = vpop.f32.mrf.mxu1  ;;  %v4668_v50 = vpop.f32.mrf.mxu0 }
 0x451   : > { %v4953_v40 = vrot.slane %v4668_v50, 1  ;;  %v4431_v29 = vadd.f32 %v4380_v27, %v4212_v57  ;;  %v4382_v57 = vld [vmem:[#allocation2 + $0x70] sm:$0xff] }
 0x452   : > { %v5371_v10 = vmax.f32 %v5317_v55, 0.0  ;;  %5145 = vst [vmem:[#allocation2 + $0x40] sm:$0xff] %v5094_v56  ;;  %v5257_v60 = vmul.f32 %v8638_v14, %v5094_v56  ;;  %v6891_v61 = vpop.f32.mrf.mxu1  ;;  %v7011_v62 = vpop.f32.mrf.mxu0 }
 0x453   : > { %v4954_v63 = vsel %vm3111_vm1, %v4951_v47, %v4953_v40 }
 0x454   : > { %5426 = vst.msk [vmem:[%s8659_s22 + $0x38] sm:$0xff] %vm5418_vm3, %v5371_v10  ;;  %v5318_v1 = vadd.f32 %v8646_v23, %v5257_v60  ;;  %v5095_v2 = vadd.f32 %v4954_v63, %v4428_v59  ;;  %v4217_v42 = vpop.f32.mrf.mxu1  ;;  %v4673_v3 = vpop.f32.mrf.mxu0 }
 0x455   : > { %v4955_v4 = vrot.slane %v4673_v3, 1  ;;  %v4432_v45 = vadd.f32 %v4381_v41, %v4217_v42  ;;  %v4383_v42 = vld [vmem:[#allocation2 + $0x78] sm:$0xff] }
 0x456   : > { %v5372_v6 = vmax.f32 %v5318_v1, 0.0  ;;  %5146 = vst [vmem:[#allocation2 + $0x48] sm:$0xff] %v5095_v2  ;;  %v5258_v7 = vmul.f32 %v8638_v14, %v5095_v2  ;;  %v6894_v8 = vpop.f32.mrf.mxu1  ;;  %v7014_v9 = vpop.f32.mrf.mxu0 }
 0x457   : > { %v4956_v44 = vsel %vm3111_vm1, %v4953_v40, %v4955_v4 }
 0x458   : > { %5427 = vst.msk [vmem:[%s8659_s22 + $0x40] sm:$0xff] %vm5418_vm3, %v5372_v6  ;;  %v5319_v11 = vadd.f32 %v8646_v23, %v5258_v7  ;;  %v5096_v22 = vadd.f32 %v4956_v44, %v4429_v5  ;;  %v4220_v12 = vpop.f32.mrf.mxu1  ;;  %v4676_v13 = vpop.f32.mrf.mxu0 }
 0x459   : > { %v4957_v15 = vrot.slane %v4676_v13, 1  ;;  %v4433_v58 = vadd.f32 %v4382_v57, %v4220_v12  ;;  %v4384_v12 = vld [vmem:[#allocation2 + $0x80] sm:$0xff] }
 0x45a   : > { %v5373_v18 = vmax.f32 %v5319_v11, 0.0  ;;  %5147 = vst [vmem:[#allocation2 + $0x50] sm:$0xff] %v5096_v22  ;;  %v5259_v19 = vmul.f32 %v8638_v14, %v5096_v22  ;;  %v6895_v28 = vpop.f32.mrf.mxu1  ;;  %v7015_v20 = vpop.f32.mrf.mxu0 }
 0x45b   : > { %v4958_v21 = vsel %vm3111_vm1, %v4955_v4, %v4957_v15 }
 0x45c   : > { %5428 = vst.msk [vmem:[%s8659_s22 + $0x48] sm:$0xff] %vm5418_vm3, %v5373_v18  ;;  %v5320_v46 = vadd.f32 %v8646_v23, %v5259_v19  ;;  %v5097_v24 = vadd.f32 %v4958_v21, %v4430_v17  ;;  %v4225_v25 = vpop.f32.mrf.mxu1  ;;  %v4681_v26 = vpop.f32.mrf.mxu0 }
 0x45d   : > { %v4959_v34 = vrot.slane %v4681_v26, 1  ;;  %v4434_v16 = vadd.f32 %v4383_v42, %v4225_v25  ;;  %v4385_v25 = vld [vmem:[#allocation2 + $0x88] sm:$0xff] }
 0x45e   : > { %v5374_v30 = vmax.f32 %v5320_v46, 0.0  ;;  %5148 = vst [vmem:[#allocation2 + $0x58] sm:$0xff] %v5097_v24  ;;  %v5260_v31 = vmul.f32 %v8638_v14, %v5097_v24  ;;  %v6898_v32 = vpop.f32.mrf.mxu1  ;;  %v7018_v33 = vpop.f32.mrf.mxu0 }
 0x45f   : > { %v4960_v35 = vsel %vm3111_vm1, %v4957_v15, %v4959_v34 }
 0x460   : > { %5429 = vst.msk [vmem:[%s8659_s22 + $0x50] sm:$0xff] %vm5418_vm3, %v5374_v30  ;;  %v5321_v37 = vadd.f32 %v8646_v23, %v5260_v31  ;;  %v5098_v36 = vadd.f32 %v4960_v35, %v4431_v29  ;;  %v4228_v48 = vpop.f32.mrf.mxu1  ;;  %v4684_v39 = vpop.f32.mrf.mxu0 }
 0x461   : > { %v4961_v43 = vrot.slane %v4684_v39, 1  ;;  %v4435_v0 = vadd.f32 %v4384_v12, %v4228_v48  ;;  %v4386_v48 = vld [vmem:[#allocation2 + $0x90] sm:$0xff] }
 0x462   : > { %v5375_v47 = vmax.f32 %v5321_v37, 0.0  ;;  %5149 = vst [vmem:[#allocation2 + $0x60] sm:$0xff] %v5098_v36  ;;  %v5261_v49 = vmul.f32 %v8638_v14, %v5098_v36  ;;  %v6899_v52 = vpop.f32.mrf.mxu1  ;;  %v7019_v38 = vpop.f32.mrf.mxu0 }
 0x463   : > { %v4962_v51 = vsel %vm3111_vm1, %v4959_v34, %v4961_v43 }
 0x464   : > { %5430 = vst.msk [vmem:[%s8659_s22 + $0x58] sm:$0xff] %vm5418_vm3, %v5375_v47  ;;  %v5322_v53 = vadd.f32 %v8646_v23, %v5261_v49  ;;  %v5099_v54 = vadd.f32 %v4962_v51, %v4432_v45  ;;  %v4233_v55 = vpop.f32.mrf.mxu1  ;;  %v4689_v56 = vpop.f32.mrf.mxu0 }
 0x465   : > { %v4963_v50 = vrot.slane %v4689_v56, 1  ;;  %v4436_v27 = vadd.f32 %v4385_v25, %v4233_v55  ;;  %v4387_v55 = vld [vmem:[#allocation2 + $0x98] sm:$0xff] }
 0x466   : > { %v5376_v40 = vmax.f32 %v5322_v53, 0.0  ;;  %5150 = vst [vmem:[#allocation2 + $0x68] sm:$0xff] %v5099_v54  ;;  %v5262_v59 = vmul.f32 %v8638_v14, %v5099_v54  ;;  %v6902_v10 = vpop.f32.mrf.mxu1  ;;  %v7022_v60 = vpop.f32.mrf.mxu0 }
 0x467   : > { %v4964_v61 = vsel %vm3111_vm1, %v4961_v43, %v4963_v50 }
 0x468   : > { %5431 = vst.msk [vmem:[%s8659_s22 + $0x60] sm:$0xff] %vm5418_vm3, %v5376_v40  ;;  %v5323_v62 = vadd.f32 %v8646_v23, %v5262_v59  ;;  %v5100_v63 = vadd.f32 %v4964_v61, %v4433_v58  ;;  %v4236_v1 = vpop.f32.mrf.mxu1  ;;  %v4692_v2 = vpop.f32.mrf.mxu0 }
 0x469   : > { %v4965_v3 = vrot.slane %v4692_v2, 1  ;;  %v4437_v41 = vadd.f32 %v4386_v48, %v4236_v1  ;;  %v4388_v1 = vld [vmem:[#allocation2 + $0xa0] sm:$0xff] }
 0x46a   : > { %v5377_v4 = vmax.f32 %v5323_v62, 0.0  ;;  %5151 = vst [vmem:[#allocation2 + $0x70] sm:$0xff] %v5100_v63  ;;  %v5263_v5 = vmul.f32 %v8638_v14, %v5100_v63  ;;  %v6903_v6 = vpop.f32.mrf.mxu1  ;;  %v7023_v7 = vpop.f32.mrf.mxu0 }
 0x46b   : > { %v4966_v8 = vsel %vm3111_vm1, %v4963_v50, %v4965_v3 }
 0x46c   : > { %5432 = vst.msk [vmem:[%s8659_s22 + $0x68] sm:$0xff] %vm5418_vm3, %v5377_v4  ;;  %v5324_v9 = vadd.f32 %v8646_v23, %v5263_v5  ;;  %v5101_v44 = vadd.f32 %v4966_v8, %v4434_v16  ;;  %v4241_v11 = vpop.f32.mrf.mxu1  ;;  %v4697_v22 = vpop.f32.mrf.mxu0 }
 0x46d   : > { %v4967_v13 = vrot.slane %v4697_v22, 1  ;;  %v4438_v57 = vadd.f32 %v4387_v55, %v4241_v11  ;;  %v4389_v11 = vld [vmem:[#allocation2 + $0xa8] sm:$0xff] }
 0x46e   : > { %v5378_v15 = vmax.f32 %v5324_v9, 0.0  ;;  %5152 = vst [vmem:[#allocation2 + $0x78] sm:$0xff] %v5101_v44  ;;  %v5264_v17 = vmul.f32 %v8638_v14, %v5101_v44  ;;  %v6906_v18 = vpop.f32.mrf.mxu1  ;;  %v7026_v19 = vpop.f32.mrf.mxu0 }
 0x46f   : > { %v4968_v28 = vsel %vm3111_vm1, %v4965_v3, %v4967_v13 }
 0x470   : > { %5433 = vst.msk [vmem:[%s8659_s22 + $0x70] sm:$0xff] %vm5418_vm3, %v5378_v15  ;;  %v5325_v20 = vadd.f32 %v8646_v23, %v5264_v17  ;;  %v5102_v21 = vadd.f32 %v4968_v28, %v4435_v0  ;;  %v4244_v46 = vpop.f32.mrf.mxu1  ;;  %v4700_v24 = vpop.f32.mrf.mxu0 }
 0x471   : > { %v4969_v26 = vrot.slane %v4700_v24, 1  ;;  %v4439_v42 = vadd.f32 %v4388_v1, %v4244_v46  ;;  %v4390_v46 = vld [vmem:[#allocation2 + $0xb0] sm:$0xff] }
 0x472   : > { %v5379_v34 = vmax.f32 %v5325_v20, 0.0  ;;  %5153 = vst [vmem:[#allocation2 + $0x80] sm:$0xff] %v5102_v21  ;;  %v5265_v29 = vmul.f32 %v8638_v14, %v5102_v21  ;;  %v6907_v30 = vpop.f32.mrf.mxu1  ;;  %v7027_v31 = vpop.f32.mrf.mxu0 }
 0x473   : > { %v4970_v32 = vsel %vm3111_vm1, %v4967_v13, %v4969_v26 }
 0x474   : > { %5434 = vst.msk [vmem:[%s8659_s22 + $0x78] sm:$0xff] %vm5418_vm3, %v5379_v34  ;;  %v5326_v33 = vadd.f32 %v8646_v23, %v5265_v29  ;;  %v5103_v35 = vadd.f32 %v4970_v32, %v4436_v27  ;;  %v4249_v37 = vpop.f32.mrf.mxu1  ;;  %v4705_v36 = vpop.f32.mrf.mxu0 }
 0x475   : > { %v4971_v39 = vrot.slane %v4705_v36, 1  ;;  %v4440_v12 = vadd.f32 %v4389_v11, %v4249_v37  ;;  %v4391_v37 = vld [vmem:[#allocation2 + $0xb8] sm:$0xff] }
 0x476   : > { %v5380_v43 = vmax.f32 %v5326_v33, 0.0  ;;  %5154 = vst [vmem:[#allocation2 + $0x88] sm:$0xff] %v5103_v35  ;;  %v5266_v45 = vmul.f32 %v8638_v14, %v5103_v35  ;;  %v6910_v47 = vpop.f32.mrf.mxu1  ;;  %v7030_v49 = vpop.f32.mrf.mxu0 }
 0x477   : > { %v4972_v52 = vsel %vm3111_vm1, %v4969_v26, %v4971_v39 }
 0x478   : > { %5435 = vst.msk [vmem:[%s8659_s22 + $0x80] sm:$0xff] %vm5418_vm3, %v5380_v43  ;;  %v5327_v38 = vadd.f32 %v8646_v23, %v5266_v45  ;;  %v5104_v51 = vadd.f32 %v4972_v52, %v4437_v41  ;;  %v4252_v53 = vpop.f32.mrf.mxu1  ;;  %v4708_v54 = vpop.f32.mrf.mxu0 }
 0x479   : > { %v4973_v56 = vrot.slane %v4708_v54, 1  ;;  %v4441_v25 = vadd.f32 %v4390_v46, %v4252_v53  ;;  %v4392_v53 = vld [vmem:[#allocation2 + $0xc0] sm:$0xff] }
 0x47a   : > { %v5381_v50 = vmax.f32 %v5327_v38, 0.0  ;;  %5155 = vst [vmem:[#allocation2 + $0x90] sm:$0xff] %v5104_v51  ;;  %v5267_v58 = vmul.f32 %v8638_v14, %v5104_v51  ;;  %v6911_v40 = vpop.f32.mrf.mxu1  ;;  %v7031_v59 = vpop.f32.mrf.mxu0 }
 0x47b   : > { %v4974_v10 = vsel %vm3111_vm1, %v4971_v39, %v4973_v56 }
 0x47c   : > { %5436 = vst.msk [vmem:[%s8659_s22 + $0x88] sm:$0xff] %vm5418_vm3, %v5381_v50  ;;  %v5328_v60 = vadd.f32 %v8646_v23, %v5267_v58  ;;  %v5105_v61 = vadd.f32 %v4974_v10, %v4438_v57  ;;  %v4257_v62 = vpop.f32.mrf.mxu1  ;;  %v4713_v63 = vpop.f32.mrf.mxu0 }
 0x47d   : > { %v4975_v2 = vrot.slane %v4713_v63, 1  ;;  %v4442_v48 = vadd.f32 %v4391_v37, %v4257_v62  ;;  %v4393_v62 = vld [vmem:[#allocation2 + $0xc8] sm:$0xff] }
 0x47e   : > { %v5382_v3 = vmax.f32 %v5328_v60, 0.0  ;;  %5156 = vst [vmem:[#allocation2 + $0x98] sm:$0xff] %v5105_v61  ;;  %v5268_v16 = vmul.f32 %v8638_v14, %v5105_v61  ;;  %v6914_v4 = vpop.f32.mrf.mxu1  ;;  %v7034_v5 = vpop.f32.mrf.mxu0 }
 0x47f   : > { %v4976_v6 = vsel %vm3111_vm1, %v4973_v56, %v4975_v2 }
 0x480   : > { %5437 = vst.msk [vmem:[%s8659_s22 + $0x90] sm:$0xff] %vm5418_vm3, %v5382_v3  ;;  %v5329_v7 = vadd.f32 %v8646_v23, %v5268_v16  ;;  %v5106_v8 = vadd.f32 %v4976_v6, %v4439_v42  ;;  %v4260_v9 = vpop.f32.mrf.mxu1  ;;  %v4716_v44 = vpop.f32.mrf.mxu0 }
 0x481   : > { %v4977_v22 = vrot.slane %v4716_v44, 1  ;;  %v4443_v55 = vadd.f32 %v4392_v53, %v4260_v9  ;;  %v4394_v9 = vld [vmem:[#allocation2 + $0xd0] sm:$0xff] }
 0x482   : > { %v5383_v13 = vmax.f32 %v5329_v7, 0.0  ;;  %5157 = vst [vmem:[#allocation2 + $0xa0] sm:$0xff] %v5106_v8  ;;  %v5269_v0 = vmul.f32 %v8638_v14, %v5106_v8  ;;  %v6915_v15 = vpop.f32.mrf.mxu1  ;;  %v7035_v17 = vpop.f32.mrf.mxu0 }
 0x483   : > { %v4978_v18 = vsel %vm3111_vm1, %v4975_v2, %v4977_v22 }
 0x484   : > { %5438 = vst.msk [vmem:[%s8659_s22 + $0x98] sm:$0xff] %vm5418_vm3, %v5383_v13  ;;  %v5330_v19 = vadd.f32 %v8646_v23, %v5269_v0  ;;  %v5107_v28 = vadd.f32 %v4978_v18, %v4440_v12  ;;  %v4265_v20 = vpop.f32.mrf.mxu1  ;;  %v4721_v21 = vpop.f32.mrf.mxu0 }
 0x485   : > { %v4979_v24 = vrot.slane %v4721_v21, 1  ;;  %v4444_v1 = vadd.f32 %v4393_v62, %v4265_v20  ;;  %v4395_v20 = vld [vmem:[#allocation2 + $0xd8] sm:$0xff] }
 0x486   : > { %v5384_v26 = vmax.f32 %v5330_v19, 0.0  ;;  %5158 = vst [vmem:[#allocation2 + $0xa8] sm:$0xff] %v5107_v28  ;;  %v5270_v27 = vmul.f32 %v8638_v14, %v5107_v28  ;;  %v6918_v34 = vpop.f32.mrf.mxu1  ;;  %v7038_v29 = vpop.f32.mrf.mxu0 }
 0x487   : > { %v4980_v30 = vsel %vm3111_vm1, %v4977_v22, %v4979_v24 }
 0x488   : > { %5439 = vst.msk [vmem:[%s8659_s22 + $0xa0] sm:$0xff] %vm5418_vm3, %v5384_v26  ;;  %v5331_v31 = vadd.f32 %v8646_v23, %v5270_v27  ;;  %v5108_v32 = vadd.f32 %v4980_v30, %v4441_v25  ;;  %v4268_v33 = vpop.f32.mrf.mxu1  ;;  %v4724_v35 = vpop.f32.mrf.mxu0 }
 0x489   : > { %v4981_v36 = vrot.slane %v4724_v35, 1  ;;  %v4445_v11 = vadd.f32 %v4394_v9, %v4268_v33  ;;  %v4396_v33 = vld [vmem:[#allocation2 + $0xe0] sm:$0xff] }
 0x48a   : > { %v5385_v39 = vmax.f32 %v5331_v31, 0.0  ;;  %5159 = vst [vmem:[#allocation2 + $0xb0] sm:$0xff] %v5108_v32  ;;  %v5271_v41 = vmul.f32 %v8638_v14, %v5108_v32  ;;  %v6919_v43 = vpop.f32.mrf.mxu1  ;;  %v7039_v45 = vpop.f32.mrf.mxu0 }
 0x48b   : > { %v4982_v47 = vsel %vm3111_vm1, %v4979_v24, %v4981_v36 }
 0x48c   : > { %5440 = vst.msk [vmem:[%s8659_s22 + $0xa8] sm:$0xff] %vm5418_vm3, %v5385_v39  ;;  %v5332_v49 = vadd.f32 %v8646_v23, %v5271_v41  ;;  %v5109_v52 = vadd.f32 %v4982_v47, %v4442_v48  ;;  %v4273_v38 = vpop.f32.mrf.mxu1  ;;  %v4729_v51 = vpop.f32.mrf.mxu0 }
 0x48d   : > { %v4983_v54 = vrot.slane %v4729_v51, 1  ;;  %v4446_v46 = vadd.f32 %v4395_v20, %v4273_v38  ;;  %v4397_v38 = vld [vmem:[#allocation2 + $0xe8] sm:$0xff] }
 0x48e   : > { %v5386_v56 = vmax.f32 %v5332_v49, 0.0  ;;  %5160 = vst [vmem:[#allocation2 + $0xb8] sm:$0xff] %v5109_v52  ;;  %v5272_v57 = vmul.f32 %v8638_v14, %v5109_v52  ;;  %v6922_v50 = vpop.f32.mrf.mxu1  ;;  %v7042_v58 = vpop.f32.mrf.mxu0 }
 0x48f   : > { %v4984_v40 = vsel %vm3111_vm1, %v4981_v36, %v4983_v54 }
 0x490   : > { %5441 = vst.msk [vmem:[%s8659_s22 + $0xb0] sm:$0xff] %vm5418_vm3, %v5386_v56  ;;  %v5333_v59 = vadd.f32 %v8646_v23, %v5272_v57  ;;  %v5110_v10 = vadd.f32 %v4984_v40, %v4443_v55  ;;  %v4276_v60 = vpop.f32.mrf.mxu1  ;;  %v4732_v61 = vpop.f32.mrf.mxu0 }
 0x491   : > { %v4985_v63 = vrot.slane %v4732_v61, 1  ;;  %v4447_v37 = vadd.f32 %v4396_v33, %v4276_v60  ;;  %v4398_v60 = vld [vmem:[#allocation2 + $0xf0] sm:$0xff] }
 0x492   : > { %v5387_v2 = vmax.f32 %v5333_v59, 0.0  ;;  %5161 = vst [vmem:[#allocation2 + $0xc0] sm:$0xff] %v5110_v10  ;;  %v5273_v42 = vmul.f32 %v8638_v14, %v5110_v10  ;;  %v6923_v3 = vpop.f32.mrf.mxu1  ;;  %v7043_v16 = vpop.f32.mrf.mxu0 }
 0x493   : > { %v4986_v4 = vsel %vm3111_vm1, %v4983_v54, %v4985_v63 }
 0x494   : > { %5442 = vst.msk [vmem:[%s8659_s22 + $0xb8] sm:$0xff] %vm5418_vm3, %v5387_v2  ;;  %v5334_v5 = vadd.f32 %v8646_v23, %v5273_v42  ;;  %v5111_v6 = vadd.f32 %v4986_v4, %v4444_v1  ;;  %v4281_v7 = vpop.f32.mrf.mxu1  ;;  %v4737_v8 = vpop.f32.mrf.mxu0 }
 0x495   : > { %v4987_v44 = vrot.slane %v4737_v8, 1  ;;  %v4448_v53 = vadd.f32 %v4397_v38, %v4281_v7  ;;  %v4399_v7 = vld [vmem:[#allocation2 + $0xf8] sm:$0xff] }
 0x496   : > { %v5388_v22 = vmax.f32 %v5334_v5, 0.0  ;;  %5162 = vst [vmem:[#allocation2 + $0xc8] sm:$0xff] %v5111_v6  ;;  %v5274_v12 = vmul.f32 %v8638_v14, %v5111_v6  ;;  %v6926_v13 = vpop.f32.mrf.mxu1  ;;  %v7046_v0 = vpop.f32.mrf.mxu0 }
 0x497   : > { %v4988_v15 = vsel %vm3111_vm1, %v4985_v63, %v4987_v44 }
 0x498   : > { %5443 = vst.msk [vmem:[%s8659_s22 + $0xc0] sm:$0xff] %vm5418_vm3, %v5388_v22  ;;  %v5335_v17 = vadd.f32 %v8646_v23, %v5274_v12  ;;  %v5112_v18 = vadd.f32 %v4988_v15, %v4445_v11  ;;  %v4284_v19 = vpop.f32.mrf.mxu1  ;;  %v4740_v28 = vpop.f32.mrf.mxu0 }
 0x499   : > { %v4989_v21 = vrot.slane %v4740_v28, 1  ;;  %v4449_v62 = vadd.f32 %v4398_v60, %v4284_v19  ;;  %v4400_v19 = vld [vmem:[#allocation2 + $0x100] sm:$0xff] }
 0x49a   : > { %v5389_v24 = vmax.f32 %v5335_v17, 0.0  ;;  %5163 = vst [vmem:[#allocation2 + $0xd0] sm:$0xff] %v5112_v18  ;;  %v5275_v25 = vmul.f32 %v8638_v14, %v5112_v18  ;;  %v6927_v26 = vpop.f32.mrf.mxu1  ;;  %v7047_v27 = vpop.f32.mrf.mxu0 }
 0x49b   : > { %v4990_v34 = vsel %vm3111_vm1, %v4987_v44, %v4989_v21 }
 0x49c   : > { %5444 = vst.msk [vmem:[%s8659_s22 + $0xc8] sm:$0xff] %vm5418_vm3, %v5389_v24  ;;  %v5336_v29 = vadd.f32 %v8646_v23, %v5275_v25  ;;  %v5113_v30 = vadd.f32 %v4990_v34, %v4446_v46  ;;  %v4289_v31 = vpop.f32.mrf.mxu1  ;;  %v4745_v32 = vpop.f32.mrf.mxu0 }
 0x49d   : > { %v4991_v35 = vrot.slane %v4745_v32, 1  ;;  %v4450_v9 = vadd.f32 %v4399_v7, %v4289_v31  ;;  %v4401_v31 = vld [vmem:[#allocation2 + $0x108] sm:$0xff] }
 0x49e   : > { %v5390_v36 = vmax.f32 %v5336_v29, 0.0  ;;  %5164 = vst [vmem:[#allocation2 + $0xd8] sm:$0xff] %v5113_v30  ;;  %v5276_v48 = vmul.f32 %v8638_v14, %v5113_v30  ;;  %v6930_v39 = vpop.f32.mrf.mxu1  ;;  %v7050_v41 = vpop.f32.mrf.mxu0 }
 0x49f   : > { %v4992_v43 = vsel %vm3111_vm1, %v4989_v21, %v4991_v35 }
 0x4a0   : > { %5445 = vst.msk [vmem:[%s8659_s22 + $0xd0] sm:$0xff] %vm5418_vm3, %v5390_v36  ;;  %v5337_v45 = vadd.f32 %v8646_v23, %v5276_v48  ;;  %v5114_v47 = vadd.f32 %v4992_v43, %v4447_v37  ;;  %v4292_v49 = vpop.f32.mrf.mxu1  ;;  %v4748_v52 = vpop.f32.mrf.mxu0 }
 0x4a1   : > { %v4993_v51 = vrot.slane %v4748_v52, 1  ;;  %v4451_v20 = vadd.f32 %v4400_v19, %v4292_v49  ;;  %v4402_v49 = vld [vmem:[#allocation2 + $0x110] sm:$0xff] }
 0x4a2   : > { %v5391_v54 = vmax.f32 %v5337_v45, 0.0  ;;  %5165 = vst [vmem:[#allocation2 + $0xe0] sm:$0xff] %v5114_v47  ;;  %v5277_v55 = vmul.f32 %v8638_v14, %v5114_v47  ;;  %v6931_v56 = vpop.f32.mrf.mxu1  ;;  %v7051_v57 = vpop.f32.mrf.mxu0 }
 0x4a3   : > { %v4994_v50 = vsel %vm3111_vm1, %v4991_v35, %v4993_v51 }
 0x4a4   : > { %5446 = vst.msk [vmem:[%s8659_s22 + $0xd8] sm:$0xff] %vm5418_vm3, %v5391_v54  ;;  %v5338_v58 = vadd.f32 %v8646_v23, %v5277_v55  ;;  %v5115_v40 = vadd.f32 %v4994_v50, %v4448_v53  ;;  %v4297_v59 = vpop.f32.mrf.mxu1  ;;  %v4753_v10 = vpop.f32.mrf.mxu0 }
 0x4a5   : > { %v4995_v61 = vrot.slane %v4753_v10, 1  ;;  %v4452_v33 = vadd.f32 %v4401_v31, %v4297_v59  ;;  %v4403_v59 = vld [vmem:[#allocation2 + $0x118] sm:$0xff] }
 0x4a6   : > { %v5392_v63 = vmax.f32 %v5338_v58, 0.0  ;;  %5166 = vst [vmem:[#allocation2 + $0xe8] sm:$0xff] %v5115_v40  ;;  %v5278_v1 = vmul.f32 %v8638_v14, %v5115_v40  ;;  %v6934_v2 = vpop.f32.mrf.mxu1  ;;  %v7054_v42 = vpop.f32.mrf.mxu0  ;;  %v8832_v14 = vld [vmem:[%s8959_s2] ss:$0 sm:$0xff] }
 0x4a7   : > { %v4996_v3 = vsel %vm3111_vm1, %v4993_v51, %v4995_v61 }
 0x4a8   : > { %5447 = vst.msk [vmem:[%s8659_s22 + $0xe0] sm:$0xff] %vm5418_vm3, %v5392_v63  ;;  %v5339_v16 = vadd.f32 %v8646_v23, %v5278_v1  ;;  %v5116_v4 = vadd.f32 %v4996_v3, %v4449_v62  ;;  %v4300_v5 = vpop.f32.mrf.mxu1  ;;  %v4756_v6 = vpop.f32.mrf.mxu0 }
 0x4a9   : > { %v4997_v8 = vrot.slane %v4756_v6, 1  ;;  %v4453_v38 = vadd.f32 %v4402_v49, %v4300_v5  ;;  %v4404_v5 = vld [vmem:[#allocation2 + $0x120] sm:$0xff] }
 0x4aa   : > { %v5393_v44 = vmax.f32 %v5339_v16, 0.0  ;;  %5167 = vst [vmem:[#allocation2 + $0xf0] sm:$0xff] %v5116_v4  ;;  %v5279_v11 = vmul.f32 %v8832_v14, %v5116_v4  ;;  %v6935_v22 = vpop.f32.mrf.mxu1  ;;  %v7055_v12 = vpop.f32.mrf.mxu0 }
 0x4ab   : > { %v4998_v13 = vsel %vm3111_vm1, %v4995_v61, %v4997_v8 }
 0x4ac   : > { %5448 = vst.msk [vmem:[%s8659_s22 + $0xe8] sm:$0xff] %vm5418_vm3, %v5393_v44  ;;  %v5340_v0 = vadd.f32 %v8646_v23, %v5279_v11  ;;  %v5117_v15 = vadd.f32 %v4998_v13, %v4450_v9  ;;  %v4305_v17 = vpop.f32.mrf.mxu1  ;;  %v4761_v18 = vpop.f32.mrf.mxu0  ;;  %v8846_v23 = vld [vmem:[%s8960_s3] ss:$0 sm:$0xff] }
 0x4ad   : > { %v4999_v28 = vrot.slane %v4761_v18, 1  ;;  %v4454_v60 = vadd.f32 %v4403_v59, %v4305_v17  ;;  %v4405_v17 = vld [vmem:[#allocation2 + $0x128] sm:$0xff] }
 0x4ae   : > { %v5394_v21 = vmax.f32 %v5340_v0, 0.0  ;;  %5168 = vst [vmem:[#allocation2 + $0xf8] sm:$0xff] %v5117_v15  ;;  %v5280_v46 = vmul.f32 %v8832_v14, %v5117_v15  ;;  %v6938_v24 = vpop.f32.mrf.mxu1  ;;  %v7058_v25 = vpop.f32.mrf.mxu0 }
 0x4af   : > { %v5000_v26 = vsel %vm3111_vm1, %v4997_v8, %v4999_v28 }
 0x4b0   : > { %5449 = vst.msk [vmem:[%s8659_s22 + $0xf0] sm:$0xff] %vm5418_vm3, %v5394_v21  ;;  %v5341_v27 = vadd.f32 %v8846_v23, %v5280_v46  ;;  %v5118_v34 = vadd.f32 %v5000_v26, %v4451_v20  ;;  %v4308_v29 = vpop.f32.mrf.mxu1  ;;  %v4764_v30 = vpop.f32.mrf.mxu0 }
 0x4b1   : > { %v5001_v32 = vrot.slane %v4764_v30, 1  ;;  %v4455_v7 = vadd.f32 %v4404_v5, %v4308_v29  ;;  %v4406_v29 = vld [vmem:[#allocation2 + $0x130] sm:$0xff] }
 0x4b2   : > { %v5395_v35 = vmax.f32 %v5341_v27, 0.0  ;;  %5169 = vst [vmem:[#allocation2 + $0x100] sm:$0xff] %v5118_v34  ;;  %v5281_v37 = vmul.f32 %v8832_v14, %v5118_v34  ;;  %v6939_v36 = vpop.f32.mrf.mxu1  ;;  %v7059_v48 = vpop.f32.mrf.mxu0 }
 0x4b3   : > { %v5002_v39 = vsel %vm3111_vm1, %v4999_v28, %v5001_v32 }
 0x4b4   : > { %5450 = vst.msk [vmem:[%s8659_s22 + $0xf8] sm:$0xff] %vm5418_vm3, %v5395_v35  ;;  %v5342_v41 = vadd.f32 %v8846_v23, %v5281_v37  ;;  %v5119_v43 = vadd.f32 %v5002_v39, %v4452_v33  ;;  %v4313_v45 = vpop.f32.mrf.mxu1  ;;  %v4769_v47 = vpop.f32.mrf.mxu0 }
 0x4b5   : > { %v5003_v52 = vrot.slane %v4769_v47, 1  ;;  %v4456_v19 = vadd.f32 %v4405_v17, %v4313_v45  ;;  %v4407_v45 = vld [vmem:[#allocation2 + $0x138] sm:$0xff] }
 0x4b6   : > { %v5396_v51 = vmax.f32 %v5342_v41, 0.0  ;;  %5170 = vst [vmem:[#allocation2 + $0x108] sm:$0xff] %v5119_v43  ;;  %v5282_v53 = vmul.f32 %v8832_v14, %v5119_v43  ;;  %v6942_v54 = vpop.f32.mrf.mxu1  ;;  %v7062_v55 = vpop.f32.mrf.mxu0 }
 0x4b7   : > { %v5004_v56 = vsel %vm3111_vm1, %v5001_v32, %v5003_v52 }
 0x4b8   : > { %5451 = vst.msk [vmem:[%s8659_s22 + $0x100] sm:$0xff] %vm5418_vm3, %v5396_v51  ;;  %v5343_v57 = vadd.f32 %v8846_v23, %v5282_v53  ;;  %v5120_v50 = vadd.f32 %v5004_v56, %v4453_v38  ;;  %v4316_v58 = vpop.f32.mrf.mxu1  ;;  %v4772_v40 = vpop.f32.mrf.mxu0 }
 0x4b9   : > { %v5005_v10 = vrot.slane %v4772_v40, 1  ;;  %v4457_v31 = vadd.f32 %v4406_v29, %v4316_v58  ;;  %v4408_v58 = vld [vmem:[#allocation2 + $0x140] sm:$0xff] }
 0x4ba   : > { %v5397_v61 = vmax.f32 %v5343_v57, 0.0  ;;  %5171 = vst [vmem:[#allocation2 + $0x110] sm:$0xff] %v5120_v50  ;;  %v5283_v62 = vmul.f32 %v8832_v14, %v5120_v50  ;;  %v6943_v63 = vpop.f32.mrf.mxu1  ;;  %v7063_v1 = vpop.f32.mrf.mxu0 }
 0x4bb   : > { %v5006_v2 = vsel %vm3111_vm1, %v5003_v52, %v5005_v10 }
 0x4bc   : > { %5452 = vst.msk [vmem:[%s8659_s22 + $0x108] sm:$0xff] %vm5418_vm3, %v5397_v61  ;;  %v5344_v42 = vadd.f32 %v8846_v23, %v5283_v62  ;;  %v5121_v3 = vadd.f32 %v5006_v2, %v4454_v60  ;;  %v4321_v16 = vpop.f32.mrf.mxu1  ;;  %v4777_v4 = vpop.f32.mrf.mxu0 }
 0x4bd   : > { %v5007_v6 = vrot.slane %v4777_v4, 1  ;;  %v4458_v49 = vadd.f32 %v4407_v45, %v4321_v16  ;;  %v4409_v16 = vld [vmem:[#allocation2 + $0x148] sm:$0xff] }
 0x4be   : > { %v5398_v8 = vmax.f32 %v5344_v42, 0.0  ;;  %5172 = vst [vmem:[#allocation2 + $0x118] sm:$0xff] %v5121_v3  ;;  %v5284_v9 = vmul.f32 %v8832_v14, %v5121_v3  ;;  %v6946_v44 = vpop.f32.mrf.mxu1  ;;  %v7066_v11 = vpop.f32.mrf.mxu0 }
 0x4bf   : > { %v5008_v22 = vsel %vm3111_vm1, %v5005_v10, %v5007_v6 }
 0x4c0   : > { %5453 = vst.msk [vmem:[%s8659_s22 + $0x110] sm:$0xff] %vm5418_vm3, %v5398_v8  ;;  %v5345_v12 = vadd.f32 %v8846_v23, %v5284_v9  ;;  %v5122_v13 = vadd.f32 %v5008_v22, %v4455_v7  ;;  %v4324_v0 = vpop.f32.mrf.mxu1  ;;  %v4780_v15 = vpop.f32.mrf.mxu0 }
 0x4c1   : > { %v5009_v18 = vrot.slane %v4780_v15, 1  ;;  %v4459_v59 = vadd.f32 %v4408_v58, %v4324_v0  ;;  %v4410_v0 = vld [vmem:[#allocation2 + $0x150] sm:$0xff] }
 0x4c2   : > { %v5399_v28 = vmax.f32 %v5345_v12, 0.0  ;;  %5173 = vst [vmem:[#allocation2 + $0x120] sm:$0xff] %v5122_v13  ;;  %v5285_v20 = vmul.f32 %v8832_v14, %v5122_v13  ;;  %v6947_v21 = vpop.f32.mrf.mxu1  ;;  %v7067_v46 = vpop.f32.mrf.mxu0 }
 0x4c3   : > { %v5010_v24 = vsel %vm3111_vm1, %v5007_v6, %v5009_v18 }
 0x4c4   : > { %5454 = vst.msk [vmem:[%s8659_s22 + $0x118] sm:$0xff] %vm5418_vm3, %v5399_v28  ;;  %v5346_v25 = vadd.f32 %v8846_v23, %v5285_v20  ;;  %v5123_v26 = vadd.f32 %v5010_v24, %v4456_v19  ;;  %v4329_v27 = vpop.f32.mrf.mxu1  ;;  %v4785_v34 = vpop.f32.mrf.mxu0 }
 0x4c5   : > { %v5011_v30 = vrot.slane %v4785_v34, 1  ;;  %v4460_v5 = vadd.f32 %v4409_v16, %v4329_v27  ;;  %v4411_v27 = vld [vmem:[#allocation2 + $0x158] sm:$0xff] }
 0x4c6   : > { %v5400_v32 = vmax.f32 %v5346_v25, 0.0  ;;  %5174 = vst [vmem:[#allocation2 + $0x128] sm:$0xff] %v5123_v26  ;;  %v5286_v33 = vmul.f32 %v8832_v14, %v5123_v26  ;;  %v6950_v35 = vpop.f32.mrf.mxu1  ;;  %v7070_v37 = vpop.f32.mrf.mxu0 }
 0x4c7   : > { %v5012_v36 = vsel %vm3111_vm1, %v5009_v18, %v5011_v30 }
 0x4c8   : > { %5455 = vst.msk [vmem:[%s8659_s22 + $0x120] sm:$0xff] %vm5418_vm3, %v5400_v32  ;;  %v5347_v48 = vadd.f32 %v8846_v23, %v5286_v33  ;;  %v5124_v39 = vadd.f32 %v5012_v36, %v4457_v31  ;;  %v4332_v41 = vpop.f32.mrf.mxu1  ;;  %v4788_v43 = vpop.f32.mrf.mxu0 }
 0x4c9   : > { %v5013_v47 = vrot.slane %v4788_v43, 1  ;;  %v4461_v17 = vadd.f32 %v4410_v0, %v4332_v41  ;;  %v4412_v41 = vld [vmem:[#allocation2 + $0x160] sm:$0xff] }
 0x4ca   : > { %v5401_v52 = vmax.f32 %v5347_v48, 0.0  ;;  %5175 = vst [vmem:[#allocation2 + $0x130] sm:$0xff] %v5124_v39  ;;  %v5287_v38 = vmul.f32 %v8832_v14, %v5124_v39  ;;  %v6951_v51 = vpop.f32.mrf.mxu1  ;;  %v7071_v53 = vpop.f32.mrf.mxu0 }
 0x4cb   : > { %v5014_v54 = vsel %vm3111_vm1, %v5011_v30, %v5013_v47 }
 0x4cc   : > { %5456 = vst.msk [vmem:[%s8659_s22 + $0x128] sm:$0xff] %vm5418_vm3, %v5401_v52  ;;  %v5348_v55 = vadd.f32 %v8846_v23, %v5287_v38  ;;  %v5125_v56 = vadd.f32 %v5014_v54, %v4458_v49  ;;  %v4337_v57 = vpop.f32.mrf.mxu1  ;;  %v4793_v50 = vpop.f32.mrf.mxu0 }
 0x4cd   : > { %v5015_v40 = vrot.slane %v4793_v50, 1  ;;  %v4462_v29 = vadd.f32 %v4411_v27, %v4337_v57  ;;  %v4413_v57 = vld [vmem:[#allocation2 + $0x168] sm:$0xff] }
 0x4ce   : > { %v5402_v10 = vmax.f32 %v5348_v55, 0.0  ;;  %5176 = vst [vmem:[#allocation2 + $0x138] sm:$0xff] %v5125_v56  ;;  %v5288_v60 = vmul.f32 %v8832_v14, %v5125_v56  ;;  %v6954_v61 = vpop.f32.mrf.mxu1  ;;  %v7074_v62 = vpop.f32.mrf.mxu0 }
 0x4cf   : > { %v5016_v63 = vsel %vm3111_vm1, %v5013_v47, %v5015_v40 }
 0x4d0   : > { %5457 = vst.msk [vmem:[%s8659_s22 + $0x130] sm:$0xff] %vm5418_vm3, %v5402_v10  ;;  %v5349_v1 = vadd.f32 %v8846_v23, %v5288_v60  ;;  %v5126_v2 = vadd.f32 %v5016_v63, %v4459_v59  ;;  %v4340_v42 = vpop.f32.mrf.mxu1  ;;  %v4796_v3 = vpop.f32.mrf.mxu0 }
 0x4d1   : > { %v5017_v4 = vrot.slane %v4796_v3, 1  ;;  %v4463_v45 = vadd.f32 %v4412_v41, %v4340_v42  ;;  %v4414_v42 = vld [vmem:[#allocation2 + $0x170] sm:$0xff] }
 0x4d2   : > { %v5403_v6 = vmax.f32 %v5349_v1, 0.0  ;;  %5177 = vst [vmem:[#allocation2 + $0x140] sm:$0xff] %v5126_v2  ;;  %v5289_v7 = vmul.f32 %v8832_v14, %v5126_v2  ;;  %v6955_v8 = vpop.f32.mrf.mxu1  ;;  %v7075_v9 = vpop.f32.mrf.mxu0 }
 0x4d3   : > { %v5018_v44 = vsel %vm3111_vm1, %v5015_v40, %v5017_v4 }
 0x4d4   : > { %5458 = vst.msk [vmem:[%s8659_s22 + $0x138] sm:$0xff] %vm5418_vm3, %v5403_v6  ;;  %v5350_v11 = vadd.f32 %v8846_v23, %v5289_v7  ;;  %v5127_v22 = vadd.f32 %v5018_v44, %v4460_v5  ;;  %v4345_v12 = vpop.f32.mrf.mxu1  ;;  %v4801_v13 = vpop.f32.mrf.mxu0 }
 0x4d5   : > { %v5019_v15 = vrot.slane %v4801_v13, 1  ;;  %v4464_v58 = vadd.f32 %v4413_v57, %v4345_v12  ;;  %v4415_v13 = vld [vmem:[#allocation2 + $0x178] sm:$0xff] }
 0x4d6   : > { %v5404_v18 = vmax.f32 %v5350_v11, 0.0  ;;  %5178 = vst [vmem:[#allocation2 + $0x148] sm:$0xff] %v5127_v22  ;;  %v5290_v19 = vmul.f32 %v8832_v14, %v5127_v22  ;;  %v6958_v28 = vpop.f32.mrf.mxu1  ;;  %v7078_v20 = vpop.f32.mrf.mxu0  ;;  %v4418_v22 = vld [vmem:[#allocation2 + $0x190] sm:$0xff] }
 0x4d7   : > { %v5020_v21 = vsel %vm3111_vm1, %v5017_v4, %v5019_v15 }
 0x4d8   : > { %5459 = vst.msk [vmem:[%s8659_s22 + $0x140] sm:$0xff] %vm5418_vm3, %v5404_v18  ;;  %v5351_v46 = vadd.f32 %v8846_v23, %v5290_v19  ;;  %v5128_v24 = vadd.f32 %v5020_v21, %v4461_v17  ;;  %v4348_v25 = vpop.f32.mrf.mxu1  ;;  %v4804_v26 = vpop.f32.mrf.mxu0 }
 0x4d9   : > { %v5021_v34 = vrot.slane %v4804_v26, 1  ;;  %v4465_v16 = vadd.f32 %v4414_v42, %v4348_v25  ;;  %v4416_v26 = vld [vmem:[#allocation2 + $0x180] sm:$0xff] }
 0x4da   : > { %v5405_v30 = vmax.f32 %v5351_v46, 0.0  ;;  %5179 = vst [vmem:[#allocation2 + $0x150] sm:$0xff] %v5128_v24  ;;  %v5291_v31 = vmul.f32 %v8832_v14, %v5128_v24  ;;  %v6959_v32 = vpop.f32.mrf.mxu1  ;;  %v7079_v33 = vpop.f32.mrf.mxu0 }
 0x4db   : > { %v5022_v35 = vsel %vm3111_vm1, %v5019_v15, %v5021_v34 }
 0x4dc   : > { %5460 = vst.msk [vmem:[%s8659_s22 + $0x148] sm:$0xff] %vm5418_vm3, %v5405_v30  ;;  %v5352_v37 = vadd.f32 %v8846_v23, %v5291_v31  ;;  %v5129_v36 = vadd.f32 %v5022_v35, %v4462_v29  ;;  %v4353_v48 = vpop.f32.mrf.mxu1  ;;  %v4809_v39 = vpop.f32.mrf.mxu0 }
 0x4dd   : > { %v5023_v43 = vrot.slane %v4809_v39, 1  ;;  %v4466_v17 = vadd.f32 %v4415_v13, %v4353_v48 }
 0x4de   : > { %v5406_v47 = vmax.f32 %v5352_v37, 0.0  ;;  %5180 = vst [vmem:[#allocation2 + $0x158] sm:$0xff] %v5129_v36  ;;  %v5292_v49 = vmul.f32 %v8832_v14, %v5129_v36  ;;  %v6962_v52 = vpop.f32.mrf.mxu1  ;;  %v7082_v38 = vpop.f32.mrf.mxu0  ;;  %v4417_v36 = vld [vmem:[#allocation2 + $0x188] sm:$0xff] }
 0x4df   : > { %v5024_v51 = vsel %vm3111_vm1, %v5021_v34, %v5023_v43 }
 0x4e0   : > { %5461 = vst.msk [vmem:[%s8659_s22 + $0x150] sm:$0xff] %vm5418_vm3, %v5406_v47  ;;  %v5353_v53 = vadd.f32 %v8846_v23, %v5292_v49  ;;  %v5130_v54 = vadd.f32 %v5024_v51, %v4463_v45  ;;  %v4356_v55 = vpop.f32.mrf.mxu1  ;;  %v4812_v56 = vpop.f32.mrf.mxu0 }
 0x4e1   : > { %v5025_v50 = vrot.slane %v4812_v56, 1  ;;  %v4467_v34 = vadd.f32 %v4416_v26, %v4356_v55 }
 0x4e2   : > { %v5407_v40 = vmax.f32 %v5353_v53, 0.0  ;;  %5181 = vst [vmem:[#allocation2 + $0x160] sm:$0xff] %v5130_v54  ;;  %v5293_v59 = vmul.f32 %v8832_v14, %v5130_v54  ;;  %v6963_v10 = vpop.f32.mrf.mxu1  ;;  %v7083_v60 = vpop.f32.mrf.mxu0 }
 0x4e3   : > { %v5026_v61 = vsel %vm3111_vm1, %v5023_v43, %v5025_v50 }
 0x4e4   : > { %5462 = vst.msk [vmem:[%s8659_s22 + $0x158] sm:$0xff] %vm5418_vm3, %v5407_v40  ;;  %v5354_v62 = vadd.f32 %v8846_v23, %v5293_v59  ;;  %v5131_v63 = vadd.f32 %v5026_v61, %v4464_v58  ;;  %v4361_v1 = vpop.f32.mrf.mxu1  ;;  %v4817_v2 = vpop.f32.mrf.mxu0 }
 0x4e5   : > { %v5027_v3 = vrot.slane %v4817_v2, 1  ;;  %v4468_v39 = vadd.f32 %v4417_v36, %v4361_v1 }
 0x4e6   : > { %v5408_v4 = vmax.f32 %v5354_v62, 0.0  ;;  %5182 = vst [vmem:[#allocation2 + $0x168] sm:$0xff] %v5131_v63  ;;  %v5294_v5 = vmul.f32 %v8832_v14, %v5131_v63  ;;  %v6966_v6 = vpop.f32.mrf.mxu1  ;;  %v7086_v7 = vpop.f32.mrf.mxu0 }
 0x4e7   : > { %v5028_v8 = vsel %vm3111_vm1, %v5025_v50, %v5027_v3 }
 0x4e8   : > { %5463 = vst.msk [vmem:[%s8659_s22 + $0x160] sm:$0xff] %vm5418_vm3, %v5408_v4  ;;  %v5355_v9 = vadd.f32 %v8846_v23, %v5294_v5  ;;  %v5132_v44 = vadd.f32 %v5028_v8, %v4465_v16  ;;  %v4364_v11 = vpop.f32.mrf.mxu1  ;;  %v4820_v12 = vpop.f32.mrf.mxu0 }
 0x4e9   : > { %v4469_v0 = vadd.f32 %v4418_v22, %v4364_v11  ;;  %v5029_v15 = vrot.slane %v4820_v12, 1 }
 0x4ea   : > { %v5409_v18 = vmax.f32 %v5355_v9, 0.0  ;;  %5183 = vst [vmem:[#allocation2 + $0x170] sm:$0xff] %v5132_v44  ;;  %v5295_v19 = vmul.f32 %v8832_v14, %v5132_v44  ;;  %v6967_v28 = vpop.f32.mrf.mxu1  ;;  %v7087_v20 = vpop.f32.mrf.mxu0 }
 0x4eb   : > { %4520 = vst [vmem:[#allocation2 + $0x190] sm:$0xff] %v4469_v0  ;;  %v5030_v21 = vsel %vm3111_vm1, %v5027_v3, %v5029_v15 }
 0x4ec   : > { %5464 = vst.msk [vmem:[%s8659_s22 + $0x168] sm:$0xff] %vm5418_vm3, %v5409_v18  ;;  %v5356_v46 = vadd.f32 %v8846_v23, %v5295_v19  ;;  %v5133_v24 = vadd.f32 %v5030_v21, %v4466_v17  ;;  %v4825_v25 = vpop.f32.mrf.mxu0 }
 0x4ed   : > { %v5031_v27 = vrot.slane %v4825_v25, 1 }
 0x4ee   : > { %v5410_v29 = vmax.f32 %v5356_v46, 0.0  ;;  %5184 = vst [vmem:[#allocation2 + $0x178] sm:$0xff] %v5133_v24  ;;  %v5296_v30 = vmul.f32 %v8832_v14, %v5133_v24  ;;  %v7090_v31 = vpop.f32.mrf.mxu0 }
 0x4ef   : > { %v5032_v32 = vsel %vm3111_vm1, %v5029_v15, %v5031_v27 }
 0x4f0   : > { %5465 = vst.msk [vmem:[%s8659_s22 + $0x170] sm:$0xff] %vm5418_vm3, %v5410_v29  ;;  %v5357_v33 = vadd.f32 %v8846_v23, %v5296_v30  ;;  %v5134_v35 = vadd.f32 %v5032_v32, %v4467_v34  ;;  %v4828_v37 = vpop.f32.mrf.mxu0 }
 0x4f1   : > { %v5033_v48 = vrot.slane %v4828_v37, 1 }
 0x4f2   : > { %v5411_v41 = vmax.f32 %v5357_v33, 0.0  ;;  %5185 = vst [vmem:[#allocation2 + $0x180] sm:$0xff] %v5134_v35  ;;  %v5297_v43 = vmul.f32 %v8832_v14, %v5134_v35  ;;  %v4882_v45 = vld [vmem:[#allocation2 + $0x190] sm:$0x7f]  ;;  %v7091_v47 = vpop.f32.mrf.mxu0 }
 0x4f3   : > { %v5034_v49 = vsel %vm3111_vm1, %v5031_v27, %v5033_v48  ;;  %v5136_v52 = vadd.f32 %v5033_v48, %v4882_v45 }
 0x4f4   : > { %5466 = vst.msk [vmem:[%s8659_s22 + $0x178] sm:$0xff] %vm5418_vm3, %v5411_v41  ;;  %v5358_v38 = vadd.f32 %v8846_v23, %v5297_v43  ;;  %v5135_v51 = vadd.f32 %v5034_v49, %v4468_v39 }
 0x4f5   : > { %5187 = vst [vmem:[#allocation2 + $0x190] sm:$0x7f] %v5136_v52 }
 0x4f6   : > { %v5412_v53 = vmax.f32 %v5358_v38, 0.0  ;;  %5186 = vst [vmem:[#allocation2 + $0x188] sm:$0xff] %v5135_v51  ;;  %v5298_v54 = vmul.f32 %v8832_v14, %v5135_v51 }
 0x4f8   : > { %5467 = vst.msk [vmem:[%s8659_s22 + $0x180] sm:$0xff] %vm5418_vm3, %v5412_v53  ;;  %v5359_v55 = vadd.f32 %v8846_v23, %v5298_v54 }
 0x4fa   : > { %v5413_v56 = vmax.f32 %v5359_v55, 0.0 }
 0x4fc   : > { %v5238_v57 = vld [vmem:[#allocation2 + $0x190] sm:$0xff]  ;;  %5468 = vst.msk [vmem:[%s8659_s22 + $0x188] sm:$0xff] %vm5418_vm3, %v5413_v56 }
 0x4fd   : > { %v5299_v50 = vmul.f32 %v8832_v14, %v5238_v57 }
 0x4ff   : > { %v5360_v58 = vadd.f32 %v8846_v23, %v5299_v50 }
 0x501   : > { %v5414_v40 = vmax.f32 %v5360_v58, 0.0 }
 0x503   : > { %5469 = vst.msk [vmem:[%s8659_s22 + $0x190] sm:$0xff] %vm5418_vm3, %v5414_v40 }
 0x504 PF: > { %p15_p0 = scmp.ge.s32.totalorder %s7517_s25, 4   ;;  %s8973_s15 = smov %s7432_s16 }
 0x505   : > { %s8974_s16 = smov %s7436_s17  ;;  %s8975_s17 = smov %s7537_s7 }
 0x506   : > { %s8976_s18 = smov %s7517_s25  ;;  %17 = sbr.rel (!%p15_p0) target bundleno = 4 (0x4), region = 88 }
 0x50b   :  { %5494 = vsyncpa [#allocation4], 1 }
 0x50c   :  { %5496 = vsyncpa [#allocation4 + $0x1], 1 }
 0x50d   :  { %5497 = vsyncpa [#allocation6], 1 }

</bundles_post_ra>
